<compile_context>
chip_gen: v7x
topology: tpu7x:2x2x1
jax: 0.10.0
libtpu: 0.0.40
codegen_flags: <defaults>
</compile_context>

<pallas_src>
import functools

import jax
import jax.numpy as jnp
from jax import lax
from jax.experimental import pallas as pl
from jax.experimental.pallas import tpu as pltpu

EPS = 1e-5


# --------------------------- generation-aware knobs -------------------------- #

@functools.lru_cache(maxsize=None)
def _vmem_limit_bytes():
    """Scoped VMEM limit: ~40 MiB on v7x (64 MiB/TC), ~80 MiB on v5e/v6e (128 MiB)."""
    try:
        phys = int(pltpu.get_tpu_info().vmem_capacity_bytes)
    except Exception:
        phys = 64 * 1024 * 1024          # conservative fallback
    return 40 * 1024 * 1024 if phys <= 64 * 1024 * 1024 else 80 * 1024 * 1024


def _pick_tile_n(N, H, W, Cin, Cout):
    """Largest batch tile whose conv-pass working set fits ~half the VMEM limit."""
    per_img = 4 * (2 * H * W * Cin               # input block (double-buffered)
                   + 2 * H * W * Cout            # raw-conv output block (double-buffered)
                   + (H + 2) * (W + 2) * Cin     # padded scratch
                   + 9 * H * W * Cin             # im2col scratch
                   + 3 * H * W * Cout)           # accumulator / live intermediates
    budget = _vmem_limit_bytes() // 2
    t = int(max(1, min(N, budget // max(per_img, 1))))
    while N % t:
        t -= 1
    return t


# ------------------------------ Pass A: conv + stats ------------------------- #

def _conv_stats_kernel(H, W, Cin, Cout,
                       x_ref, w_ref, y_ref, stats_ref, xp_ref, col_ref):
    """3x3 conv (pad=1, stride=1) of one batch tile + per-tile centered BN stats.

    x_ref   : (tile_n, H, W, Cin)        input tile (unpadded)
    w_ref   : (9*Cin, Cout)              weights, rows ordered (dy, dx, ci) - resident
    y_ref   : (tile_n*H*W, Cout)         un-normalized conv output (written once)
    stats_ref: (2, Cout)                 [tile mean, tile M2]
    xp_ref  : VMEM (tile_n, H+2, W+2, Cin) zero-padded scratch
    col_ref : VMEM (tile_n*H*W, 9*Cin)   im2col slab
    """
    tn = x_ref.shape[0]
    m_tile = tn * H * W

    # In-kernel zero padding (border re-zeroed every step -> megacore/parallel safe).
    xp_ref[...] = jnp.zeros_like(xp_ref)
    xp_ref[:, 1:H + 1, 1:W + 1, :] = x_ref[...]

    # im2col slab: 9 shifted windows side-by-side -> ONE K = 9*Cin MXU matmul.
    k = 0
    for dy in range(3):
        for dx in range(3):
            col_ref[:, k * Cin:(k + 1) * Cin] = (
                xp_ref[:, dy:dy + H, dx:dx + W, :].reshape(m_tile, Cin))
            k += 1

    # DEFAULT matmul precision (review); for production use bf16 operands + f32 acc.
    acc = jnp.dot(col_ref[...], w_ref[...], preferred_element_type=jnp.float32)
    # NOTE: conv bias intentionally omitted -- it cancels under training-mode BN.

    # Un-normalized conv output: written once, never recomputed.
    y_ref[...] = acc

    # Per-tile centered statistics (numerically stable; combined via Chan in XLA).
    mu = jnp.sum(acc, axis=0, keepdims=True) * (1.0 / m_tile)   # (1, Cout), XLU reduce
    d = acc - mu
    m2 = jnp.sum(d * d, axis=0, keepdims=True)                  # (1, Cout)
    stats_ref[0:1, :] = mu
    stats_ref[1:2, :] = m2


def _conv_stats_call(x_nhwc, w9, tile_n):
    N, H, W, Cin = x_nhwc.shape
    K, Cout = w9.shape
    n_tiles = N // tile_n
    m_tile = tile_n * H * W

    kernel = functools.partial(_conv_stats_kernel, H, W, Cin, Cout)
    return pl.pallas_call(
        kernel,
        out_shape=(jax.ShapeDtypeStruct((N * H * W, Cout), jnp.float32),
                   jax.ShapeDtypeStruct((n_tiles, 2, Cout), jnp.float32)),
        grid_spec=pltpu.PrefetchScalarGridSpec(
            num_scalar_prefetch=0,
            grid=(n_tiles,),
            in_specs=[
                pl.BlockSpec((tile_n, H, W, Cin), lambda i: (i, 0, 0, 0)),
                # Constant index map -> DMA'd once, stays resident in VMEM.
                pl.BlockSpec((K, Cout), lambda i: (0, 0)),
            ],
            out_specs=(
                pl.BlockSpec((m_tile, Cout), lambda i: (i, 0)),
                pl.BlockSpec((None, 2, Cout), lambda i: (i, 0, 0)),
            ),
            scratch_shapes=[
                pltpu.VMEM((tile_n, H + 2, W + 2, Cin), jnp.float32),
                pltpu.VMEM((m_tile, K), jnp.float32),
            ],
        ),
        compiler_params=pltpu.CompilerParams(
            # No cross-tile carry -> parallel (lets v7x split tiles over 2 TCs).
            dimension_semantics=("parallel",),
            vmem_limit_bytes=_vmem_limit_bytes(),
        ),
    )(x_nhwc, w9)


# ------------------------------ Pass B: BN apply ----------------------------- #

def _bn_apply_kernel(add_residual, apply_relu, *refs):
    """Lane-dense y*scale + shift (+residual) (+ReLU); pure VPU, unmasked stores."""
    if add_residual:
        y_ref, sc_ref, sh_ref, res_ref, o_ref = refs
    else:
        y_ref, sc_ref, sh_ref, o_ref = refs
        res_ref = None
    out = y_ref[...] * sc_ref[...] + sh_ref[...]
    if add_residual:
        out = out + res_ref[...]
    if apply_relu:
        out = jnp.maximum(out, 0.0)
    o_ref[...] = out


def _bn_apply_call(y_raw, stats, gamma, beta, N, H, W, Cout, residual, relu, tile_n):
    n_tiles = N // tile_n
    m_tile = tile_n * H * W

    # --- combine per-tile centered stats (Chan) -> batch mean / biased var (tiny XLA)
    mu_t = stats[:, 0, :]                                   # (n_tiles, Cout)
    m2_t = stats[:, 1, :]
    mean = jnp.mean(mu_t, axis=0)                           # equal tile sizes
    var = (jnp.sum(m2_t, axis=0)
           + m_tile * jnp.sum(jnp.square(mu_t - mean), axis=0)) / (n_tiles * m_tile)
    rstd = lax.rsqrt(var + EPS)
    scale = gamma * rstd
    shift = beta - mean * scale

    # --- lane-dense layout: fold W into the channel axis (W*Cout lanes) ------
    L = W * Cout
    y3 = y_raw.reshape(N, H, L)                             # contiguous -> free reshape
    scale3 = jnp.tile(scale, W).reshape(1, 1, L)            # param[j] = scale[j % Cout]
    shift3 = jnp.tile(shift, W).reshape(1, 1, L)

    add_residual = residual is not None
    args = [y3, scale3, shift3]
    in_specs = [
        pl.BlockSpec((tile_n, H, L), lambda i: (i, 0, 0)),
        pl.BlockSpec((1, 1, L), lambda i: (0, 0, 0)),       # resident
        pl.BlockSpec((1, 1, L), lambda i: (0, 0, 0)),       # resident
    ]
    if add_residual:
        args.append(residual.reshape(N, H, L))
        in_specs.append(pl.BlockSpec((tile_n, H, L), lambda i: (i, 0, 0)))

    out = pl.pallas_call(
        functools.partial(_bn_apply_kernel, add_residual, relu),
        out_shape=jax.ShapeDtypeStruct((N, H, L), jnp.float32),
        grid_spec=pltpu.PrefetchScalarGridSpec(
            num_scalar_prefetch=0,
            grid=(n_tiles,),
            in_specs=in_specs,
            out_specs=pl.BlockSpec((tile_n, H, L), lambda i: (i, 0, 0)),
        ),
        compiler_params=pltpu.CompilerParams(
            dimension_semantics=("parallel",),
            vmem_limit_bytes=_vmem_limit_bytes(),
        ),
    )(*args)
    return out.reshape(N, H, W, Cout)


# ------------------------------ layer / block wrappers ----------------------- #

def conv_bn_act(x_nhwc, w_hwio, gamma, beta, residual=None, relu=True, tile_n=None):
    """One Conv3x3 (pad=1, stride=1) + BatchNorm(train) [+residual] [+ReLU]."""
    N, H, W, Cin = x_nhwc.shape
    Cout = w_hwio.shape[-1]
    if tile_n is None:
        tile_n = _pick_tile_n(N, H, W, Cin, Cout)
    assert N % tile_n == 0, "batch must be divisible by tile_n"

    w9 = w_hwio.reshape(9 * Cin, Cout).astype(jnp.float32)     # rows ordered (dy, dx, ci)
    g = gamma.astype(jnp.float32)
    b = beta.astype(jnp.float32)

    y_raw, stats = _conv_stats_call(x_nhwc.astype(jnp.float32), w9, tile_n)
    return _bn_apply_call(y_raw, stats, g, b, N, H, W, Cout, residual, relu, tile_n)


def residual_block_forward(x_nhwc, p, tile_n=None):
    # conv1 -> bn1 -> relu
    h1 = conv_bn_act(x_nhwc, p["w1"], p["g1"], p["be1"],
                     residual=None, relu=True, tile_n=tile_n)
    # conv2 -> bn2 -> (+identity) -> relu
    return conv_bn_act(h1, p["w2"], p["g2"], p["be2"],
                       residual=x_nhwc, relu=True, tile_n=tile_n)


def residual_blocks_forward(x_nchw, all_params, tile_n=None):
    """ResidualBlocks.forward. Input/output: NCHW float32 (PyTorch convention)."""
    x = jnp.transpose(x_nchw, (0, 2, 3, 1))          # NCHW -> NHWC
    for p in all_params:
        x = residual_block_forward(x, p, tile_n=tile_n)
    return jnp.transpose(x, (0, 3, 1, 2))            # NHWC -> NCHW


# --------------------------- parameter initialization ------------------------ #

def init_residual_blocks(key, n_blocks, in_dim, out_dim):
    assert in_dim == out_dim, "residual add requires in_dim == out_dim"
    blocks = []
    for _ in range(n_blocks):
        p = {}
        for idx, (ci, co) in enumerate([(in_dim, out_dim), (out_dim, out_dim)], 1):
            key, kw, kb = jax.random.split(key, 3)
            fan_in = ci * 9
            bound = (1.0 / fan_in) ** 0.5            # ~ PyTorch conv default init
            p[f"w{idx}"] = jax.random.uniform(kw, (3, 3, ci, co), jnp.float32,
                                              -bound, bound)       # HWIO
            p[f"b{idx}"] = jax.random.uniform(kb, (co,), jnp.float32,
                                              -bound, bound)       # conv bias (cancels in BN)
            p[f"g{idx}"] = jnp.ones((co,), jnp.float32)            # BN gamma
            p[f"be{idx}"] = jnp.zeros((co,), jnp.float32)          # BN beta
        blocks.append(p)
    return blocks


# ------------------------------ pure-JAX reference --------------------------- #

def _reference(x_nchw, all_params):
    x = jnp.transpose(x_nchw, (0, 2, 3, 1))

    def conv_bn(z, w_hwio, b, g, be, relu):
        y = lax.conv_general_dilated(
            z, w_hwio, window_strides=(1, 1), padding=((1, 1), (1, 1)),
            dimension_numbers=("NHWC", "HWIO", "NHWC"),
            precision=lax.Precision.HIGHEST)
        y = y + b
        m = jnp.mean(y, axis=(0, 1, 2), keepdims=True)
        v = jnp.mean((y - m) ** 2, axis=(0, 1, 2), keepdims=True)   # biased var
        o = g * (y - m) / jnp.sqrt(v + EPS) + be
        return jnp.maximum(o, 0.0) if relu else o

    for p in all_params:
        h1 = conv_bn(x, p["w1"], p["b1"], p["g1"], p["be1"], True)
        h2 = conv_bn(h1, p["w2"], p["b2"], p["g2"], p["be2"], False)
        x = jnp.maximum(x + h2, 0.0)
    return jnp.transpose(x, (0, 3, 1, 2))


# ----------------------------------- main ------------------------------------ #

if __name__ == "__main__":
    key = jax.random.PRNGKey(0)
    k_x, k_p = jax.random.split(key)

    n_blocks, C, N, H, W = 2, 8, 2, 16, 16
    x = jax.random.normal(k_x, (N, C, H, W), jnp.float32)   # NCHW like PyTorch
    params = init_residual_blocks(k_p, n_blocks, C, C)

    # tile_n=1 -> two batch tiles per conv, exercising the cross-tile BN stats.
    fwd = jax.jit(functools.partial(residual_blocks_forward, tile_n=1))
    out = fwd(x, params)
    jax.block_until_ready(out)

    ref = _reference(x, params)
    assert out.shape == x.shape
    # Kernel uses DEFAULT matmul precision (per review); reference uses HIGHEST,
    # so tolerance covers the bf16-pass rounding over 4 conv+BN layers.
    max_err = float(jnp.max(jnp.abs(out - ref)))
    assert max_err < 5e-2, f"mismatch vs reference: max abs err = {max_err}"

    print("KERNEL_OK")
</pallas_src>

<mosaic_0001>
module attributes {stable_mosaic.version = 11 : i64} {
  func.func @_conv_stats_kernel(%arg0: i32, %arg1: memref<1x16x16x8xf32, #tpu.memory_space<vmem>>, %arg2: memref<72x8xf32, #tpu.memory_space<vmem>>, %arg3: memref<256x8xf32, #tpu.memory_space<vmem>>, %arg4: memref<1x2x8xf32, #tpu.memory_space<vmem>>, %arg5: memref<1x18x18x8xf32, #tpu.memory_space<vmem>>, %arg6: memref<256x72xf32, #tpu.memory_space<vmem>>) attributes {dimension_semantics = [#tpu.dimension_semantics<parallel>], iteration_bounds = array<i64: 2>, scalar_prefetch = 0 : i64, scratch_operands = 2 : i64, tpu.core_type = #tpu.core_type<tc>, window_params = [{transform_indices = @transform_0, window_bounds = array<i64: 1, 16, 16, 8>}, {pipeline_mode = #tpu.pipeline_mode<synchronous>, transform_indices = @transform_1, window_bounds = array<i64: 72, 8>}, {transform_indices = @transform_2, window_bounds = array<i64: 256, 8>}, {transform_indices = @transform_3, window_bounds = array<i64: 1, 2, 8>}]} {
    %cst = arith.constant 0.000000e+00 : f32
    %0 = vector.broadcast %cst : f32 to vector<1x18x18x8xf32>
    %c0 = arith.constant 0 : index
    %c0_0 = arith.constant 0 : index
    %c0_1 = arith.constant 0 : index
    %c0_2 = arith.constant 0 : index
    %1 = vector.load %arg5[%c0, %c0_0, %c0_1, %c0_2] : memref<1x18x18x8xf32, #tpu.memory_space<vmem>>, vector<1x18x18x8xf32>
    tpu.vector_store %arg5[%c0, %c0_0, %c0_1, %c0_2], %0 {strides = array<i32>} : memref<1x18x18x8xf32, #tpu.memory_space<vmem>>, vector<1x18x18x8xf32>,
    %c0_3 = arith.constant 0 : index
    %c0_4 = arith.constant 0 : index
    %c0_5 = arith.constant 0 : index
    %c0_6 = arith.constant 0 : index
    %2 = vector.load %arg1[%c0_3, %c0_4, %c0_5, %c0_6] : memref<1x16x16x8xf32, #tpu.memory_space<vmem>>, vector<1x16x16x8xf32>
    %c0_7 = arith.constant 0 : index
    %c1 = arith.constant 1 : index
    %c1_8 = arith.constant 1 : index
    %c0_9 = arith.constant 0 : index
    %3 = vector.load %arg5[%c0_7, %c1, %c1_8, %c0_9] : memref<1x18x18x8xf32, #tpu.memory_space<vmem>>, vector<1x16x16x8xf32>
    tpu.vector_store %arg5[%c0_7, %c1, %c1_8, %c0_9], %2 {strides = array<i32>} : memref<1x18x18x8xf32, #tpu.memory_space<vmem>>, vector<1x16x16x8xf32>,
    %c0_10 = arith.constant 0 : index
    %c0_11 = arith.constant 0 : index
    %c0_12 = arith.constant 0 : index
    %c0_13 = arith.constant 0 : index
    %4 = vector.load %arg5[%c0_10, %c0_11, %c0_12, %c0_13] : memref<1x18x18x8xf32, #tpu.memory_space<vmem>>, vector<1x16x16x8xf32>
    %5 = vector.shape_cast %4 : vector<1x16x16x8xf32> to vector<256x8xf32>
    %c0_14 = arith.constant 0 : index
    %c0_15 = arith.constant 0 : index
    %6 = vector.load %arg6[%c0_14, %c0_15] : memref<256x72xf32, #tpu.memory_space<vmem>>, vector<256x8xf32>
    tpu.vector_store %arg6[%c0_14, %c0_15], %5 {strides = array<i32>} : memref<256x72xf32, #tpu.memory_space<vmem>>, vector<256x8xf32>,
    %c0_16 = arith.constant 0 : index
    %c0_17 = arith.constant 0 : index
    %c1_18 = arith.constant 1 : index
    %c0_19 = arith.constant 0 : index
    %7 = vector.load %arg5[%c0_16, %c0_17, %c1_18, %c0_19] : memref<1x18x18x8xf32, #tpu.memory_space<vmem>>, vector<1x16x16x8xf32>
    %8 = vector.shape_cast %7 : vector<1x16x16x8xf32> to vector<256x8xf32>
    %c0_20 = arith.constant 0 : index
    %c8 = arith.constant 8 : index
    %9 = vector.load %arg6[%c0_20, %c8] : memref<256x72xf32, #tpu.memory_space<vmem>>, vector<256x8xf32>
    tpu.vector_store %arg6[%c0_20, %c8], %8 {strides = array<i32>} : memref<256x72xf32, #tpu.memory_space<vmem>>, vector<256x8xf32>,
    %c0_21 = arith.constant 0 : index
    %c0_22 = arith.constant 0 : index
    %c2 = arith.constant 2 : index
    %c0_23 = arith.constant 0 : index
    %10 = vector.load %arg5[%c0_21, %c0_22, %c2, %c0_23] : memref<1x18x18x8xf32, #tpu.memory_space<vmem>>, vector<1x16x16x8xf32>
    %11 = vector.shape_cast %10 : vector<1x16x16x8xf32> to vector<256x8xf32>
    %c0_24 = arith.constant 0 : index
    %c16 = arith.constant 16 : index
    %12 = vector.load %arg6[%c0_24, %c16] : memref<256x72xf32, #tpu.memory_space<vmem>>, vector<256x8xf32>
    tpu.vector_store %arg6[%c0_24, %c16], %11 {strides = array<i32>} : memref<256x72xf32, #tpu.memory_space<vmem>>, vector<256x8xf32>,
    %c0_25 = arith.constant 0 : index
    %c1_26 = arith.constant 1 : index
    %c0_27 = arith.constant 0 : index
    %c0_28 = arith.constant 0 : index
    %13 = vector.load %arg5[%c0_25, %c1_26, %c0_27, %c0_28] : memref<1x18x18x8xf32, #tpu.memory_space<vmem>>, vector<1x16x16x8xf32>
    %14 = vector.shape_cast %13 : vector<1x16x16x8xf32> to vector<256x8xf32>
    %c0_29 = arith.constant 0 : index
    %c24 = arith.constant 24 : index
    %15 = vector.load %arg6[%c0_29, %c24] : memref<256x72xf32, #tpu.memory_space<vmem>>, vector<256x8xf32>
    tpu.vector_store %arg6[%c0_29, %c24], %14 {strides = array<i32>} : memref<256x72xf32, #tpu.memory_space<vmem>>, vector<256x8xf32>,
    %c0_30 = arith.constant 0 : index
    %c1_31 = arith.constant 1 : index
    %c1_32 = arith.constant 1 : index
    %c0_33 = arith.constant 0 : index
    %16 = vector.load %arg5[%c0_30, %c1_31, %c1_32, %c0_33] : memref<1x18x18x8xf32, #tpu.memory_space<vmem>>, vector<1x16x16x8xf32>
    %17 = vector.shape_cast %16 : vector<1x16x16x8xf32> to vector<256x8xf32>
    %c0_34 = arith.constant 0 : index
    %c32 = arith.constant 32 : index
    %18 = vector.load %arg6[%c0_34, %c32] : memref<256x72xf32, #tpu.memory_space<vmem>>, vector<256x8xf32>
    tpu.vector_store %arg6[%c0_34, %c32], %17 {strides = array<i32>} : memref<256x72xf32, #tpu.memory_space<vmem>>, vector<256x8xf32>,
    %c0_35 = arith.constant 0 : index
    %c1_36 = arith.constant 1 : index
    %c2_37 = arith.constant 2 : index
    %c0_38 = arith.constant 0 : index
    %19 = vector.load %arg5[%c0_35, %c1_36, %c2_37, %c0_38] : memref<1x18x18x8xf32, #tpu.memory_space<vmem>>, vector<1x16x16x8xf32>
    %20 = vector.shape_cast %19 : vector<1x16x16x8xf32> to vector<256x8xf32>
    %c0_39 = arith.constant 0 : index
    %c40 = arith.constant 40 : index
    %21 = vector.load %arg6[%c0_39, %c40] : memref<256x72xf32, #tpu.memory_space<vmem>>, vector<256x8xf32>
    tpu.vector_store %arg6[%c0_39, %c40], %20 {strides = array<i32>} : memref<256x72xf32, #tpu.memory_space<vmem>>, vector<256x8xf32>,
    %c0_40 = arith.constant 0 : index
    %c2_41 = arith.constant 2 : index
    %c0_42 = arith.constant 0 : index
    %c0_43 = arith.constant 0 : index
    %22 = vector.load %arg5[%c0_40, %c2_41, %c0_42, %c0_43] : memref<1x18x18x8xf32, #tpu.memory_space<vmem>>, vector<1x16x16x8xf32>
    %23 = vector.shape_cast %22 : vector<1x16x16x8xf32> to vector<256x8xf32>
    %c0_44 = arith.constant 0 : index
    %c48 = arith.constant 48 : index
    %24 = vector.load %arg6[%c0_44, %c48] : memref<256x72xf32, #tpu.memory_space<vmem>>, vector<256x8xf32>
    tpu.vector_store %arg6[%c0_44, %c48], %23 {strides = array<i32>} : memref<256x72xf32, #tpu.memory_space<vmem>>, vector<256x8xf32>,
    %c0_45 = arith.constant 0 : index
    %c2_46 = arith.constant 2 : index
    %c1_47 = arith.constant 1 : index
    %c0_48 = arith.constant 0 : index
    %25 = vector.load %arg5[%c0_45, %c2_46, %c1_47, %c0_48] : memref<1x18x18x8xf32, #tpu.memory_space<vmem>>, vector<1x16x16x8xf32>
    %26 = vector.shape_cast %25 : vector<1x16x16x8xf32> to vector<256x8xf32>
    %c0_49 = arith.constant 0 : index
    %c56 = arith.constant 56 : index
    %27 = vector.load %arg6[%c0_49, %c56] : memref<256x72xf32, #tpu.memory_space<vmem>>, vector<256x8xf32>
    tpu.vector_store %arg6[%c0_49, %c56], %26 {strides = array<i32>} : memref<256x72xf32, #tpu.memory_space<vmem>>, vector<256x8xf32>,
    %c0_50 = arith.constant 0 : index
    %c2_51 = arith.constant 2 : index
    %c2_52 = arith.constant 2 : index
    %c0_53 = arith.constant 0 : index
    %28 = vector.load %arg5[%c0_50, %c2_51, %c2_52, %c0_53] : memref<1x18x18x8xf32, #tpu.memory_space<vmem>>, vector<1x16x16x8xf32>
    %29 = vector.shape_cast %28 : vector<1x16x16x8xf32> to vector<256x8xf32>
    %c0_54 = arith.constant 0 : index
    %c64 = arith.constant 64 : index
    %30 = vector.load %arg6[%c0_54, %c64] : memref<256x72xf32, #tpu.memory_space<vmem>>, vector<256x8xf32>
    tpu.vector_store %arg6[%c0_54, %c64], %29 {strides = array<i32>} : memref<256x72xf32, #tpu.memory_space<vmem>>, vector<256x8xf32>,
    %c0_55 = arith.constant 0 : index
    %c0_56 = arith.constant 0 : index
    %31 = vector.load %arg6[%c0_55, %c0_56] : memref<256x72xf32, #tpu.memory_space<vmem>>, vector<256x72xf32>
    %c0_57 = arith.constant 0 : index
    %c0_58 = arith.constant 0 : index
    %32 = vector.load %arg2[%c0_57, %c0_58] : memref<72x8xf32, #tpu.memory_space<vmem>>, vector<72x8xf32>
    %cst_59 = arith.constant dense<0.000000e+00> : vector<256x8xf32>
    %33 = tpu.matmul %31, %32, %cst_59 {dimension_numbers = #tpu.dot_dimension_numbers<[1], [0], [0], [1], [0, 0, 1, 1], [], []>} : vector<256x72xf32>, vector<72x8xf32>, vector<256x8xf32> -> vector<256x8xf32>
    %c0_60 = arith.constant 0 : index
    %c0_61 = arith.constant 0 : index
    %34 = vector.load %arg3[%c0_60, %c0_61] : memref<256x8xf32, #tpu.memory_space<vmem>>, vector<256x8xf32>
    tpu.vector_store %arg3[%c0_60, %c0_61], %33 {strides = array<i32>} : memref<256x8xf32, #tpu.memory_space<vmem>>, vector<256x8xf32>,
    %cst_62 = arith.constant dense<0.000000e+00> : vector<8xf32>
    %35 = vector.multi_reduction <add>, %33, %cst_62 [0] : vector<256x8xf32> to vector<8xf32>
    %36 = vector.shape_cast %35 : vector<8xf32> to vector<1x8xf32>
    %cst_63 = arith.constant 3.906250e-03 : f32
    %37 = vector.broadcast %cst_63 : f32 to vector<1x8xf32>
    %38 = arith.mulf %36, %37 : vector<1x8xf32>
    %39 = vector.broadcast %38 : vector<1x8xf32> to vector<256x8xf32>
    %40 = arith.subf %33, %39 : vector<256x8xf32>
    %41 = arith.mulf %40, %40 : vector<256x8xf32>
    %cst_64 = arith.constant dense<0.000000e+00> : vector<8xf32>
    %42 = vector.multi_reduction <add>, %41, %cst_64 [0] : vector<256x8xf32> to vector<8xf32>
    %43 = vector.shape_cast %42 : vector<8xf32> to vector<1x8xf32>
    %c0_65 = arith.constant 0 : index
    %c0_66 = arith.constant 0 : index
    %c0_67 = arith.constant 0 : index
    %44 = vector.load %arg4[%c0_65, %c0_66, %c0_67] : memref<1x2x8xf32, #tpu.memory_space<vmem>>, vector<1x1x8xf32>
    %45 = vector.shape_cast %44 : vector<1x1x8xf32> to vector<1x8xf32>
    %46 = vector.shape_cast %38 : vector<1x8xf32> to vector<1x1x8xf32>
    tpu.vector_store %arg4[%c0_65, %c0_66, %c0_67], %46 {strides = array<i32>} : memref<1x2x8xf32, #tpu.memory_space<vmem>>, vector<1x1x8xf32>,
    %c0_68 = arith.constant 0 : index
    %c1_69 = arith.constant 1 : index
    %c0_70 = arith.constant 0 : index
    %47 = vector.load %arg4[%c0_68, %c1_69, %c0_70] : memref<1x2x8xf32, #tpu.memory_space<vmem>>, vector<1x1x8xf32>
    %48 = vector.shape_cast %47 : vector<1x1x8xf32> to vector<1x8xf32>
    %49 = vector.shape_cast %43 : vector<1x8xf32> to vector<1x1x8xf32>
    tpu.vector_store %arg4[%c0_68, %c1_69, %c0_70], %49 {strides = array<i32>} : memref<1x2x8xf32, #tpu.memory_space<vmem>>, vector<1x1x8xf32>,
    return
  }
  func.func @transform_0(%arg0: i32) -> (i32, i32, i32, i32) {
    %c0_i32 = arith.constant 0 : i32
    %c0_i32_0 = arith.constant 0 : i32
    %c0_i32_1 = arith.constant 0 : i32
    %c0_i32_2 = arith.constant 0 : i32
    return %arg0, %c0_i32, %c0_i32_0, %c0_i32_1 : i32, i32, i32, i32
  }
  func.func @transform_1(%arg0: i32) -> (i32, i32) {
    %c0_i32 = arith.constant 0 : i32
    %c0_i32_0 = arith.constant 0 : i32
    %c0_i32_1 = arith.constant 0 : i32
    return %c0_i32, %c0_i32_0 : i32, i32
  }
  func.func @transform_2(%arg0: i32) -> (i32, i32) {
    %c0_i32 = arith.constant 0 : i32
    %c0_i32_0 = arith.constant 0 : i32
    return %arg0, %c0_i32 : i32, i32
  }
  func.func @transform_3(%arg0: i32) -> (i32, i32, i32) {
    %c0_i32 = arith.constant 0 : i32
    %c0_i32_0 = arith.constant 0 : i32
    %c0_i32_1 = arith.constant 0 : i32
    return %arg0, %c0_i32, %c0_i32_0 : i32, i32, i32
  }
}

module attributes {stable_mosaic.version = 11 : i64} {
  func.func @_bn_apply_kernel(%arg0: i32, %arg1: memref<1x16x128xf32, #tpu.memory_space<vmem>>, %arg2: memref<1x1x128xf32, #tpu.memory_space<vmem>>, %arg3: memref<1x1x128xf32, #tpu.memory_space<vmem>>, %arg4: memref<1x16x128xf32, #tpu.memory_space<vmem>>) attributes {dimension_semantics = [#tpu.dimension_semantics<parallel>], iteration_bounds = array<i64: 2>, scalar_prefetch = 0 : i64, scratch_operands = 0 : i64, tpu.core_type = #tpu.core_type<tc>, window_params = [{transform_indices = @transform_0, window_bounds = array<i64: 1, 16, 128>}, {pipeline_mode = #tpu.pipeline_mode<synchronous>, transform_indices = @transform_1, window_bounds = array<i64: 1, 1, 128>}, {pipeline_mode = #tpu.pipeline_mode<synchronous>, transform_indices = @transform_2, window_bounds = array<i64: 1, 1, 128>}, {transform_indices = @transform_3, window_bounds = array<i64: 1, 16, 128>}]} {
    %c0 = arith.constant 0 : index
    %c0_0 = arith.constant 0 : index
    %c0_1 = arith.constant 0 : index
    %0 = vector.load %arg1[%c0, %c0_0, %c0_1] : memref<1x16x128xf32, #tpu.memory_space<vmem>>, vector<1x16x128xf32>
    %c0_2 = arith.constant 0 : index
    %c0_3 = arith.constant 0 : index
    %c0_4 = arith.constant 0 : index
    %1 = vector.load %arg2[%c0_2, %c0_3, %c0_4] : memref<1x1x128xf32, #tpu.memory_space<vmem>>, vector<1x1x128xf32>
    %2 = vector.broadcast %1 : vector<1x1x128xf32> to vector<1x16x128xf32>
    %3 = arith.mulf %0, %2 : vector<1x16x128xf32>
    %c0_5 = arith.constant 0 : index
    %c0_6 = arith.constant 0 : index
    %c0_7 = arith.constant 0 : index
    %4 = vector.load %arg3[%c0_5, %c0_6, %c0_7] : memref<1x1x128xf32, #tpu.memory_space<vmem>>, vector<1x1x128xf32>
    %5 = vector.broadcast %4 : vector<1x1x128xf32> to vector<1x16x128xf32>
    %6 = arith.addf %3, %5 : vector<1x16x128xf32>
    %cst = arith.constant 0.000000e+00 : f32
    %7 = vector.broadcast %cst : f32 to vector<1x16x128xf32>
    %8 = arith.maximumf %6, %7 : vector<1x16x128xf32>
    %c0_8 = arith.constant 0 : index
    %c0_9 = arith.constant 0 : index
    %c0_10 = arith.constant 0 : index
    %9 = vector.load %arg4[%c0_8, %c0_9, %c0_10] : memref<1x16x128xf32, #tpu.memory_space<vmem>>, vector<1x16x128xf32>
    tpu.vector_store %arg4[%c0_8, %c0_9, %c0_10], %8 {strides = array<i32>} : memref<1x16x128xf32, #tpu.memory_space<vmem>>, vector<1x16x128xf32>,
    return
  }
  func.func @transform_0(%arg0: i32) -> (i32, i32, i32) {
    %c0_i32 = arith.constant 0 : i32
    %c0_i32_0 = arith.constant 0 : i32
    %c0_i32_1 = arith.constant 0 : i32
    return %arg0, %c0_i32, %c0_i32_0 : i32, i32, i32
  }
  func.func @transform_1(%arg0: i32) -> (i32, i32, i32) {
    %c0_i32 = arith.constant 0 : i32
    %c0_i32_0 = arith.constant 0 : i32
    %c0_i32_1 = arith.constant 0 : i32
    %c0_i32_2 = arith.constant 0 : i32
    return %c0_i32, %c0_i32_0, %c0_i32_1 : i32, i32, i32
  }
  func.func @transform_2(%arg0: i32) -> (i32, i32, i32) {
    %c0_i32 = arith.constant 0 : i32
    %c0_i32_0 = arith.constant 0 : i32
    %c0_i32_1 = arith.constant 0 : i32
    %c0_i32_2 = arith.constant 0 : i32
    return %c0_i32, %c0_i32_0, %c0_i32_1 : i32, i32, i32
  }
  func.func @transform_3(%arg0: i32) -> (i32, i32, i32) {
    %c0_i32 = arith.constant 0 : i32
    %c0_i32_0 = arith.constant 0 : i32
    %c0_i32_1 = arith.constant 0 : i32
    return %arg0, %c0_i32, %c0_i32_0 : i32, i32, i32
  }
}

module attributes {stable_mosaic.version = 11 : i64} {
  func.func @_bn_apply_kernel(%arg0: i32, %arg1: memref<1x16x128xf32, #tpu.memory_space<vmem>>, %arg2: memref<1x1x128xf32, #tpu.memory_space<vmem>>, %arg3: memref<1x1x128xf32, #tpu.memory_space<vmem>>, %arg4: memref<1x16x128xf32, #tpu.memory_space<vmem>>, %arg5: memref<1x16x128xf32, #tpu.memory_space<vmem>>) attributes {dimension_semantics = [#tpu.dimension_semantics<parallel>], iteration_bounds = array<i64: 2>, scalar_prefetch = 0 : i64, scratch_operands = 0 : i64, tpu.core_type = #tpu.core_type<tc>, window_params = [{transform_indices = @transform_0, window_bounds = array<i64: 1, 16, 128>}, {pipeline_mode = #tpu.pipeline_mode<synchronous>, transform_indices = @transform_1, window_bounds = array<i64: 1, 1, 128>}, {pipeline_mode = #tpu.pipeline_mode<synchronous>, transform_indices = @transform_2, window_bounds = array<i64: 1, 1, 128>}, {transform_indices = @transform_3, window_bounds = array<i64: 1, 16, 128>}, {transform_indices = @transform_4, window_bounds = array<i64: 1, 16, 128>}]} {
    %c0 = arith.constant 0 : index
    %c0_0 = arith.constant 0 : index
    %c0_1 = arith.constant 0 : index
    %0 = vector.load %arg1[%c0, %c0_0, %c0_1] : memref<1x16x128xf32, #tpu.memory_space<vmem>>, vector<1x16x128xf32>
    %c0_2 = arith.constant 0 : index
    %c0_3 = arith.constant 0 : index
    %c0_4 = arith.constant 0 : index
    %1 = vector.load %arg2[%c0_2, %c0_3, %c0_4] : memref<1x1x128xf32, #tpu.memory_space<vmem>>, vector<1x1x128xf32>
    %2 = vector.broadcast %1 : vector<1x1x128xf32> to vector<1x16x128xf32>
    %3 = arith.mulf %0, %2 : vector<1x16x128xf32>
    %c0_5 = arith.constant 0 : index
    %c0_6 = arith.constant 0 : index
    %c0_7 = arith.constant 0 : index
    %4 = vector.load %arg3[%c0_5, %c0_6, %c0_7] : memref<1x1x128xf32, #tpu.memory_space<vmem>>, vector<1x1x128xf32>
    %5 = vector.broadcast %4 : vector<1x1x128xf32> to vector<1x16x128xf32>
    %6 = arith.addf %3, %5 : vector<1x16x128xf32>
    %c0_8 = arith.constant 0 : index
    %c0_9 = arith.constant 0 : index
    %c0_10 = arith.constant 0 : index
    %7 = vector.load %arg4[%c0_8, %c0_9, %c0_10] : memref<1x16x128xf32, #tpu.memory_space<vmem>>, vector<1x16x128xf32>
    %8 = arith.addf %6, %7 : vector<1x16x128xf32>
    %cst = arith.constant 0.000000e+00 : f32
    %9 = vector.broadcast %cst : f32 to vector<1x16x128xf32>
    %10 = arith.maximumf %8, %9 : vector<1x16x128xf32>
    %c0_11 = arith.constant 0 : index
    %c0_12 = arith.constant 0 : index
    %c0_13 = arith.constant 0 : index
    %11 = vector.load %arg5[%c0_11, %c0_12, %c0_13] : memref<1x16x128xf32, #tpu.memory_space<vmem>>, vector<1x16x128xf32>
    tpu.vector_store %arg5[%c0_11, %c0_12, %c0_13], %10 {strides = array<i32>} : memref<1x16x128xf32, #tpu.memory_space<vmem>>, vector<1x16x128xf32>,
    return
  }
  func.func @transform_0(%arg0: i32) -> (i32, i32, i32) {
    %c0_i32 = arith.constant 0 : i32
    %c0_i32_0 = arith.constant 0 : i32
    %c0_i32_1 = arith.constant 0 : i32
    return %arg0, %c0_i32, %c0_i32_0 : i32, i32, i32
  }
  func.func @transform_1(%arg0: i32) -> (i32, i32, i32) {
    %c0_i32 = arith.constant 0 : i32
    %c0_i32_0 = arith.constant 0 : i32
    %c0_i32_1 = arith.constant 0 : i32
    %c0_i32_2 = arith.constant 0 : i32
    return %c0_i32, %c0_i32_0, %c0_i32_1 : i32, i32, i32
  }
  func.func @transform_2(%arg0: i32) -> (i32, i32, i32) {
    %c0_i32 = arith.constant 0 : i32
    %c0_i32_0 = arith.constant 0 : i32
    %c0_i32_1 = arith.constant 0 : i32
    %c0_i32_2 = arith.constant 0 : i32
    return %c0_i32, %c0_i32_0, %c0_i32_1 : i32, i32, i32
  }
  func.func @transform_3(%arg0: i32) -> (i32, i32, i32) {
    %c0_i32 = arith.constant 0 : i32
    %c0_i32_0 = arith.constant 0 : i32
    %c0_i32_1 = arith.constant 0 : i32
    return %arg0, %c0_i32, %c0_i32_0 : i32, i32, i32
  }
  func.func @transform_4(%arg0: i32) -> (i32, i32, i32) {
    %c0_i32 = arith.constant 0 : i32
    %c0_i32_0 = arith.constant 0 : i32
    %c0_i32_1 = arith.constant 0 : i32
    return %arg0, %c0_i32, %c0_i32_0 : i32, i32, i32
  }
}

</mosaic_0001>

<bundles_post_ra>
// kernel: tile.48
= control target key start
LH: loop header
LB: loop body
LE: loop exit
PB: predicated region body
PF: predicated region fallthrough
CT: control target
= control target key end

     0   :  { %s28_s0 = inlined_call_operand.vmem [shape: f32[8], index: 0, kind: input, shape index: {}]   ;;  %s29_s1 = inlined_call_operand.vmem [shape: f32[16,8], index: 1, kind: output, shape index: {}]  }
   0x1   :  { %v4_v0 = vld [vmem:[%s28_s0] ss:$0 sm:$0xff] }
   0x2   :  { %5 = vst [vmem:[%s29_s1] sm:$0xff] %v4_v0  ;;  %8 = vst [vmem:[%s29_s1 + $0x8] sm:$0xff] %v4_v0 }

// kernel: tile.49
= control target key start
LH: loop header
LB: loop body
LE: loop exit
PB: predicated region body
PF: predicated region fallthrough
CT: control target
= control target key end

     0   :  { %s131_s10 = smov 120   ;;  %s132_s11 = smov 104   ;;  %vm3_vm0 = vcmask 64512   ;;  %vm9_vm1 = vcmask 1048512   ;;  %vm15_vm2 = vcmask 982912   ;;  %vm21_vm3 = vcmask 917312   ;;  %s207_s0 = inlined_call_operand.vmem [shape: f32[16,8], index: 0, kind: input, shape index: {}]   ;;  %s208_s1 = inlined_call_operand.vmem [shape: f32[1,1,128], index: 1, kind: output, shape index: {}]  }
   0x1   :  { %v101_v0 = vld [vmem:[%s207_s0 + $0xf] sm:$0x1]   ;;  %v103_v1 = vld [vmem:[%s207_s0 + $0xd] sm:$0x1]   ;;  %v102_v2 = vld [vmem:[%s207_s0 + $0xe] sm:$0x1]  }
   0x2   :  { %7 = vrot.lane.b32.xlu0 %v101_v0, %s131_s10  ;;  %19 = vrot.lane.b32.xlu1 %v103_v1, %s132_s11  ;;  %v104_v3 = vld [vmem:[%s207_s0 + $0xc] sm:$0x1]   ;;  %s133_s16 = smov 112   ;;  %s134_s17 = smov 96   ;;  %v105_v4 = vld [vmem:[%s207_s0 + $0xb] sm:$0x1]  }
   0x3   :  { %v106_v5 = vld [vmem:[%s207_s0 + $0xa] sm:$0x1]   ;;  %v2_v6 = vld [vmem:[%s207_s0] sm:$0x1]   ;;  %s135_s24 = smov 88   ;;  %s136_s25 = smov 80  }
   0x4   :  { %4 = vst.msk [vmem:[#allocation0] sm:$0x1] %vm3_vm0, %v2_v6   ;;  %v107_v7 = vld [vmem:[%s207_s0 + $0x9] sm:$0x1]   ;;  %v108_v8 = vld [vmem:[%s207_s0 + $0x8] sm:$0x1]  }
   0x5   :  { %s137_s30 = smov 72   ;;  %s138_s2 = smov 64   ;;  %v109_v9 = vld [vmem:[%s207_s0 + $0x7] sm:$0x1]   ;;  %v110_v10 = vld [vmem:[%s207_s0 + $0x6] sm:$0x1]  }
   0x6   :  { %13 = vrot.lane.b32.xlu0 %v102_v2, %s133_s16  ;;  %25 = vrot.lane.b32.xlu1 %v104_v3, %s134_s17  ;;  %s139_s7 = smov 56   ;;  %s140_s8 = smov 48   ;;  %v111_v11 = vld [vmem:[%s207_s0 + $0x5] sm:$0x1]   ;;  %v112_v12 = vld [vmem:[%s207_s0 + $0x4] sm:$0x1]  }
   0x7   :  { %s141_s13 = smov 40   ;;  %s142_s14 = smov 32   ;;  %v113_v13 = vld [vmem:[%s207_s0 + $0x3] sm:$0x1]   ;;  %v114_v14 = vld [vmem:[%s207_s0 + $0x2] sm:$0x1]  }
   0x8   :  { %s143_s19 = smov 24   ;;  %s144_s20 = smov 16   ;;  %v115_v15 = vld [vmem:[%s207_s0 + $0x1] sm:$0x1]   ;;  %vm27_vm4 = vcmask 851712   ;;  %vm33_vm5 = vcmask 786112  }
   0x9   :  { %s145_s0 = smov 8   ;;  %vm39_vm6 = vcmask 720512   ;;  %vm45_vm7 = vcmask 654912   ;;  %vm51_vm8 = vcmask 589312   ;;  %vm57_vm9 = vcmask 523712  }
   0xa   :  { %31 = vrot.lane.b32.xlu0 %v105_v4, %s135_s24  ;;  %37 = vrot.lane.b32.xlu1 %v106_v5, %s136_s25  ;;  %vm63_vm10 = vcmask 458112   ;;  %vm69_vm11 = vcmask 392512   ;;  %vm75_vm12 = vcmask 326912   ;;  %vm81_vm13 = vcmask 261312  }
   0xb   :  { %vm87_vm14 = vcmask 195712   ;;  %vm93_vm15 = vcmask 130112  }
   0xe   :  { %43 = vrot.lane.b32.xlu0 %v107_v7, %s137_s30  ;;  %49 = vrot.lane.b32.xlu1 %v108_v8, %s138_s2 }
  0x12   :  { %55 = vrot.lane.b32.xlu0 %v109_v9, %s139_s7  ;;  %61 = vrot.lane.b32.xlu1 %v110_v10, %s140_s8 }
  0x16   :  { %67 = vrot.lane.b32.xlu0 %v111_v11, %s141_s13  ;;  %73 = vrot.lane.b32.xlu1 %v112_v12, %s142_s14 }
  0x1a   :  { %79 = vrot.lane.b32.xlu0 %v113_v13, %s143_s19  ;;  %85 = vrot.lane.b32.xlu1 %v114_v14, %s144_s20 }
  0x1e   :  { %91 = vrot.lane.b32.xlu0 %v115_v15, %s145_s0 }
  0x74   :  { %v8_v16 = vpop.permute.xlu0 %7   ;;  %v20_v17 = vpop.permute.xlu1 %19  }
  0x75   :  { %10 = vst.msk [vmem:[#allocation0] sm:$0x1] %vm9_vm1, %v8_v16  }
  0x78   :  { %v14_v18 = vpop.permute.xlu0 %13   ;;  %v26_v19 = vpop.permute.xlu1 %25  }
  0x79   :  { %16 = vst.msk [vmem:[#allocation0] sm:$0x1] %vm15_vm2, %v14_v18  }
  0x7a   :  { %22 = vst.msk [vmem:[#allocation0] sm:$0x1] %vm21_vm3, %v20_v17  }
  0x7b   :  { %28 = vst.msk [vmem:[#allocation0] sm:$0x1] %vm27_vm4, %v26_v19  }
  0x7c   :  { %v32_v20 = vpop.permute.xlu0 %31   ;;  %v38_v21 = vpop.permute.xlu1 %37  }
  0x7d   :  { %34 = vst.msk [vmem:[#allocation0] sm:$0x1] %vm33_vm5, %v32_v20  }
  0x7e   :  { %40 = vst.msk [vmem:[#allocation0] sm:$0x1] %vm39_vm6, %v38_v21  }
  0x80   :  { %v44_v22 = vpop.permute.xlu0 %43   ;;  %v50_v23 = vpop.permute.xlu1 %49  }
  0x81   :  { %46 = vst.msk [vmem:[#allocation0] sm:$0x1] %vm45_vm7, %v44_v22  }
  0x82   :  { %52 = vst.msk [vmem:[#allocation0] sm:$0x1] %vm51_vm8, %v50_v23  }
  0x84   :  { %v56_v24 = vpop.permute.xlu0 %55   ;;  %v62_v25 = vpop.permute.xlu1 %61  }
  0x85   :  { %58 = vst.msk [vmem:[#allocation0] sm:$0x1] %vm57_vm9, %v56_v24  }
  0x86   :  { %64 = vst.msk [vmem:[#allocation0] sm:$0x1] %vm63_vm10, %v62_v25  }
  0x88   :  { %v68_v26 = vpop.permute.xlu0 %67   ;;  %v74_v27 = vpop.permute.xlu1 %73  }
  0x89   :  { %70 = vst.msk [vmem:[#allocation0] sm:$0x1] %vm69_vm11, %v68_v26  }
  0x8a   :  { %76 = vst.msk [vmem:[#allocation0] sm:$0x1] %vm75_vm12, %v74_v27  }
  0x8c   :  { %v80_v28 = vpop.permute.xlu0 %79   ;;  %v86_v29 = vpop.permute.xlu1 %85  }
  0x8d   :  { %82 = vst.msk [vmem:[#allocation0] sm:$0x1] %vm81_vm13, %v80_v28  }
  0x8e   :  { %88 = vst.msk [vmem:[#allocation0] sm:$0x1] %vm87_vm14, %v86_v29  }
  0x90   :  { %v92_v30 = vpop.permute.xlu0 %91  }
  0x91   :  { %94 = vst.msk [vmem:[#allocation0] sm:$0x1] %vm93_vm15, %v92_v30  }
  0x98   :  { %v98_v31 = vld [vmem:[#allocation0] sm:$0x1] }
  0x99   :  { %100 = vst [vmem:[%s208_s1] sm:$0x1] %v98_v31 }

// kernel: residual_blocks_forward.11
= control target key start
LH: loop header
LB: loop body
LE: loop exit
PB: predicated region body
PF: predicated region fallthrough
CT: control target
= control target key end

     0   :  { %s372_s15 = smov 0   ;;  %s398_s0 = inlined_call_operand.vmem [shape: f32[2,16,128], index: 0, kind: input, shape index: {}]   ;;  %s399_s1 = inlined_call_operand.vmem [shape: f32[1,1,128], index: 1, kind: input, shape index: {}]   ;;  %s400_s2 = inlined_call_operand.vmem [shape: f32[1,1,128], index: 2, kind: input, shape index: {}]   ;;  %s401_s3 = inlined_call_operand.vmem [shape: f32[2,16,128], index: 3, kind: input, shape index: {}]   ;;  %s402_s4 = inlined_call_operand.vmem [shape: f32[2,16,128], index: 4, kind: output, shape index: {}]  }
   0x1 LB: > { %s313_s16 = sadd.s32 4294967295, %s345_s15   ;;  %p317_p0 = scmp.ge.s32.totalorder %s345_s15, 1  ;;  %s345_s15 = sphi %s372_s15, %s14_s15  }
   0x2   : > { %p172_p1 = scmp.lt.s32.totalorder %s345_s15, 3 }
   0x4   : > { %p173_p2 = pnand %p317_p0, %p172_p1 }
   0x5   : > { %p203_p3 = scmp.lt.s32.totalorder (!%p173_p2), %s313_s16, 1  ;;  %v324_v0 = vld [vmem:[%s399_s1] ss:$0 sm:$0xff] (!%p173_p2) }
   0x6   : > { %176 = sbr.rel (%p173_p2) target bundleno = 26 (0x1a), region = 36  ;;  %v325_v3 = vld [vmem:[%s400_s2] ss:$0 sm:$0xff] (!%p173_p2) }
   0xd   : > { %s404_s16 = smov (!%p203_p3, %s313_s16), 1 }
   0xe   : > { %s328_s17 = sshll.u32 %s404_s16, 4 }
   0xf   : > { %s207_s22 = scalar_lea.vmem %s398_s0, %s328_s17  ;;  %s212_s25 = scalar_lea.vmem %s401_s3, %s328_s17 }
  0x10   : > { %v218_v1 = vld [vmem:[%s207_s22] sm:$0xff]  ;;  %v219_v2 = vld [vmem:[%s207_s22 + $0x8] sm:$0xff]  ;;  %s217_s30 = scalar_lea.vmem %s402_s4, %s328_s17 }
  0x11   : > { %v227_v4 = vmul.f32 %v324_v0, %v218_v1  ;;  %v228_v5 = vmul.f32 %v324_v0, %v219_v2  ;;  %v238_v6 = vld [vmem:[%s212_s25] sm:$0xff]  ;;  %v239_v7 = vld [vmem:[%s212_s25 + $0x8] sm:$0xff] }
  0x13   : > { %v236_v8 = vadd.f32 %v325_v3, %v227_v4  ;;  %v237_v9 = vadd.f32 %v325_v3, %v228_v5 }
  0x15   : > { %v240_v10 = vadd.f32 %v238_v6, %v236_v8  ;;  %v241_v11 = vadd.f32 %v239_v7, %v237_v9 }
  0x17   : > { %v242_v12 = vmax.f32 %v240_v10, 0.0  ;;  %v243_v13 = vmax.f32 %v241_v11, 0.0 }
  0x19   : > { %244 = vst [vmem:[%s217_s30] sm:$0xff] %v242_v12  ;;  %245 = vst [vmem:[%s217_s30 + $0x8] sm:$0xff] %v243_v13 }
  0x1a PF: > { %s14_s15 = sadd.s32 1, %s345_s15  }
  0x1b   : > { %p11_p4 = scmp.ge.s32.totalorder %s14_s15, 4  }
  0x1d   :  { %13 = sbr.rel (!%p11_p4) target bundleno = 1 (0x1), region = 69 }

// kernel: residual_blocks_forward.9
= control target key start
LH: loop header
LB: loop body
LE: loop exit
PB: predicated region body
PF: predicated region fallthrough
CT: control target
= control target key end

     0   :  { %s301_s12 = smov 0   ;;  %s318_s0 = inlined_call_operand.vmem [shape: f32[2,16,128], index: 0, kind: input, shape index: {}]   ;;  %s319_s1 = inlined_call_operand.vmem [shape: f32[1,1,128], index: 1, kind: input, shape index: {}]   ;;  %s320_s2 = inlined_call_operand.vmem [shape: f32[1,1,128], index: 2, kind: input, shape index: {}]   ;;  %s321_s3 = inlined_call_operand.vmem [shape: f32[2,16,128], index: 3, kind: output, shape index: {}]  }
   0x1 LB: > { %s250_s13 = sadd.s32 4294967295, %s279_s12   ;;  %p254_p0 = scmp.ge.s32.totalorder %s279_s12, 1  ;;  %s279_s12 = sphi %s301_s12, %s13_s12  }
   0x2   : > { %p137_p1 = scmp.lt.s32.totalorder %s279_s12, 3 }
   0x4   : > { %p138_p2 = pnand %p254_p0, %p137_p1 }
   0x5   : > { %p161_p3 = scmp.lt.s32.totalorder (!%p138_p2), %s250_s13, 1  ;;  %v259_v0 = vld [vmem:[%s319_s1] ss:$0 sm:$0xff] (!%p138_p2) }
   0x6   : > { %141 = sbr.rel (%p138_p2) target bundleno = 24 (0x18), region = 32  ;;  %v260_v3 = vld [vmem:[%s320_s2] ss:$0 sm:$0xff] (!%p138_p2) }
   0xd   : > { %s323_s13 = smov (!%p161_p3, %s250_s13), 1 }
   0xe   : > { %s263_s14 = sshll.u32 %s323_s13, 4 }
   0xf   : > { %s165_s19 = scalar_lea.vmem %s318_s0, %s263_s14  ;;  %s170_s24 = scalar_lea.vmem %s321_s3, %s263_s14 }
  0x10   : > { %v171_v1 = vld [vmem:[%s165_s19] sm:$0xff]  ;;  %v172_v2 = vld [vmem:[%s165_s19 + $0x8] sm:$0xff] }
  0x11   : > { %v180_v4 = vmul.f32 %v259_v0, %v171_v1  ;;  %v181_v5 = vmul.f32 %v259_v0, %v172_v2 }
  0x13   : > { %v189_v6 = vadd.f32 %v260_v3, %v180_v4  ;;  %v190_v7 = vadd.f32 %v260_v3, %v181_v5 }
  0x15   : > { %v191_v8 = vmax.f32 %v189_v6, 0.0  ;;  %v192_v9 = vmax.f32 %v190_v7, 0.0 }
  0x17   : > { %193 = vst [vmem:[%s170_s24] sm:$0xff] %v191_v8  ;;  %194 = vst [vmem:[%s170_s24 + $0x8] sm:$0xff] %v192_v9 }
  0x18 PF: > { %s13_s12 = sadd.s32 1, %s279_s12  }
  0x19   : > { %p10_p4 = scmp.ge.s32.totalorder %s13_s12, 4  }
  0x1b   :  { %12 = sbr.rel (!%p10_p4) target bundleno = 1 (0x1), region = 62 }

// kernel: residual_blocks_forward.8
= control target key start
LH: loop header
LB: loop body
LE: loop exit
PB: predicated region body
PF: predicated region fallthrough
CT: control target
= control target key end

     0   :  { %s2833_s12 = smov 0   ;;  %s4099_s0 = inlined_call_operand.vmem [shape: f32[2,16,16,8], index: 0, kind: input, shape index: {}]   ;;  %s4100_s1 = inlined_call_operand.vmem [shape: f32[72,8], index: 1, kind: input, shape index: {}]   ;;  %s4101_s2 = inlined_call_operand.vmem [shape: f32[512,8], index: 2, kind: output, shape index: {0}]   ;;  %s4102_s3 = inlined_call_operand.vmem [shape: f32[2,2,8], index: 3, kind: output, shape index: {1}]  }
   0x1 LB: > { %s2839_s13 = sadd.s32 4294967295, %s2802_s12   ;;  %p2605_p0 = scmp.ge.s32.totalorder %s2802_s12, 1  ;;  %s2802_s12 = sphi %s2833_s12, %s14_s12  }
   0x2   : > { %p140_p1 = scmp.lt.s32.totalorder %s2802_s12, 3 }
   0x4   : > { %p141_p2 = pnand %p2605_p0, %p140_p1 }
   0x5   : > { %vm183_vm0 = vcmask (!%p141_p2), 64512   ;;  %vm186_vm1 = vcmask (!%p141_p2), 58368   ;;  %p168_p3 = scmp.lt.s32.totalorder (!%p141_p2), %s2839_s13, 1  ;;  %v2804_v0 = vmov (!%p141_p2), 0.0   ;;  %s2805_s19 = smov (!%p141_p2), 8   ;;  %vm528_vm2 = vcmask (!%p141_p2), 130112  }
   0x6   : > { %144 = sbr.rel (%p141_p2) target bundleno = 990 (0x3de), region = 28  ;;  %184 = vst.msk [vmem:[#allocation2] sm:$0xff] (!%p141_p2), %vm183_vm0, %v2804_v0  ;;  %185 = vst.msk [vmem:[#allocation2 + $0x8] sm:$0xff] (!%p141_p2), %vm183_vm0, %v2804_v0  ;;  %s2806_s20 = smov (!%p141_p2), 16   ;;  %vm721_vm3 = vcmask (!%p141_p2), 195712   ;;  %vm914_vm4 = vcmask (!%p141_p2), 261312  }
   0x7   : > { %188 = vst.msk [vmem:[#allocation2 + $0x18] sm:$0xff] (!%p141_p2), %vm183_vm0, %v2804_v0  ;;  %189 = vst.msk [vmem:[#allocation2 + $0x20] sm:$0xff] (!%p141_p2), %vm183_vm0, %v2804_v0  ;;  %s2807_s21 = smov (!%p141_p2), 24   ;;  %s2808_s22 = smov (!%p141_p2), 32   ;;  %vm1107_vm5 = vcmask (!%p141_p2), 326912   ;;  %vm1300_vm6 = vcmask (!%p141_p2), 392512  }
   0x8   : > { %191 = vst.msk [vmem:[#allocation2 + $0x30] sm:$0xff] (!%p141_p2), %vm183_vm0, %v2804_v0  ;;  %192 = vst.msk [vmem:[#allocation2 + $0x38] sm:$0xff] (!%p141_p2), %vm183_vm0, %v2804_v0  ;;  %s2809_s23 = smov (!%p141_p2), 40   ;;  %s2810_s28 = smov (!%p141_p2), 48   ;;  %vm1494_vm7 = vcmask (!%p141_p2), 458112   ;;  %vm1687_vm8 = vcmask (!%p141_p2), 523712  }
   0x9   : > { %194 = vst.msk [vmem:[#allocation2 + $0x48] sm:$0xff] (!%p141_p2), %vm183_vm0, %v2804_v0  ;;  %195 = vst.msk [vmem:[#allocation2 + $0x50] sm:$0xff] (!%p141_p2), %vm183_vm0, %v2804_v0  ;;  %s2811_s10 = smov (!%p141_p2), 56   ;;  %s2812_s25 = smov (!%p141_p2), 64   ;;  %vm1880_vm9 = vcmask (!%p141_p2), 589312   ;;  %vm1954_vm10 = vcmask (!%p141_p2), 588800  }
   0xa   : > { %197 = vst.msk [vmem:[#allocation2 + $0x60] sm:$0xff] (!%p141_p2), %vm183_vm0, %v2804_v0  ;;  %198 = vst.msk [vmem:[#allocation2 + $0x68] sm:$0xff] (!%p141_p2), %vm183_vm0, %v2804_v0  ;;  %vm2511_vm11 = vcmask (!%p141_p2), 57344  }
   0xb   : > { %200 = vst.msk [vmem:[#allocation2 + $0x78] sm:$0xff] (!%p141_p2), %vm183_vm0, %v2804_v0  ;;  %201 = vst.msk [vmem:[#allocation2 + $0x80] sm:$0xff] (!%p141_p2), %vm183_vm0, %v2804_v0 }
   0xc   : > { %203 = vst.msk [vmem:[#allocation2 + $0x90] sm:$0xff] (!%p141_p2), %vm183_vm0, %v2804_v0  ;;  %204 = vst.msk [vmem:[#allocation2 + $0x98] sm:$0xff] (!%p141_p2), %vm183_vm0, %v2804_v0 }
   0xd   : > { %206 = vst.msk [vmem:[#allocation2 + $0xa8] sm:$0xff] %vm183_vm0, %v2804_v0  ;;  %207 = vst.msk [vmem:[#allocation2 + $0xb0] sm:$0xff] %vm183_vm0, %v2804_v0  ;;  %s2901_s14 = scalar_select %p168_p3, %s2839_s13, 1  ;;  %v368_v7 = vld [vmem:[#allocation2 + $0x1] sm:$0xff] }
   0xe   : > { %209 = vst.msk [vmem:[#allocation2 + $0xc0] sm:$0xff] %vm183_vm0, %v2804_v0  ;;  %210 = vst.msk [vmem:[#allocation2 + $0xc8] sm:$0xff] %vm183_vm0, %v2804_v0  ;;  %432 = vrot.lane.b32.xlu0 %v368_v7, %s2805_s19  ;;  %v304_v46 = vld [vmem:[#allocation2] sm:$0xff]  ;;  %v305_v49 = vld [vmem:[#allocation2 + $0x8] sm:$0xff] }
   0xf   : > { %212 = vst.msk [vmem:[#allocation2 + $0xd8] sm:$0xff] %vm183_vm0, %v2804_v0  ;;  %213 = vst.msk [vmem:[#allocation2 + $0xe0] sm:$0xff] %vm183_vm0, %v2804_v0  ;;  %s2645_s15 = sshll.u32 %s2901_s14, 8 }
  0x10   : > { %215 = vst.msk [vmem:[#allocation2 + $0xf0] sm:$0xff] %vm183_vm0, %v2804_v0  ;;  %216 = vst.msk [vmem:[#allocation2 + $0xf8] sm:$0xff] %vm183_vm0, %v2804_v0  ;;  %s2907_s18 = scalar_lea.vmem %s4099_s0, %s2645_s15 }
  0x11   : > { %218 = vst.msk [vmem:[#allocation2 + $0x108] sm:$0xff] %vm183_vm0, %v2804_v0  ;;  %219 = vst.msk [vmem:[#allocation2 + $0x110] sm:$0xff] %vm183_vm0, %v2804_v0  ;;  %v239_v1 = vld [vmem:[%s2907_s18] sm:$0xff]  ;;  %v241_v2 = vld [vmem:[%s2907_s18 + $0x10] sm:$0xff] }
  0x12   : > { %221 = vst.msk [vmem:[#allocation2 + $0x120] sm:$0xff] %vm183_vm0, %v2804_v0  ;;  %222 = vst.msk [vmem:[#allocation2 + $0x128] sm:$0xff] %vm183_vm0, %v2804_v0  ;;  %v240_v3 = vld [vmem:[%s2907_s18 + $0x8] sm:$0xff]  ;;  %v243_v4 = vld [vmem:[%s2907_s18 + $0x20] sm:$0xff] }
  0x13   : > { %224 = vst.msk [vmem:[#allocation2 + $0x138] sm:$0xff] %vm183_vm0, %v2804_v0  ;;  %225 = vst.msk [vmem:[#allocation2 + $0x140] sm:$0xff] %vm183_vm0, %v2804_v0  ;;  %v242_v5 = vld [vmem:[%s2907_s18 + $0x18] sm:$0xff]  ;;  %v245_v6 = vld [vmem:[%s2907_s18 + $0x30] sm:$0xff] }
  0x14   : > { %227 = vst.msk [vmem:[#allocation2 + $0x150] sm:$0xff] %vm183_vm0, %v2804_v0  ;;  %228 = vst.msk [vmem:[#allocation2 + $0x158] sm:$0xff] %vm183_vm0, %v2804_v0  ;;  %v244_v9 = vld [vmem:[%s2907_s18 + $0x28] sm:$0xff]  ;;  %v247_v10 = vld [vmem:[%s2907_s18 + $0x40] sm:$0xff] }
  0x15   : > { %230 = vst.msk [vmem:[#allocation2 + $0x168] sm:$0xff] %vm183_vm0, %v2804_v0  ;;  %231 = vst.msk [vmem:[#allocation2 + $0x170] sm:$0xff] %vm183_vm0, %v2804_v0  ;;  %v246_v11 = vld [vmem:[%s2907_s18 + $0x38] sm:$0xff]  ;;  %v249_v12 = vld [vmem:[%s2907_s18 + $0x50] sm:$0xff] }
  0x16   : > { %233 = vst.msk [vmem:[#allocation2 + $0x180] sm:$0xff] %vm183_vm0, %v2804_v0  ;;  %234 = vst.msk [vmem:[#allocation2 + $0x188] sm:$0xff] %vm183_vm0, %v2804_v0  ;;  %v248_v13 = vld [vmem:[%s2907_s18 + $0x48] sm:$0xff]  ;;  %v251_v14 = vld [vmem:[%s2907_s18 + $0x60] sm:$0xff] }
  0x17   : > { %236 = vst.msk [vmem:[#allocation2 + $0x198] sm:$0xff] %vm183_vm0, %v2804_v0  ;;  %237 = vst.msk [vmem:[#allocation2 + $0x1a0] sm:$0xff] %vm183_vm0, %v2804_v0  ;;  %v250_v15 = vld [vmem:[%s2907_s18 + $0x58] sm:$0xff]  ;;  %v253_v16 = vld [vmem:[%s2907_s18 + $0x70] sm:$0xff] }
  0x18   : > { %187 = vst.msk [vmem:[#allocation2 + $0x10] sm:$0x3] %vm186_vm1, %v2804_v0  ;;  %190 = vst.msk [vmem:[#allocation2 + $0x28] sm:$0x3] %vm186_vm1, %v2804_v0  ;;  %v252_v17 = vld [vmem:[%s2907_s18 + $0x68] sm:$0xff]  ;;  %v255_v18 = vld [vmem:[%s2907_s18 + $0x80] sm:$0xff] }
  0x19   : > { %193 = vst.msk [vmem:[#allocation2 + $0x40] sm:$0x3] %vm186_vm1, %v2804_v0  ;;  %196 = vst.msk [vmem:[#allocation2 + $0x58] sm:$0x3] %vm186_vm1, %v2804_v0  ;;  %v254_v19 = vld [vmem:[%s2907_s18 + $0x78] sm:$0xff]  ;;  %v257_v20 = vld [vmem:[%s2907_s18 + $0x90] sm:$0xff] }
  0x1a   : > { %199 = vst.msk [vmem:[#allocation2 + $0x70] sm:$0x3] %vm186_vm1, %v2804_v0  ;;  %202 = vst.msk [vmem:[#allocation2 + $0x88] sm:$0x3] %vm186_vm1, %v2804_v0  ;;  %v256_v21 = vld [vmem:[%s2907_s18 + $0x88] sm:$0xff]  ;;  %v259_v22 = vld [vmem:[%s2907_s18 + $0xa0] sm:$0xff] }
  0x1b   : > { %205 = vst.msk [vmem:[#allocation2 + $0xa0] sm:$0x3] %vm186_vm1, %v2804_v0  ;;  %208 = vst.msk [vmem:[#allocation2 + $0xb8] sm:$0x3] %vm186_vm1, %v2804_v0  ;;  %v258_v23 = vld [vmem:[%s2907_s18 + $0x98] sm:$0xff]  ;;  %v261_v24 = vld [vmem:[%s2907_s18 + $0xb0] sm:$0xff] }
  0x1c   : > { %211 = vst.msk [vmem:[#allocation2 + $0xd0] sm:$0x3] %vm186_vm1, %v2804_v0  ;;  %214 = vst.msk [vmem:[#allocation2 + $0xe8] sm:$0x3] %vm186_vm1, %v2804_v0  ;;  %v260_v28 = vld [vmem:[%s2907_s18 + $0xa8] sm:$0xff]  ;;  %v263_v29 = vld [vmem:[%s2907_s18 + $0xc0] sm:$0xff] }
  0x1d   : > { %217 = vst.msk [vmem:[#allocation2 + $0x100] sm:$0x3] %vm186_vm1, %v2804_v0  ;;  %220 = vst.msk [vmem:[#allocation2 + $0x118] sm:$0x3] %vm186_vm1, %v2804_v0  ;;  %v262_v33 = vld [vmem:[%s2907_s18 + $0xb8] sm:$0xff]  ;;  %v265_v34 = vld [vmem:[%s2907_s18 + $0xd0] sm:$0xff] }
  0x1e   : > { %223 = vst.msk [vmem:[#allocation2 + $0x130] sm:$0x3] %vm186_vm1, %v2804_v0  ;;  %226 = vst.msk [vmem:[#allocation2 + $0x148] sm:$0x3] %vm186_vm1, %v2804_v0  ;;  %v264_v35 = vld [vmem:[%s2907_s18 + $0xc8] sm:$0xff]  ;;  %v267_v36 = vld [vmem:[%s2907_s18 + $0xe0] sm:$0xff] }
  0x1f   : > { %229 = vst.msk [vmem:[#allocation2 + $0x160] sm:$0x3] %vm186_vm1, %v2804_v0  ;;  %232 = vst.msk [vmem:[#allocation2 + $0x178] sm:$0x3] %vm186_vm1, %v2804_v0  ;;  %v369_v8 = vld [vmem:[#allocation2 + $0x9] sm:$0xff]  ;;  %v266_v37 = vld [vmem:[%s2907_s18 + $0xd8] sm:$0xff] }
  0x20   : > { %235 = vst.msk [vmem:[#allocation2 + $0x190] sm:$0x3] %vm186_vm1, %v2804_v0  ;;  %238 = vst.msk [vmem:[#allocation2 + $0x1a8] sm:$0x3] %vm186_vm1, %v2804_v0  ;;  %434 = vrot.lane.b32.xlu0 %v369_v8, %s2805_s19  ;;  %v268_v39 = vld [vmem:[%s2907_s18 + $0xe8] sm:$0xff] }
  0x21   : > { %272 = vst.msk [vmem:[#allocation2 + $0x19] sm:$0xff] %vm183_vm0, %v239_v1  ;;  %274 = vst.msk [vmem:[#allocation2 + $0x31] sm:$0xff] %vm183_vm0, %v241_v2 }
  0x22   : > { %273 = vst.msk [vmem:[#allocation2 + $0x21] sm:$0xff] %vm183_vm0, %v240_v3  ;;  %276 = vst.msk [vmem:[#allocation2 + $0x49] sm:$0xff] %vm183_vm0, %v243_v4 }
  0x23   : > { %275 = vst.msk [vmem:[#allocation2 + $0x39] sm:$0xff] %vm183_vm0, %v242_v5  ;;  %278 = vst.msk [vmem:[#allocation2 + $0x61] sm:$0xff] %vm183_vm0, %v245_v6 }
  0x24   : > { %277 = vst.msk [vmem:[#allocation2 + $0x51] sm:$0xff] %vm183_vm0, %v244_v9  ;;  %280 = vst.msk [vmem:[#allocation2 + $0x79] sm:$0xff] %vm183_vm0, %v247_v10 }
  0x25   : > { %279 = vst.msk [vmem:[#allocation2 + $0x69] sm:$0xff] %vm183_vm0, %v246_v11  ;;  %282 = vst.msk [vmem:[#allocation2 + $0x91] sm:$0xff] %vm183_vm0, %v249_v12 }
  0x26   : > { %281 = vst.msk [vmem:[#allocation2 + $0x81] sm:$0xff] %vm183_vm0, %v248_v13  ;;  %284 = vst.msk [vmem:[#allocation2 + $0xa9] sm:$0xff] %vm183_vm0, %v251_v14 }
  0x27   : > { %283 = vst.msk [vmem:[#allocation2 + $0x99] sm:$0xff] %vm183_vm0, %v250_v15  ;;  %286 = vst.msk [vmem:[#allocation2 + $0xc1] sm:$0xff] %vm183_vm0, %v253_v16 }
  0x28   : > { %285 = vst.msk [vmem:[#allocation2 + $0xb1] sm:$0xff] %vm183_vm0, %v252_v17  ;;  %288 = vst.msk [vmem:[#allocation2 + $0xd9] sm:$0xff] %vm183_vm0, %v255_v18  ;;  %v2952_v25 = vld [vmem:[#allocation2 + $0x19] sm:$0xff]  ;;  %v2954_v26 = vld [vmem:[#allocation2 + $0x31] sm:$0xff] }
  0x29   : > { %287 = vst.msk [vmem:[#allocation2 + $0xc9] sm:$0xff] %vm183_vm0, %v254_v19  ;;  %290 = vst.msk [vmem:[#allocation2 + $0xf1] sm:$0xff] %vm183_vm0, %v257_v20  ;;  %436 = vrot.lane.b32.xlu1 %v2952_v25, %s2805_s19  ;;  %v2961_v27 = vld [vmem:[#allocation2 + $0x21] sm:$0xff]  ;;  %440 = vrot.lane.b32.xlu0 %v2954_v26, %s2805_s19  ;;  %v2969_v30 = vld [vmem:[#allocation2 + $0x49] sm:$0xff] }
  0x2a   : > { %289 = vst.msk [vmem:[#allocation2 + $0xe1] sm:$0xff] %vm183_vm0, %v256_v21  ;;  %292 = vst.msk [vmem:[#allocation2 + $0x109] sm:$0xff] %vm183_vm0, %v259_v22  ;;  %v2973_v31 = vld [vmem:[#allocation2 + $0x39] sm:$0xff]  ;;  %v2977_v32 = vld [vmem:[#allocation2 + $0x61] sm:$0xff] }
  0x2b   : > { %291 = vst.msk [vmem:[#allocation2 + $0xf9] sm:$0xff] %vm183_vm0, %v258_v23  ;;  %294 = vst.msk [vmem:[#allocation2 + $0x121] sm:$0xff] %vm183_vm0, %v261_v24  ;;  %v2989_v38 = vld [vmem:[#allocation2 + $0x51] sm:$0xff]  ;;  %v2997_v40 = vld [vmem:[#allocation2 + $0x20] sm:$0xff] }
  0x2c   : > { %293 = vst.msk [vmem:[#allocation2 + $0x111] sm:$0xff] %vm183_vm0, %v260_v28  ;;  %296 = vst.msk [vmem:[#allocation2 + $0x139] sm:$0xff] %vm183_vm0, %v263_v29  ;;  %v2999_v41 = vld [vmem:[#allocation2 + $0x79] sm:$0xff]  ;;  %v3003_v43 = vld [vmem:[#allocation2 + $0x30] sm:$0xff] }
  0x2d   : > { %438 = vrot.lane.b32.xlu1 %v2961_v27, %s2805_s19  ;;  %444 = vrot.lane.b32.xlu0 %v2969_v30, %s2805_s19  ;;  %295 = vst.msk [vmem:[#allocation2 + $0x129] sm:$0xff] %vm183_vm0, %v262_v33  ;;  %298 = vst.msk [vmem:[#allocation2 + $0x151] sm:$0xff] %vm183_vm0, %v265_v34  ;;  %v3001_v42 = vld [vmem:[#allocation2 + $0x18] sm:$0xff]  ;;  %v3009_v44 = vld [vmem:[#allocation2 + $0x69] sm:$0xff] }
  0x2e   : > { %297 = vst.msk [vmem:[#allocation2 + $0x141] sm:$0xff] %vm183_vm0, %v264_v35  ;;  %300 = vst.msk [vmem:[#allocation2 + $0x169] sm:$0xff] %vm183_vm0, %v267_v36  ;;  %v3011_v45 = vld [vmem:[#allocation2 + $0x38] sm:$0xff]  ;;  %v3017_v47 = vld [vmem:[#allocation2 + $0x48] sm:$0xff] }
  0x2f   : > { %299 = vst.msk [vmem:[#allocation2 + $0x159] sm:$0xff] %vm183_vm0, %v266_v37  ;;  %301 = vst.msk [vmem:[#allocation2 + $0x171] sm:$0xff] %vm183_vm0, %v268_v39  ;;  %v3019_v48 = vld [vmem:[#allocation2 + $0x50] sm:$0xff]  ;;  %v3028_v50 = vld [vmem:[#allocation2 + $0x60] sm:$0xff] }
  0x30   : > { %339 = vst.msk [vmem:[#allocation3 + $0x18] sm:$0xff] %vm183_vm0, %v2997_v40  ;;  %338 = vst.msk [vmem:[#allocation3 + $0x10] sm:$0xff] %vm183_vm0, %v3001_v42  ;;  %v3032_v51 = vld [vmem:[#allocation2 + $0x91] sm:$0xff]  ;;  %v3039_v52 = vld [vmem:[#allocation2 + $0x81] sm:$0xff] }
  0x31   : > { %442 = vrot.lane.b32.xlu1 %v2973_v31, %s2805_s19  ;;  %448 = vrot.lane.b32.xlu0 %v2977_v32, %s2805_s19  ;;  %340 = vst.msk [vmem:[#allocation3 + $0x20] sm:$0xff] %vm183_vm0, %v3003_v43  ;;  %341 = vst.msk [vmem:[#allocation3 + $0x28] sm:$0xff] %vm183_vm0, %v3011_v45  ;;  %v3041_v53 = vld [vmem:[#allocation2 + $0xa9] sm:$0xff]  ;;  %v3043_v54 = vld [vmem:[#allocation2 + $0x78] sm:$0xff] }
  0x32   : > { %336 = vst.msk [vmem:[#allocation3] sm:$0xff] %vm183_vm0, %v304_v46  ;;  %342 = vst.msk [vmem:[#allocation3 + $0x30] sm:$0xff] %vm183_vm0, %v3017_v47  ;;  %v3045_v55 = vld [vmem:[#allocation2 + $0x68] sm:$0xff]  ;;  %v3053_v56 = vld [vmem:[#allocation2 + $0x90] sm:$0xff] }
  0x33   : > { %343 = vst.msk [vmem:[#allocation3 + $0x38] sm:$0xff] %vm183_vm0, %v3019_v48  ;;  %337 = vst.msk [vmem:[#allocation3 + $0x8] sm:$0xff] %vm183_vm0, %v305_v49  ;;  %v3055_v57 = vld [vmem:[#allocation2 + $0x80] sm:$0xff]  ;;  %v3057_v58 = vld [vmem:[#allocation2 + $0xa8] sm:$0xff] }
  0x34   : > { %344 = vst.msk [vmem:[#allocation3 + $0x40] sm:$0xff] %vm183_vm0, %v3028_v50  ;;  %346 = vst.msk [vmem:[#allocation3 + $0x50] sm:$0xff] %vm183_vm0, %v3043_v54  ;;  %v3065_v59 = vld [vmem:[#allocation2 + $0x98] sm:$0xff]  ;;  %v3067_v60 = vld [vmem:[#allocation2 + $0xc0] sm:$0xff] }
  0x35   : > { %446 = vrot.lane.b32.xlu1 %v2989_v38, %s2805_s19  ;;  %452 = vrot.lane.b32.xlu0 %v2999_v41, %s2805_s19  ;;  %345 = vst.msk [vmem:[#allocation3 + $0x48] sm:$0xff] %vm183_vm0, %v3045_v55  ;;  %348 = vst.msk [vmem:[#allocation3 + $0x60] sm:$0xff] %vm183_vm0, %v3053_v56  ;;  %v3069_v61 = vld [vmem:[#allocation2 + $0xb0] sm:$0xff]  ;;  %v3079_v62 = vld [vmem:[#allocation2 + $0xd8] sm:$0xff] }
  0x36   : > { %347 = vst.msk [vmem:[#allocation3 + $0x58] sm:$0xff] %vm183_vm0, %v3055_v57  ;;  %350 = vst.msk [vmem:[#allocation3 + $0x70] sm:$0xff] %vm183_vm0, %v3057_v58  ;;  %v3081_v63 = vld [vmem:[#allocation2 + $0xc8] sm:$0xff]  ;;  %v3083_v0 = vld [vmem:[#allocation2 + $0xf0] sm:$0xff] }
  0x37   : > { %349 = vst.msk [vmem:[#allocation3 + $0x68] sm:$0xff] %vm183_vm0, %v3065_v59  ;;  %352 = vst.msk [vmem:[#allocation3 + $0x80] sm:$0xff] %vm183_vm0, %v3067_v60  ;;  %v3085_v1 = vld [vmem:[#allocation2 + $0x99] sm:$0xff]  ;;  %v384_v3 = vld [vmem:[#allocation2 + $0xc1] sm:$0xff] }
  0x38   : > { %351 = vst.msk [vmem:[#allocation3 + $0x78] sm:$0xff] %vm183_vm0, %v3069_v61  ;;  %354 = vst.msk [vmem:[#allocation3 + $0x90] sm:$0xff] %vm183_vm0, %v3079_v62  ;;  %v3093_v2 = vld [vmem:[#allocation2 + $0xe0] sm:$0xff]  ;;  %v3099_v4 = vld [vmem:[#allocation2 + $0x108] sm:$0xff] }
  0x39   : > { %450 = vrot.lane.b32.xlu1 %v3009_v44, %s2805_s19  ;;  %456 = vrot.lane.b32.xlu0 %v3032_v51, %s2805_s19  ;;  %353 = vst.msk [vmem:[#allocation3 + $0x88] sm:$0xff] %vm183_vm0, %v3081_v63  ;;  %356 = vst.msk [vmem:[#allocation3 + $0xa0] sm:$0xff] %vm183_vm0, %v3083_v0  ;;  %v3105_v5 = vld [vmem:[#allocation2 + $0xb1] sm:$0xff]  ;;  %v386_v7 = vld [vmem:[#allocation2 + $0xd9] sm:$0xff] }
  0x3a   : > { %355 = vst.msk [vmem:[#allocation3 + $0x98] sm:$0xff] %vm183_vm0, %v3093_v2  ;;  %358 = vst.msk [vmem:[#allocation3 + $0xb0] sm:$0xff] %vm183_vm0, %v3099_v4  ;;  %v3107_v6 = vld [vmem:[#allocation2 + $0xf8] sm:$0xff]  ;;  %v3112_v8 = vld [vmem:[#allocation2 + $0x120] sm:$0xff] }
  0x3b   : > { %357 = vst.msk [vmem:[#allocation3 + $0xa8] sm:$0xff] %vm183_vm0, %v3107_v6  ;;  %360 = vst.msk [vmem:[#allocation3 + $0xc0] sm:$0xff] %vm183_vm0, %v3112_v8  ;;  %v3118_v9 = vld [vmem:[#allocation2 + $0xc9] sm:$0xff]  ;;  %v388_v11 = vld [vmem:[#allocation2 + $0xf1] sm:$0xff] }
  0x3c   : > { %v3120_v10 = vld [vmem:[#allocation2 + $0x110] sm:$0xff]  ;;  %v330_v12 = vld [vmem:[#allocation2 + $0x138] sm:$0xff]  ;;  %v387_v13 = vld [vmem:[#allocation2 + $0xe1] sm:$0xff] }
  0x3d   : > { %454 = vrot.lane.b32.xlu1 %v3039_v52, %s2805_s19  ;;  %460 = vrot.lane.b32.xlu0 %v3041_v53, %s2805_s19  ;;  %359 = vst.msk [vmem:[#allocation3 + $0xb8] sm:$0xff] %vm183_vm0, %v3120_v10  ;;  %362 = vst.msk [vmem:[#allocation3 + $0xd0] sm:$0xff] %vm183_vm0, %v330_v12  ;;  %v3128_v14 = vld [vmem:[#allocation2 + $0x128] sm:$0xff]  ;;  %v332_v16 = vld [vmem:[#allocation2 + $0x150] sm:$0xff] }
  0x3e   : > { %361 = vst.msk [vmem:[#allocation3 + $0xc8] sm:$0xff] %vm183_vm0, %v3128_v14  ;;  %v390_v15 = vld [vmem:[#allocation2 + $0x109] sm:$0xff]  ;;  %364 = vst.msk [vmem:[#allocation3 + $0xe0] sm:$0xff] %vm183_vm0, %v332_v16  ;;  %v389_v17 = vld [vmem:[#allocation2 + $0xf9] sm:$0xff] }
  0x3f   : > { %v331_v18 = vld [vmem:[#allocation2 + $0x140] sm:$0xff]  ;;  %v334_v20 = vld [vmem:[#allocation2 + $0x168] sm:$0xff]  ;;  %v391_v21 = vld [vmem:[#allocation2 + $0x111] sm:$0xff] }
  0x40   : > { %363 = vst.msk [vmem:[#allocation3 + $0xd8] sm:$0xff] %vm183_vm0, %v331_v18  ;;  %v392_v19 = vld [vmem:[#allocation2 + $0x121] sm:$0xff]  ;;  %366 = vst.msk [vmem:[#allocation3 + $0xf0] sm:$0xff] %vm183_vm0, %v334_v20  ;;  %v333_v22 = vld [vmem:[#allocation2 + $0x158] sm:$0xff] }
  0x41   : > { %458 = vrot.lane.b32.xlu1 %v3085_v1, %s2805_s19  ;;  %464 = vrot.lane.b32.xlu0 %v384_v3, %s2805_s19  ;;  %365 = vst.msk [vmem:[#allocation3 + $0xe8] sm:$0xff] %vm183_vm0, %v333_v22  ;;  %v394_v23 = vld [vmem:[#allocation2 + $0x139] sm:$0xff]  ;;  %v393_v24 = vld [vmem:[#allocation2 + $0x129] sm:$0xff]  ;;  %v396_v29 = vld [vmem:[#allocation2 + $0x151] sm:$0xff] }
  0x42   : > { %v335_v28 = vld [vmem:[#allocation2 + $0x170] sm:$0xff]  ;;  %v395_v33 = vld [vmem:[#allocation2 + $0x141] sm:$0xff]  ;;  %v397_v35 = vld [vmem:[#allocation2 + $0x159] sm:$0xff] }
  0x43   : > { %367 = vst.msk [vmem:[#allocation3 + $0xf8] sm:$0xff] %vm183_vm0, %v335_v28  ;;  %v398_v34 = vld [vmem:[#allocation2 + $0x169] sm:$0xff]  ;;  %v399_v37 = vld [vmem:[#allocation2 + $0x171] sm:$0xff]  ;;  %v563_v39 = vld [vmem:[#allocation2 + $0x1a] sm:$0xff] }
  0x44   : > { %v561_v36 = vld [vmem:[#allocation2 + $0x2] sm:$0xff]  ;;  %v562_v46 = vld [vmem:[#allocation2 + $0xa] sm:$0xff]  ;;  %v1721_v18 = vld [vmem:[#allocation2 + $0x3a] sm:$0xff] }
  0x45   : > { %462 = vrot.lane.b32.xlu1 %v3105_v5, %s2805_s19  ;;  %468 = vrot.lane.b32.xlu0 %v386_v7, %s2805_s19  ;;  %v1141_v49 = vld [vmem:[#allocation2 + $0x22] sm:$0xff] }
  0x46   : > { %v1950_v12 = vld [vmem:[%s4100_s1 + $0x28] sm:$0xff] }
  0x49   : > { %466 = vrot.lane.b32.xlu1 %v3118_v9, %s2805_s19  ;;  %472 = vrot.lane.b32.xlu0 %v388_v11, %s2805_s19  ;;  %v1949_v11 = vld [vmem:[%s4100_s1 + $0x20] sm:$0xff] }
  0x4d   : > { %470 = vrot.lane.b32.xlu1 %v387_v13, %s2805_s19  ;;  %476 = vrot.lane.b32.xlu0 %v390_v15, %s2805_s19  ;;  %v2761_v13 = vpack.c.bf16 %v1950_v12, %v1949_v11  ;;  %v1952_v15 = vld [vmem:[%s4100_s1 + $0x38] sm:$0xff] }
  0x51   : > { %474 = vrot.lane.b32.xlu1 %v389_v17, %s2805_s19  ;;  %480 = vrot.lane.b32.xlu0 %v392_v19, %s2805_s19  ;;  %v1953_v17 = vld [vmem:[%s4100_s1 + $0x40] sm:$0xff] }
  0x55   : > { %478 = vrot.lane.b32.xlu1 %v391_v21, %s2805_s19  ;;  %484 = vrot.lane.b32.xlu0 %v394_v23, %s2805_s19  ;;  %v1723_v23 = vld [vmem:[#allocation2 + $0x52] sm:$0xff] }
  0x59   : > { %482 = vrot.lane.b32.xlu1 %v393_v24, %s2805_s19  ;;  %488 = vrot.lane.b32.xlu0 %v396_v29, %s2805_s19 }
  0x5d   : > { %486 = vrot.lane.b32.xlu1 %v395_v33, %s2805_s19  ;;  %492 = vrot.lane.b32.xlu0 %v398_v34, %s2805_s19 }
  0x61   : > { %490 = vrot.lane.b32.xlu1 %v397_v35, %s2805_s19  ;;  %625 = vrot.lane.b32.xlu0 %v561_v36, %s2806_s20 }
  0x65   : > { %494 = vrot.lane.b32.xlu1 %v399_v37, %s2805_s19  ;;  %629 = vrot.lane.b32.xlu0 %v563_v39, %s2806_s20 }
  0x69   : > { %627 = vrot.lane.b32.xlu1 %v562_v46, %s2806_s20  ;;  %820 = vrot.lane.b32.xlu0 %v2997_v40, %s2807_s21  ;;  %v1945_v40 = vld [vmem:[%s4100_s1] sm:$0xff] }
  0x6d   : > { %818 = vrot.lane.b32.xlu1 %v3001_v42, %s2807_s21  ;;  %1013 = vrot.lane.b32.xlu0 %v2961_v27, %s2808_s22  ;;  %v1946_v42 = vld [vmem:[%s4100_s1 + $0x8] sm:$0xff]  ;;  %v1948_v27 = vld [vmem:[%s4100_s1 + $0x18] sm:$0xff] }
  0x6e   : > { %v2753_v3 = vpack.c.bf16 %v1946_v42, %v1945_v40  ;;  %v1725_v40 = vld [vmem:[#allocation2 + $0x6a] sm:$0xff] }
  0x70   : > { %2754 = vmatprep.subr.bf16.mxu0 %v2753_v3  ;;  %2769 = vmatprep.subr.bf16.mxu1 %v2753_v3 }
  0x71   : > { %1011 = vrot.lane.b32.xlu1 %v2952_v25, %s2808_s22  ;;  %1206 = vrot.lane.b32.xlu0 %v1141_v49, %s2809_s23  ;;  %v1947_v25 = vld [vmem:[%s4100_s1 + $0x10] sm:$0xff] }
  0x72   : > { %2756 = vmatpush3.bf16.msra.mxu0 %v2753_v3  ;;  %v2757_v7 = vpack.c.bf16 %v1948_v27, %v1947_v25  ;;  %2774 = vmatpush3.bf16.msra.mxu1 %v2753_v3 }
  0x74   : > { %2758 = vmatprep.subr.bf16.mxu0 %v2757_v7  ;;  %2770 = vmatprep.subr.bf16.mxu1 %v2757_v7 }
  0x75   : > { %1204 = vrot.lane.b32.xlu1 %v563_v39, %s2809_s23  ;;  %631 = vrot.lane.b32.xlu0 %v1141_v49, %s2806_s20 }
  0x76   : > { %2760 = vmatpush3.bf16.msra.mxu0 %v2757_v7  ;;  %2775 = vmatpush3.bf16.msra.mxu1 %v2757_v7 }
  0x77   : > { %2762 = vmatprep.subr.bf16.mxu0 %v2761_v13  ;;  %2771 = vmatprep.subr.bf16.mxu1 %v2761_v13 }
  0x79   : > { %1398 = vrot.lane.b32.xlu1 %v3003_v43, %s2810_s28  ;;  %1400 = vrot.lane.b32.xlu0 %v3011_v45, %s2810_s28 }
  0x7a   : > { %2764 = vmatpush3.bf16.msra.mxu0 %v2761_v13  ;;  %2776 = vmatpush3.bf16.msra.mxu1 %v2761_v13 }
  0x7d   : > { %822 = vrot.lane.b32.xlu1 %v3003_v43, %s2807_s21  ;;  %824 = vrot.lane.b32.xlu0 %v3011_v45, %s2807_s21  ;;  %v1951_v43 = vld [vmem:[%s4100_s1 + $0x30] sm:$0xff] }
  0x7e   : > { %v2765_v16 = vpack.c.bf16 %v1952_v15, %v1951_v43  ;;  %v1720_v45 = vld [vmem:[#allocation2 + $0x32] sm:$0xff] }
  0x80   : > { %2766 = vmatprep.subr.bf16.mxu0 %v2765_v16  ;;  %2772 = vmatprep.subr.bf16.mxu1 %v2765_v16 }
  0x81   : > { %1591 = vrot.lane.b32.xlu1 %v2954_v26, %s2811_s10  ;;  %1593 = vrot.lane.b32.xlu0 %v2973_v31, %s2811_s10 }
  0x82   : > { %2768 = vmatpush3.bf16.msra.mxu0 %v2765_v16  ;;  %2777 = vmatpush3.bf16.msra.mxu1 %v2765_v16 }
  0x83   : > { %2703 = vmatprep.subr.mxu0 %v1953_v17  ;;  %2773 = vmatprep.subr.mxu1 %v1953_v17 }
  0x85   : > { %1015 = vrot.lane.b32.xlu1 %v2954_v26, %s2808_s22  ;;  %1017 = vrot.lane.b32.xlu0 %v2973_v31, %s2808_s22  ;;  %v433_v26 = vpop.permute.xlu0 %432 }
  0x86   : > { %2704 = vmatpush3.msra.mxu0 %v1953_v17  ;;  %2778 = vmatpush3.msra.mxu1 %v1953_v17  ;;  %529 = vst.msk [vmem:[#allocation3] sm:$0xff] %vm528_vm2, %v433_v26 }
  0x89   : > { %1784 = vrot.lane.b32.xlu1 %v1720_v45, %s2812_s25  ;;  %1786 = vrot.lane.b32.xlu0 %v1721_v18, %s2812_s25 }
  0x8d   : > { %1208 = vrot.lane.b32.xlu1 %v1720_v45, %s2809_s23  ;;  %1210 = vrot.lane.b32.xlu0 %v1721_v18, %s2809_s23 }
  0x91   : > { %633 = vrot.lane.b32.xlu1 %v1720_v45, %s2806_s20  ;;  %635 = vrot.lane.b32.xlu0 %v1721_v18, %s2806_s20  ;;  %v1727_v45 = vld [vmem:[#allocation2 + $0x82] sm:$0xff] }
  0x92   : > { %v435_v31 = vpop.permute.xlu0 %434 }
  0x93   : > { %530 = vst.msk [vmem:[#allocation3 + $0x8] sm:$0xff] %vm528_vm2, %v435_v31 }
  0x95   : > { %1402 = vrot.lane.b32.xlu1 %v3017_v47, %s2810_s28  ;;  %1404 = vrot.lane.b32.xlu0 %v3019_v48, %s2810_s28 }
  0x99   : > { %826 = vrot.lane.b32.xlu1 %v3017_v47, %s2807_s21  ;;  %828 = vrot.lane.b32.xlu0 %v3019_v48, %s2807_s21  ;;  %v1722_v48 = vld [vmem:[#allocation2 + $0x4a] sm:$0xff] }
  0x9b   : > { %v437_v19 = vpop.permute.xlu1 %436  ;;  %v441_v20 = vpop.permute.xlu0 %440 }
  0x9c   : > { %531 = vst.msk [vmem:[#allocation3 + $0x10] sm:$0xff] %vm528_vm2, %v437_v19  ;;  %533 = vst.msk [vmem:[#allocation3 + $0x20] sm:$0xff] %vm528_vm2, %v441_v20 }
  0x9d   : > { %1595 = vrot.lane.b32.xlu1 %v2969_v30, %s2811_s10  ;;  %1597 = vrot.lane.b32.xlu0 %v2989_v38, %s2811_s10 }
  0x9f   : > { %v439_v21 = vpop.permute.xlu1 %438  ;;  %v445_v47 = vpop.permute.xlu0 %444 }
  0xa0   : > { %532 = vst.msk [vmem:[#allocation3 + $0x18] sm:$0xff] %vm528_vm2, %v439_v21  ;;  %535 = vst.msk [vmem:[#allocation3 + $0x30] sm:$0xff] %vm528_vm2, %v445_v47 }
  0xa1   : > { %1019 = vrot.lane.b32.xlu1 %v2969_v30, %s2808_s22  ;;  %1021 = vrot.lane.b32.xlu0 %v2989_v38, %s2808_s22 }
  0xa3   : > { %v443_v22 = vpop.permute.xlu1 %442  ;;  %v449_v24 = vpop.permute.xlu0 %448 }
  0xa4   : > { %534 = vst.msk [vmem:[#allocation3 + $0x28] sm:$0xff] %vm528_vm2, %v443_v22  ;;  %537 = vst.msk [vmem:[#allocation3 + $0x40] sm:$0xff] %vm528_vm2, %v449_v24  ;;  %v1729_v24 = vld [vmem:[#allocation2 + $0x9a] sm:$0xff] }
  0xa5   : > { %1788 = vrot.lane.b32.xlu1 %v1722_v48, %s2812_s25  ;;  %1790 = vrot.lane.b32.xlu0 %v1723_v23, %s2812_s25 }
  0xa7   : > { %v447_v28 = vpop.permute.xlu1 %446  ;;  %v453_v30 = vpop.permute.xlu0 %452 }
  0xa8   : > { %536 = vst.msk [vmem:[#allocation3 + $0x38] sm:$0xff] %vm528_vm2, %v447_v28  ;;  %539 = vst.msk [vmem:[#allocation3 + $0x50] sm:$0xff] %vm528_vm2, %v453_v30 }
  0xa9   : > { %1212 = vrot.lane.b32.xlu1 %v1722_v48, %s2809_s23  ;;  %1214 = vrot.lane.b32.xlu0 %v1723_v23, %s2809_s23 }
  0xab   : > { %v451_v38 = vpop.permute.xlu1 %450  ;;  %v457_v29 = vpop.permute.xlu0 %456 }
  0xac   : > { %538 = vst.msk [vmem:[#allocation3 + $0x48] sm:$0xff] %vm528_vm2, %v451_v38  ;;  %541 = vst.msk [vmem:[#allocation3 + $0x60] sm:$0xff] %vm528_vm2, %v457_v29 }
  0xad   : > { %637 = vrot.lane.b32.xlu1 %v1722_v48, %s2806_s20  ;;  %639 = vrot.lane.b32.xlu0 %v1723_v23, %s2806_s20 }
  0xaf   : > { %v455_v33 = vpop.permute.xlu1 %454  ;;  %v461_v34 = vpop.permute.xlu0 %460 }
  0xb0   : > { %540 = vst.msk [vmem:[#allocation3 + $0x58] sm:$0xff] %vm528_vm2, %v455_v33  ;;  %543 = vst.msk [vmem:[#allocation3 + $0x70] sm:$0xff] %vm528_vm2, %v461_v34 }
  0xb1   : > { %1406 = vrot.lane.b32.xlu1 %v3028_v50, %s2810_s28  ;;  %1408 = vrot.lane.b32.xlu0 %v3045_v55, %s2810_s28 }
  0xb3   : > { %v459_v35 = vpop.permute.xlu1 %458  ;;  %v465_v36 = vpop.permute.xlu0 %464 }
  0xb4   : > { %542 = vst.msk [vmem:[#allocation3 + $0x68] sm:$0xff] %vm528_vm2, %v459_v35  ;;  %545 = vst.msk [vmem:[#allocation3 + $0x80] sm:$0xff] %vm528_vm2, %v465_v36 }
  0xb5   : > { %830 = vrot.lane.b32.xlu1 %v3028_v50, %s2807_s21  ;;  %832 = vrot.lane.b32.xlu0 %v3045_v55, %s2807_s21  ;;  %v1724_v55 = vld [vmem:[#allocation2 + $0x62] sm:$0xff] }
  0xb7   : > { %v463_v37 = vpop.permute.xlu1 %462  ;;  %v469_v39 = vpop.permute.xlu0 %468 }
  0xb8   : > { %544 = vst.msk [vmem:[#allocation3 + $0x78] sm:$0xff] %vm528_vm2, %v463_v37  ;;  %547 = vst.msk [vmem:[#allocation3 + $0x90] sm:$0xff] %vm528_vm2, %v469_v39 }
  0xb9   : > { %1599 = vrot.lane.b32.xlu1 %v2977_v32, %s2811_s10  ;;  %1601 = vrot.lane.b32.xlu0 %v3009_v44, %s2811_s10 }
  0xbb   : > { %v467_v46 = vpop.permute.xlu1 %466  ;;  %v473_v50 = vpop.permute.xlu0 %472 }
  0xbc   : > { %546 = vst.msk [vmem:[#allocation3 + $0x88] sm:$0xff] %vm528_vm2, %v467_v46  ;;  %549 = vst.msk [vmem:[#allocation3 + $0xa0] sm:$0xff] %vm528_vm2, %v473_v50 }
  0xbd   : > { %1023 = vrot.lane.b32.xlu1 %v2977_v32, %s2808_s22  ;;  %1025 = vrot.lane.b32.xlu0 %v3009_v44, %s2808_s22 }
  0xbf   : > { %v471_v49 = vpop.permute.xlu1 %470  ;;  %v477_v42 = vpop.permute.xlu0 %476 }
  0xc0   : > { %548 = vst.msk [vmem:[#allocation3 + $0x98] sm:$0xff] %vm528_vm2, %v471_v49  ;;  %551 = vst.msk [vmem:[#allocation3 + $0xb0] sm:$0xff] %vm528_vm2, %v477_v42  ;;  %v1731_v49 = vld [vmem:[#allocation2 + $0xb2] sm:$0xff] }
  0xc1   : > { %1792 = vrot.lane.b32.xlu1 %v1724_v55, %s2812_s25  ;;  %1794 = vrot.lane.b32.xlu0 %v1725_v40, %s2812_s25 }
  0xc3   : > { %v475_v3 = vpop.permute.xlu1 %474  ;;  %v481_v32 = vpop.permute.xlu0 %480 }
  0xc4   : > { %550 = vst.msk [vmem:[#allocation3 + $0xa8] sm:$0xff] %vm528_vm2, %v475_v3  ;;  %553 = vst.msk [vmem:[#allocation3 + $0xc0] sm:$0xff] %vm528_vm2, %v481_v32 }
  0xc5   : > { %1216 = vrot.lane.b32.xlu1 %v1724_v55, %s2809_s23  ;;  %1218 = vrot.lane.b32.xlu0 %v1725_v40, %s2809_s23 }
  0xc7   : > { %v479_v44 = vpop.permute.xlu1 %478  ;;  %v485_v25 = vpop.permute.xlu0 %484 }
  0xc8   : > { %552 = vst.msk [vmem:[#allocation3 + $0xb8] sm:$0xff] %vm528_vm2, %v479_v44  ;;  %555 = vst.msk [vmem:[#allocation3 + $0xd0] sm:$0xff] %vm528_vm2, %v485_v25 }
  0xc9   : > { %641 = vrot.lane.b32.xlu1 %v1724_v55, %s2806_s20  ;;  %643 = vrot.lane.b32.xlu0 %v1725_v40, %s2806_s20 }
  0xcb   : > { %v483_v27 = vpop.permute.xlu1 %482  ;;  %v489_v7 = vpop.permute.xlu0 %488 }
  0xcc   : > { %554 = vst.msk [vmem:[#allocation3 + $0xc8] sm:$0xff] %vm528_vm2, %v483_v27  ;;  %557 = vst.msk [vmem:[#allocation3 + $0xe0] sm:$0xff] %vm528_vm2, %v489_v7 }
  0xcd   : > { %1410 = vrot.lane.b32.xlu1 %v3043_v54, %s2810_s28  ;;  %1412 = vrot.lane.b32.xlu0 %v3055_v57, %s2810_s28 }
  0xcf   : > { %v487_v11 = vpop.permute.xlu1 %486  ;;  %v493_v12 = vpop.permute.xlu0 %492 }
  0xd0   : > { %556 = vst.msk [vmem:[#allocation3 + $0xd8] sm:$0xff] %vm528_vm2, %v487_v11  ;;  %559 = vst.msk [vmem:[#allocation3 + $0xf0] sm:$0xff] %vm528_vm2, %v493_v12  ;;  %v1539_v12 = vld [vmem:[#allocation2 + $0xc1] sm:$0xff] }
  0xd1   : > { %834 = vrot.lane.b32.xlu1 %v3043_v54, %s2807_s21  ;;  %836 = vrot.lane.b32.xlu0 %v3055_v57, %s2807_s21  ;;  %v1726_v57 = vld [vmem:[#allocation2 + $0x7a] sm:$0xff] }
  0xd3   : > { %v491_v13 = vpop.permute.xlu1 %490  ;;  %v626_v43 = vpop.permute.xlu0 %625 }
  0xd4   : > { %558 = vst.msk [vmem:[#allocation3 + $0xe8] sm:$0xff] %vm528_vm2, %v491_v13 }
  0xd5   : > { %1603 = vrot.lane.b32.xlu1 %v2999_v41, %s2811_s10  ;;  %722 = vst.msk [vmem:[#allocation3] sm:$0xff] %vm721_vm3, %v626_v43  ;;  %1605 = vrot.lane.b32.xlu0 %v3039_v52, %s2811_s10 }
  0xd7   : > { %v495_v15 = vpop.permute.xlu1 %494  ;;  %v630_v54 = vpop.permute.xlu0 %629 }
  0xd8   : > { %560 = vst.msk [vmem:[#allocation3 + $0xf8] sm:$0xff] %vm528_vm2, %v495_v15 }
  0xd9   : > { %1027 = vrot.lane.b32.xlu1 %v2999_v41, %s2808_s22  ;;  %724 = vst.msk [vmem:[#allocation3 + $0x10] sm:$0xff] %vm721_vm3, %v630_v54  ;;  %1029 = vrot.lane.b32.xlu0 %v3039_v52, %s2808_s22 }
  0xdb   : > { %v628_v16 = vpop.permute.xlu1 %627  ;;  %v821_v17 = vpop.permute.xlu0 %820 }
  0xdc   : > { %723 = vst.msk [vmem:[#allocation3 + $0x8] sm:$0xff] %vm721_vm3, %v628_v16  ;;  %v1733_v16 = vld [vmem:[#allocation2 + $0xca] sm:$0xff] }
  0xdd   : > { %1796 = vrot.lane.b32.xlu1 %v1726_v57, %s2812_s25  ;;  %916 = vst.msk [vmem:[#allocation3 + $0x8] sm:$0xff] %vm914_vm4, %v821_v17  ;;  %1798 = vrot.lane.b32.xlu0 %v1727_v45, %s2812_s25 }
  0xdf   : > { %v819_v18 = vpop.permute.xlu1 %818  ;;  %v1014_v41 = vpop.permute.xlu0 %1013 }
  0xe0   : > { %915 = vst.msk [vmem:[#allocation3] sm:$0xff] %vm914_vm4, %v819_v18 }
  0xe1   : > { %1220 = vrot.lane.b32.xlu1 %v1726_v57, %s2809_s23  ;;  %1109 = vst.msk [vmem:[#allocation3 + $0x8] sm:$0xff] %vm1107_vm5, %v1014_v41  ;;  %1222 = vrot.lane.b32.xlu0 %v1727_v45, %s2809_s23 }
  0xe3   : > { %v1012_v52 = vpop.permute.xlu1 %1011  ;;  %v1207_v26 = vpop.permute.xlu0 %1206 }
  0xe4   : > { %1108 = vst.msk [vmem:[#allocation3] sm:$0xff] %vm1107_vm5, %v1012_v52 }
  0xe5   : > { %645 = vrot.lane.b32.xlu1 %v1726_v57, %s2806_s20  ;;  %1302 = vst.msk [vmem:[#allocation3 + $0x8] sm:$0xff] %vm1300_vm6, %v1207_v26  ;;  %647 = vrot.lane.b32.xlu0 %v1727_v45, %s2806_s20 }
  0xe7   : > { %v1205_v31 = vpop.permute.xlu1 %1204  ;;  %v632_v19 = vpop.permute.xlu0 %631 }
  0xe8   : > { %1301 = vst.msk [vmem:[#allocation3] sm:$0xff] %vm1300_vm6, %v1205_v31 }
  0xe9   : > { %1414 = vrot.lane.b32.xlu1 %v3053_v56, %s2810_s28  ;;  %725 = vst.msk [vmem:[#allocation3 + $0x18] sm:$0xff] %vm721_vm3, %v632_v19  ;;  %1416 = vrot.lane.b32.xlu0 %v3065_v59, %s2810_s28 }
  0xeb   : > { %v1399_v20 = vpop.permute.xlu1 %1398  ;;  %v1401_v21 = vpop.permute.xlu0 %1400 }
  0xec   : > { %1495 = vst.msk [vmem:[#allocation3] sm:$0xff] %vm1494_vm7, %v1399_v20  ;;  %1496 = vst.msk [vmem:[#allocation3 + $0x8] sm:$0xff] %vm1494_vm7, %v1401_v21 }
  0xed   : > { %838 = vrot.lane.b32.xlu1 %v3053_v56, %s2807_s21  ;;  %840 = vrot.lane.b32.xlu0 %v3065_v59, %s2807_s21  ;;  %v1728_v59 = vld [vmem:[#allocation2 + $0x92] sm:$0xff] }
  0xef   : > { %v823_v47 = vpop.permute.xlu1 %822  ;;  %v825_v48 = vpop.permute.xlu0 %824 }
  0xf0   : > { %917 = vst.msk [vmem:[#allocation3 + $0x10] sm:$0xff] %vm914_vm4, %v823_v47  ;;  %918 = vst.msk [vmem:[#allocation3 + $0x18] sm:$0xff] %vm914_vm4, %v825_v48  ;;  %v1541_v47 = vld [vmem:[#allocation2 + $0xd9] sm:$0xff] }
  0xf1   : > { %1607 = vrot.lane.b32.xlu1 %v3032_v51, %s2811_s10  ;;  %1609 = vrot.lane.b32.xlu0 %v3085_v1, %s2811_s10 }
  0xf3   : > { %v1592_v22 = vpop.permute.xlu1 %1591  ;;  %v1594_v56 = vpop.permute.xlu0 %1593 }
  0xf4   : > { %1688 = vst.msk [vmem:[#allocation3] sm:$0xff] %vm1687_vm8, %v1592_v22  ;;  %1689 = vst.msk [vmem:[#allocation3 + $0x8] sm:$0xff] %vm1687_vm8, %v1594_v56  ;;  %v1542_v22 = vld [vmem:[#allocation2 + $0xe1] sm:$0xff] }
  0xf5   : > { %1031 = vrot.lane.b32.xlu1 %v3032_v51, %s2808_s22  ;;  %1033 = vrot.lane.b32.xlu0 %v3085_v1, %s2808_s22 }
  0xf7   : > { %v1016_v23 = vpop.permute.xlu1 %1015  ;;  %v1018_v28 = vpop.permute.xlu0 %1017 }
  0xf8   : > { %1110 = vst.msk [vmem:[#allocation3 + $0x10] sm:$0xff] %vm1107_vm5, %v1016_v23  ;;  %1111 = vst.msk [vmem:[#allocation3 + $0x18] sm:$0xff] %vm1107_vm5, %v1018_v28 }
  0xf9   : > { %1800 = vrot.lane.b32.xlu1 %v1728_v59, %s2812_s25  ;;  %1802 = vrot.lane.b32.xlu0 %v1729_v24, %s2812_s25 }
  0xfb   : > { %v1785_v30 = vpop.permute.xlu1 %1784  ;;  %v1787_v51 = vpop.permute.xlu0 %1786 }
  0xfc   : > { %1881 = vst.msk [vmem:[#allocation3] sm:$0xff] %vm1880_vm9, %v1785_v30  ;;  %1882 = vst.msk [vmem:[#allocation3 + $0x8] sm:$0xff] %vm1880_vm9, %v1787_v51 }
  0xfd   : > { %1224 = vrot.lane.b32.xlu1 %v1728_v59, %s2809_s23  ;;  %1226 = vrot.lane.b32.xlu0 %v1729_v24, %s2809_s23 }
  0xff   : > { %v1209_v1 = vpop.permute.xlu1 %1208  ;;  %v1211_v38 = vpop.permute.xlu0 %1210 }
 0x100   : > { %1303 = vst.msk [vmem:[#allocation3 + $0x10] sm:$0xff] %vm1300_vm6, %v1209_v1  ;;  %1304 = vst.msk [vmem:[#allocation3 + $0x18] sm:$0xff] %vm1300_vm6, %v1211_v38 }
 0x101   : > { %649 = vrot.lane.b32.xlu1 %v1728_v59, %s2806_s20  ;;  %651 = vrot.lane.b32.xlu0 %v1729_v24, %s2806_s20  ;;  %v1735_v24 = vld [vmem:[#allocation2 + $0xe2] sm:$0xff] }
 0x103   : > { %v634_v29 = vpop.permute.xlu1 %633  ;;  %v1913_v33 = vld [vmem:[#allocation3] sm:$0xff]  ;;  %v636_v34 = vpop.permute.xlu0 %635  ;;  %v1914_v35 = vld [vmem:[#allocation3 + $0x8] sm:$0xff] }
 0x104   : > { %726 = vst.msk [vmem:[#allocation3 + $0x20] sm:$0xff] %vm721_vm3, %v634_v29  ;;  %2705 = vmatprep.mubr.msk.f32.mxu0 %vm1954_vm10, %v1913_v33  ;;  %727 = vst.msk [vmem:[#allocation3 + $0x28] sm:$0xff] %vm721_vm3, %v636_v34 }
 0x105   : > { %1418 = vrot.lane.b32.xlu1 %v3057_v58, %s2810_s28  ;;  %2706 = vmatmul.mubr.msk.f32.vlgmr.msra.gmra.mrb[0].mxu0 %vm1954_vm10, %v1914_v35 }
 0x106   : > { %1420 = vrot.lane.b32.xlu0 %v3069_v61, %s2810_s28 }
 0x107   : > { %v1403_v36 = vpop.permute.xlu1 %1402  ;;  %v1405_v37 = vpop.permute.xlu0 %1404 }
 0x108   : > { %1497 = vst.msk [vmem:[#allocation3 + $0x10] sm:$0xff] %vm1494_vm7, %v1403_v36  ;;  %1498 = vst.msk [vmem:[#allocation3 + $0x18] sm:$0xff] %vm1494_vm7, %v1405_v37 }
 0x109   : > { %842 = vrot.lane.b32.xlu1 %v3057_v58, %s2807_s21 }
 0x10a   : > { %844 = vrot.lane.b32.xlu0 %v3069_v61, %s2807_s21  ;;  %v1730_v61 = vld [vmem:[#allocation2 + $0xaa] sm:$0xff] }
 0x10b   : > { %v827_v39 = vpop.permute.xlu1 %826  ;;  %v829_v46 = vpop.permute.xlu0 %828 }
 0x10c   : > { %919 = vst.msk [vmem:[#allocation3 + $0x20] sm:$0xff] %vm914_vm4, %v827_v39  ;;  %920 = vst.msk [vmem:[#allocation3 + $0x28] sm:$0xff] %vm914_vm4, %v829_v46  ;;  %v1543_v39 = vld [vmem:[#allocation2 + $0xf1] sm:$0xff] }
 0x10d   : > { %1611 = vrot.lane.b32.xlu1 %v3041_v53, %s2811_s10 }
 0x10e   : > { %1613 = vrot.lane.b32.xlu0 %v3105_v5, %s2811_s10 }
 0x10f   : > { %v1596_v50 = vpop.permute.xlu1 %1595  ;;  %v1598_v58 = vpop.permute.xlu0 %1597 }
 0x110   : > { %1690 = vst.msk [vmem:[#allocation3 + $0x10] sm:$0xff] %vm1687_vm8, %v1596_v50  ;;  %1691 = vst.msk [vmem:[#allocation3 + $0x18] sm:$0xff] %vm1687_vm8, %v1598_v58  ;;  %v1544_v50 = vld [vmem:[#allocation2 + $0xf9] sm:$0xff] }
 0x111   : > { %1035 = vrot.lane.b32.xlu1 %v3041_v53, %s2808_s22 }
 0x112   : > { %1037 = vrot.lane.b32.xlu0 %v3105_v5, %s2808_s22 }
 0x113   : > { %v1020_v55 = vpop.permute.xlu1 %1019  ;;  %v1022_v40 = vpop.permute.xlu0 %1021 }
 0x114   : > { %1112 = vst.msk [vmem:[#allocation3 + $0x20] sm:$0xff] %vm1107_vm5, %v1020_v55  ;;  %1113 = vst.msk [vmem:[#allocation3 + $0x28] sm:$0xff] %vm1107_vm5, %v1022_v40 }
 0x115   : > { %1804 = vrot.lane.b32.xlu1 %v1730_v61, %s2812_s25 }
 0x116   : > { %1806 = vrot.lane.b32.xlu0 %v1731_v49, %s2812_s25 }
 0x117   : > { %v1789_v42 = vpop.permute.xlu1 %1788  ;;  %v1791_v53 = vpop.permute.xlu0 %1790 }
 0x118   : > { %1883 = vst.msk [vmem:[#allocation3 + $0x10] sm:$0xff] %vm1880_vm9, %v1789_v42  ;;  %1884 = vst.msk [vmem:[#allocation3 + $0x18] sm:$0xff] %vm1880_vm9, %v1791_v53 }
 0x119   : > { %1228 = vrot.lane.b32.xlu1 %v1730_v61, %s2809_s23 }
 0x11a   : > { %1230 = vrot.lane.b32.xlu0 %v1731_v49, %s2809_s23 }
 0x11b   : > { %v1213_v5 = vpop.permute.xlu1 %1212  ;;  %v1215_v3 = vpop.permute.xlu0 %1214 }
 0x11c   : > { %1305 = vst.msk [vmem:[#allocation3 + $0x20] sm:$0xff] %vm1300_vm6, %v1213_v5  ;;  %1306 = vst.msk [vmem:[#allocation3 + $0x28] sm:$0xff] %vm1300_vm6, %v1215_v3 }
 0x11d   : > { %653 = vrot.lane.b32.xlu1 %v1730_v61, %s2806_s20 }
 0x11e   : > { %655 = vrot.lane.b32.xlu0 %v1731_v49, %s2806_s20  ;;  %v1737_v49 = vld [vmem:[#allocation2 + $0xfa] sm:$0xff] }
 0x11f   : > { %v638_v32 = vpop.permute.xlu1 %637  ;;  %v1915_v44 = vld [vmem:[#allocation3 + $0x10] sm:$0xff]  ;;  %v640_v25 = vpop.permute.xlu0 %639  ;;  %v1916_v27 = vld [vmem:[#allocation3 + $0x18] sm:$0xff] }
 0x120   : > { %728 = vst.msk [vmem:[#allocation3 + $0x30] sm:$0xff] %vm721_vm3, %v638_v32  ;;  %2708 = vmatprep.mubr.msk.f32.mxu0 %vm1954_vm10, %v1915_v44  ;;  %729 = vst.msk [vmem:[#allocation3 + $0x38] sm:$0xff] %vm721_vm3, %v640_v25 }
 0x121   : > { %1422 = vrot.lane.b32.xlu1 %v3067_v60, %s2810_s28  ;;  %2709 = vmatmul.mubr.msk.f32.gmra.mrb[2].mxu0 %vm1954_vm10, %v1916_v27 }
 0x122   : > { %1424 = vrot.lane.b32.xlu0 %v3081_v63, %s2810_s28 }
 0x123   : > { %v1407_v7 = vpop.permute.xlu1 %1406  ;;  %v1409_v11 = vpop.permute.xlu0 %1408 }
 0x124   : > { %1499 = vst.msk [vmem:[#allocation3 + $0x20] sm:$0xff] %vm1494_vm7, %v1407_v7  ;;  %1500 = vst.msk [vmem:[#allocation3 + $0x28] sm:$0xff] %vm1494_vm7, %v1409_v11  ;;  %v269_v11 = vld [vmem:[%s2907_s18 + $0xf0] sm:$0xff] }
 0x125   : > { %846 = vrot.lane.b32.xlu1 %v3067_v60, %s2807_s21  ;;  %v962_v60 = vld [vmem:[#allocation2 + $0xc9] sm:$0xff]  ;;  %302 = vst.msk [vmem:[#allocation2 + $0x181] sm:$0xff] %vm183_vm0, %v269_v11 }
 0x126   : > { %848 = vrot.lane.b32.xlu0 %v3081_v63, %s2807_s21  ;;  %v1732_v63 = vld [vmem:[#allocation2 + $0xc2] sm:$0xff] }
 0x127   : > { %v831_v13 = vpop.permute.xlu1 %830  ;;  %v833_v43 = vpop.permute.xlu0 %832 }
 0x128   : > { %921 = vst.msk [vmem:[#allocation3 + $0x30] sm:$0xff] %vm914_vm4, %v831_v13  ;;  %922 = vst.msk [vmem:[#allocation3 + $0x38] sm:$0xff] %vm914_vm4, %v833_v43  ;;  %v1545_v13 = vld [vmem:[#allocation2 + $0x109] sm:$0xff]  ;;  %v270_v43 = vld [vmem:[%s2907_s18 + $0xf8] sm:$0xff]  ;;  %s2608_s18 = sshll.u32 %s2839_s13, 5 }
 0x129   : > { %1615 = vrot.lane.b32.xlu1 %v1539_v12, %s2811_s10  ;;  %303 = vst.msk [vmem:[#allocation2 + $0x189] sm:$0xff] %vm183_vm0, %v270_v43  ;;  %p174_p4 = scmp.lt.s32.totalorder %s2608_s18, 63  ;;  %v1551_v43 = vld [vmem:[#allocation2 + $0x151] sm:$0xff] }
 0x12a   : > { %1617 = vrot.lane.b32.xlu0 %v3118_v9, %s2811_s10 }
 0x12b   : > { %v1600_v15 = vpop.permute.xlu1 %1599  ;;  %v1602_v54 = vpop.permute.xlu0 %1601  ;;  %s4104_s18 = smov (!%p174_p4, %s2608_s18), 63 }
 0x12c   : > { %1692 = vst.msk [vmem:[#allocation3 + $0x20] sm:$0xff] %vm1687_vm8, %v1600_v15  ;;  %1693 = vst.msk [vmem:[#allocation3 + $0x28] sm:$0xff] %vm1687_vm8, %v1602_v54  ;;  %s2609_s13 = sshll.u32 %s4104_s18, 3 }
 0x12d   : > { %1039 = vrot.lane.b32.xlu1 %v1539_v12, %s2808_s22  ;;  %s3620_s29 = scalar_lea.vmem %s4101_s2, %s2609_s13 }
 0x12e   : > { %1041 = vrot.lane.b32.xlu0 %v962_v60, %s2808_s22  ;;  %v1546_v60 = vld [vmem:[#allocation2 + $0x111] sm:$0xff] }
 0x12f   : > { %v1024_v57 = vpop.permute.xlu1 %1023  ;;  %v1026_v45 = vpop.permute.xlu0 %1025 }
 0x130   : > { %1114 = vst.msk [vmem:[#allocation3 + $0x30] sm:$0xff] %vm1107_vm5, %v1024_v57  ;;  %1115 = vst.msk [vmem:[#allocation3 + $0x38] sm:$0xff] %vm1107_vm5, %v1026_v45 }
 0x131   : > { %1808 = vrot.lane.b32.xlu1 %v1732_v63, %s2812_s25 }
 0x132   : > { %1810 = vrot.lane.b32.xlu0 %v1733_v16, %s2812_s25 }
 0x133   : > { %v1793_v9 = vpop.permute.xlu1 %1792  ;;  %v1795_v17 = vpop.permute.xlu0 %1794 }
 0x134   : > { %1885 = vst.msk [vmem:[#allocation3 + $0x20] sm:$0xff] %vm1880_vm9, %v1793_v9  ;;  %1886 = vst.msk [vmem:[#allocation3 + $0x28] sm:$0xff] %vm1880_vm9, %v1795_v17 }
 0x135   : > { %1232 = vrot.lane.b32.xlu1 %v1732_v63, %s2809_s23 }
 0x136   : > { %1234 = vrot.lane.b32.xlu0 %v1733_v16, %s2809_s23 }
 0x137   : > { %v1217_v18 = vpop.permute.xlu1 %1216  ;;  %v1219_v41 = vpop.permute.xlu0 %1218 }
 0x138   : > { %1307 = vst.msk [vmem:[#allocation3 + $0x30] sm:$0xff] %vm1300_vm6, %v1217_v18  ;;  %1308 = vst.msk [vmem:[#allocation3 + $0x38] sm:$0xff] %vm1300_vm6, %v1219_v41 }
 0x139   : > { %657 = vrot.lane.b32.xlu1 %v1732_v63, %s2806_s20 }
 0x13a   : > { %659 = vrot.lane.b32.xlu0 %v1733_v16, %s2806_s20  ;;  %v1739_v16 = vld [vmem:[#allocation2 + $0x112] sm:$0xff] }
 0x13b   : > { %v642_v52 = vpop.permute.xlu1 %641  ;;  %v1917_v26 = vld [vmem:[#allocation3 + $0x20] sm:$0xff]  ;;  %v644_v31 = vpop.permute.xlu0 %643  ;;  %v1918_v19 = vld [vmem:[#allocation3 + $0x28] sm:$0xff] }
 0x13c   : > { %730 = vst.msk [vmem:[#allocation3 + $0x40] sm:$0xff] %vm721_vm3, %v642_v52  ;;  %2711 = vmatprep.mubr.msk.f32.mxu0 %vm1954_vm10, %v1917_v26  ;;  %731 = vst.msk [vmem:[#allocation3 + $0x48] sm:$0xff] %vm721_vm3, %v644_v31 }
 0x13d   : > { %1426 = vrot.lane.b32.xlu1 %v3079_v62, %s2810_s28  ;;  %2712 = vmatmul.mubr.msk.f32.gmra.mrb[4].mxu0 %vm1954_vm10, %v1918_v19 }
 0x13e   : > { %1428 = vrot.lane.b32.xlu0 %v3093_v2, %s2810_s28 }
 0x13f   : > { %v1411_v20 = vpop.permute.xlu1 %1410  ;;  %v1413_v21 = vpop.permute.xlu0 %1412 }
 0x140   : > { %1501 = vst.msk [vmem:[#allocation3 + $0x30] sm:$0xff] %vm1494_vm7, %v1411_v20  ;;  %1502 = vst.msk [vmem:[#allocation3 + $0x38] sm:$0xff] %vm1494_vm7, %v1413_v21 }
 0x141   : > { %850 = vrot.lane.b32.xlu1 %v3079_v62, %s2807_s21 }
 0x142   : > { %852 = vrot.lane.b32.xlu0 %v3093_v2, %s2807_s21  ;;  %v1734_v2 = vld [vmem:[#allocation2 + $0xda] sm:$0xff] }
 0x143   : > { %v835_v48 = vpop.permute.xlu1 %834  ;;  %v837_v56 = vpop.permute.xlu0 %836 }
 0x144   : > { %923 = vst.msk [vmem:[#allocation3 + $0x40] sm:$0xff] %vm914_vm4, %v835_v48  ;;  %924 = vst.msk [vmem:[#allocation3 + $0x48] sm:$0xff] %vm914_vm4, %v837_v56 }
 0x145   : > { %1619 = vrot.lane.b32.xlu1 %v1541_v47, %s2811_s10 }
 0x146   : > { %1621 = vrot.lane.b32.xlu0 %v1542_v22, %s2811_s10 }
 0x147   : > { %v1604_v59 = vpop.permute.xlu1 %1603  ;;  %v1606_v62 = vpop.permute.xlu0 %1605 }
 0x148   : > { %1694 = vst.msk [vmem:[#allocation3 + $0x30] sm:$0xff] %vm1687_vm8, %v1604_v59  ;;  %1695 = vst.msk [vmem:[#allocation3 + $0x38] sm:$0xff] %vm1687_vm8, %v1606_v62 }
 0x149   : > { %1043 = vrot.lane.b32.xlu1 %v1541_v47, %s2808_s22  ;;  %v1547_v47 = vld [vmem:[#allocation2 + $0x121] sm:$0xff] }
 0x14a   : > { %1045 = vrot.lane.b32.xlu0 %v1542_v22, %s2808_s22  ;;  %v1548_v22 = vld [vmem:[#allocation2 + $0x129] sm:$0xff] }
 0x14b   : > { %v1028_v23 = vpop.permute.xlu1 %1027  ;;  %v1030_v28 = vpop.permute.xlu0 %1029 }
 0x14c   : > { %1116 = vst.msk [vmem:[#allocation3 + $0x40] sm:$0xff] %vm1107_vm5, %v1028_v23  ;;  %1117 = vst.msk [vmem:[#allocation3 + $0x48] sm:$0xff] %vm1107_vm5, %v1030_v28 }
 0x14d   : > { %1812 = vrot.lane.b32.xlu1 %v1734_v2, %s2812_s25 }
 0x14e   : > { %1814 = vrot.lane.b32.xlu0 %v1735_v24, %s2812_s25 }
 0x14f   : > { %v1797_v30 = vpop.permute.xlu1 %1796  ;;  %v1799_v51 = vpop.permute.xlu0 %1798 }
 0x150   : > { %1887 = vst.msk [vmem:[#allocation3 + $0x30] sm:$0xff] %vm1880_vm9, %v1797_v30  ;;  %1888 = vst.msk [vmem:[#allocation3 + $0x38] sm:$0xff] %vm1880_vm9, %v1799_v51 }
 0x151   : > { %1236 = vrot.lane.b32.xlu1 %v1734_v2, %s2809_s23 }
 0x152   : > { %1238 = vrot.lane.b32.xlu0 %v1735_v24, %s2809_s23 }
 0x153   : > { %v1221_v1 = vpop.permute.xlu1 %1220  ;;  %v1223_v38 = vpop.permute.xlu0 %1222 }
 0x154   : > { %1309 = vst.msk [vmem:[#allocation3 + $0x40] sm:$0xff] %vm1300_vm6, %v1221_v1  ;;  %1310 = vst.msk [vmem:[#allocation3 + $0x48] sm:$0xff] %vm1300_vm6, %v1223_v38  ;;  %v1356_v1 = vld [vmem:[#allocation2 + $0x138] sm:$0xff] }
 0x155   : > { %661 = vrot.lane.b32.xlu1 %v1734_v2, %s2806_s20  ;;  %v1741_v2 = vld [vmem:[#allocation2 + $0x12a] sm:$0xff] }
 0x156   : > { %663 = vrot.lane.b32.xlu0 %v1735_v24, %s2806_s20 }
 0x157   : > { %v646_v29 = vpop.permute.xlu1 %645  ;;  %v1919_v33 = vld [vmem:[#allocation3 + $0x30] sm:$0xff]  ;;  %v648_v34 = vpop.permute.xlu0 %647  ;;  %v1920_v35 = vld [vmem:[#allocation3 + $0x38] sm:$0xff] }
 0x158   : > { %732 = vst.msk [vmem:[#allocation3 + $0x50] sm:$0xff] %vm721_vm3, %v646_v29  ;;  %2714 = vmatprep.mubr.msk.f32.mxu0 %vm1954_vm10, %v1919_v33  ;;  %733 = vst.msk [vmem:[#allocation3 + $0x58] sm:$0xff] %vm721_vm3, %v648_v34  ;;  %v1357_v33 = vld [vmem:[#allocation2 + $0x140] sm:$0xff] }
 0x159   : > { %1430 = vrot.lane.b32.xlu1 %v3083_v0, %s2810_s28  ;;  %2715 = vmatmul.mubr.msk.f32.gmra.mrb[6].mxu0 %vm1954_vm10, %v1920_v35 }
 0x15a   : > { %1432 = vrot.lane.b32.xlu0 %v3107_v6, %s2810_s28 }
 0x15b   : > { %v1415_v36 = vpop.permute.xlu1 %1414  ;;  %v1417_v37 = vpop.permute.xlu0 %1416 }
 0x15c   : > { %1503 = vst.msk [vmem:[#allocation3 + $0x40] sm:$0xff] %vm1494_vm7, %v1415_v36  ;;  %1504 = vst.msk [vmem:[#allocation3 + $0x48] sm:$0xff] %vm1494_vm7, %v1417_v37 }
 0x15d   : > { %854 = vrot.lane.b32.xlu1 %v3083_v0, %s2807_s21 }
 0x15e   : > { %856 = vrot.lane.b32.xlu0 %v3107_v6, %s2807_s21  ;;  %v1736_v6 = vld [vmem:[#allocation2 + $0xf2] sm:$0xff] }
 0x15f   : > { %v839_v46 = vpop.permute.xlu1 %838  ;;  %v841_v58 = vpop.permute.xlu0 %840 }
 0x160   : > { %925 = vst.msk [vmem:[#allocation3 + $0x50] sm:$0xff] %vm914_vm4, %v839_v46  ;;  %926 = vst.msk [vmem:[#allocation3 + $0x58] sm:$0xff] %vm914_vm4, %v841_v58 }
 0x161   : > { %1623 = vrot.lane.b32.xlu1 %v1543_v39, %s2811_s10 }
 0x162   : > { %1625 = vrot.lane.b32.xlu0 %v1544_v50, %s2811_s10 }
 0x163   : > { %v1608_v61 = vpop.permute.xlu1 %1607  ;;  %v1610_v0 = vpop.permute.xlu0 %1609 }
 0x164   : > { %1696 = vst.msk [vmem:[#allocation3 + $0x40] sm:$0xff] %vm1687_vm8, %v1608_v61  ;;  %1697 = vst.msk [vmem:[#allocation3 + $0x48] sm:$0xff] %vm1687_vm8, %v1610_v0 }
 0x165   : > { %1047 = vrot.lane.b32.xlu1 %v1543_v39, %s2808_s22  ;;  %v1549_v39 = vld [vmem:[#allocation2 + $0x139] sm:$0xff] }
 0x166   : > { %1049 = vrot.lane.b32.xlu0 %v1544_v50, %s2808_s22  ;;  %v1550_v50 = vld [vmem:[#allocation2 + $0x141] sm:$0xff] }
 0x167   : > { %v1032_v55 = vpop.permute.xlu1 %1031  ;;  %v1034_v40 = vpop.permute.xlu0 %1033 }
 0x168   : > { %1118 = vst.msk [vmem:[#allocation3 + $0x50] sm:$0xff] %vm1107_vm5, %v1032_v55  ;;  %1119 = vst.msk [vmem:[#allocation3 + $0x58] sm:$0xff] %vm1107_vm5, %v1034_v40 }
 0x169   : > { %1816 = vrot.lane.b32.xlu1 %v1736_v6, %s2812_s25 }
 0x16a   : > { %1818 = vrot.lane.b32.xlu0 %v1737_v49, %s2812_s25 }
 0x16b   : > { %v1801_v42 = vpop.permute.xlu1 %1800  ;;  %v1803_v53 = vpop.permute.xlu0 %1802 }
 0x16c   : > { %1889 = vst.msk [vmem:[#allocation3 + $0x40] sm:$0xff] %vm1880_vm9, %v1801_v42  ;;  %1890 = vst.msk [vmem:[#allocation3 + $0x48] sm:$0xff] %vm1880_vm9, %v1803_v53 }
 0x16d   : > { %1240 = vrot.lane.b32.xlu1 %v1736_v6, %s2809_s23 }
 0x16e   : > { %1242 = vrot.lane.b32.xlu0 %v1737_v49, %s2809_s23 }
 0x16f   : > { %v1225_v5 = vpop.permute.xlu1 %1224  ;;  %v1227_v3 = vpop.permute.xlu0 %1226 }
 0x170   : > { %1311 = vst.msk [vmem:[#allocation3 + $0x50] sm:$0xff] %vm1300_vm6, %v1225_v5  ;;  %1312 = vst.msk [vmem:[#allocation3 + $0x58] sm:$0xff] %vm1300_vm6, %v1227_v3 }
 0x171   : > { %665 = vrot.lane.b32.xlu1 %v1736_v6, %s2806_s20  ;;  %v1742_v6 = vld [vmem:[#allocation2 + $0x13a] sm:$0xff] }
 0x172   : > { %667 = vrot.lane.b32.xlu0 %v1737_v49, %s2806_s20  ;;  %v1743_v49 = vld [vmem:[#allocation2 + $0x142] sm:$0xff] }
 0x173   : > { %v650_v32 = vpop.permute.xlu1 %649  ;;  %v1921_v44 = vld [vmem:[#allocation3 + $0x40] sm:$0xff]  ;;  %v652_v25 = vpop.permute.xlu0 %651  ;;  %v1922_v27 = vld [vmem:[#allocation3 + $0x48] sm:$0xff] }
 0x174   : > { %734 = vst.msk [vmem:[#allocation3 + $0x60] sm:$0xff] %vm721_vm3, %v650_v32  ;;  %2717 = vmatprep.mubr.msk.f32.mxu0 %vm1954_vm10, %v1921_v44  ;;  %735 = vst.msk [vmem:[#allocation3 + $0x68] sm:$0xff] %vm721_vm3, %v652_v25  ;;  %v1358_v32 = vld [vmem:[#allocation2 + $0x150] sm:$0xff] }
 0x175   : > { %1434 = vrot.lane.b32.xlu1 %v3099_v4, %s2810_s28  ;;  %2718 = vmatmul.mubr.msk.f32.gmra.mrb[8].mxu0 %vm1954_vm10, %v1922_v27  ;;  %v1359_v27 = vld [vmem:[#allocation2 + $0x158] sm:$0xff] }
 0x176   : > { %1436 = vrot.lane.b32.xlu0 %v3120_v10, %s2810_s28 }
 0x177   : > { %v1419_v7 = vpop.permute.xlu1 %1418 }
 0x178   : > { %1505 = vst.msk [vmem:[#allocation3 + $0x50] sm:$0xff] %vm1494_vm7, %v1419_v7  ;;  %v1421_v12 = vpop.permute.xlu0 %1420 }
 0x179   : > { %858 = vrot.lane.b32.xlu1 %v3099_v4, %s2807_s21  ;;  %1506 = vst.msk [vmem:[#allocation3 + $0x58] sm:$0xff] %vm1494_vm7, %v1421_v12 }
 0x17a   : > { %860 = vrot.lane.b32.xlu0 %v3120_v10, %s2807_s21  ;;  %v1738_v10 = vld [vmem:[#allocation2 + $0x10a] sm:$0xff] }
 0x17b   : > { %v843_v15 = vpop.permute.xlu1 %842 }
 0x17c   : > { %927 = vst.msk [vmem:[#allocation3 + $0x60] sm:$0xff] %vm914_vm4, %v843_v15  ;;  %v845_v54 = vpop.permute.xlu0 %844 }
 0x17d   : > { %1627 = vrot.lane.b32.xlu1 %v1545_v13, %s2811_s10  ;;  %928 = vst.msk [vmem:[#allocation3 + $0x68] sm:$0xff] %vm914_vm4, %v845_v54 }
 0x17e   : > { %1629 = vrot.lane.b32.xlu0 %v1546_v60, %s2811_s10 }
 0x17f   : > { %v1612_v4 = vpop.permute.xlu1 %1611 }
 0x180   : > { %1698 = vst.msk [vmem:[#allocation3 + $0x50] sm:$0xff] %vm1687_vm8, %v1612_v4  ;;  %v1614_v63 = vpop.permute.xlu0 %1613 }
 0x181   : > { %1051 = vrot.lane.b32.xlu1 %v1545_v13, %s2808_s22  ;;  %1699 = vst.msk [vmem:[#allocation3 + $0x58] sm:$0xff] %vm1687_vm8, %v1614_v63 }
 0x182   : > { %1053 = vrot.lane.b32.xlu0 %v1546_v60, %s2808_s22  ;;  %v1552_v60 = vld [vmem:[#allocation2 + $0x159] sm:$0xff] }
 0x183   : > { %v1036_v57 = vpop.permute.xlu1 %1035 }
 0x184   : > { %1120 = vst.msk [vmem:[#allocation3 + $0x60] sm:$0xff] %vm1107_vm5, %v1036_v57  ;;  %v1038_v45 = vpop.permute.xlu0 %1037 }
 0x185   : > { %1820 = vrot.lane.b32.xlu1 %v1738_v10, %s2812_s25  ;;  %1121 = vst.msk [vmem:[#allocation3 + $0x68] sm:$0xff] %vm1107_vm5, %v1038_v45 }
 0x186   : > { %1822 = vrot.lane.b32.xlu0 %v1739_v16, %s2812_s25 }
 0x187   : > { %v1805_v9 = vpop.permute.xlu1 %1804 }
 0x188   : > { %1891 = vst.msk [vmem:[#allocation3 + $0x50] sm:$0xff] %vm1880_vm9, %v1805_v9  ;;  %v1807_v17 = vpop.permute.xlu0 %1806 }
 0x189   : > { %1244 = vrot.lane.b32.xlu1 %v1738_v10, %s2809_s23  ;;  %1892 = vst.msk [vmem:[#allocation3 + $0x58] sm:$0xff] %vm1880_vm9, %v1807_v17 }
 0x18a   : > { %1246 = vrot.lane.b32.xlu0 %v1739_v16, %s2809_s23 }
 0x18b   : > { %v1229_v18 = vpop.permute.xlu1 %1228 }
 0x18c   : > { %1313 = vst.msk [vmem:[#allocation3 + $0x60] sm:$0xff] %vm1300_vm6, %v1229_v18  ;;  %v1231_v41 = vpop.permute.xlu0 %1230 }
 0x18d   : > { %669 = vrot.lane.b32.xlu1 %v1738_v10, %s2806_s20  ;;  %1314 = vst.msk [vmem:[#allocation3 + $0x68] sm:$0xff] %vm1300_vm6, %v1231_v41  ;;  %v1744_v10 = vld [vmem:[#allocation2 + $0x152] sm:$0xff] }
 0x18e   : > { %671 = vrot.lane.b32.xlu0 %v1739_v16, %s2806_s20  ;;  %v1745_v16 = vld [vmem:[#allocation2 + $0x15a] sm:$0xff] }
 0x18f   : > { %v654_v52 = vpop.permute.xlu1 %653  ;;  %v1923_v26 = vld [vmem:[#allocation3 + $0x50] sm:$0xff] }
 0x190   : > { %736 = vst.msk [vmem:[#allocation3 + $0x70] sm:$0xff] %vm721_vm3, %v654_v52  ;;  %2720 = vmatprep.mubr.msk.f32.mxu0 %vm1954_vm10, %v1923_v26  ;;  %v656_v31 = vpop.permute.xlu0 %655  ;;  %v1924_v19 = vld [vmem:[#allocation3 + $0x58] sm:$0xff] }
 0x191   : > { %1438 = vrot.lane.b32.xlu1 %v3112_v8, %s2810_s28  ;;  %737 = vst.msk [vmem:[#allocation3 + $0x78] sm:$0xff] %vm721_vm3, %v656_v31  ;;  %2721 = vmatmul.mubr.msk.f32.gmra.mrb[10].mxu0 %vm1954_vm10, %v1924_v19 }
 0x192   : > { %1440 = vrot.lane.b32.xlu0 %v3128_v14, %s2810_s28 }
 0x193   : > { %v1423_v20 = vpop.permute.xlu1 %1422 }
 0x194   : > { %1507 = vst.msk [vmem:[#allocation3 + $0x60] sm:$0xff] %vm1494_vm7, %v1423_v20  ;;  %v1425_v21 = vpop.permute.xlu0 %1424 }
 0x195   : > { %862 = vrot.lane.b32.xlu1 %v3112_v8, %s2807_s21  ;;  %1508 = vst.msk [vmem:[#allocation3 + $0x68] sm:$0xff] %vm1494_vm7, %v1425_v21  ;;  %v1360_v21 = vld [vmem:[#allocation2 + $0x168] sm:$0xff] }
 0x196   : > { %864 = vrot.lane.b32.xlu0 %v3128_v14, %s2807_s21  ;;  %v1740_v14 = vld [vmem:[#allocation2 + $0x122] sm:$0xff] }
 0x197   : > { %v847_v48 = vpop.permute.xlu1 %846 }
 0x198   : > { %929 = vst.msk [vmem:[#allocation3 + $0x70] sm:$0xff] %vm914_vm4, %v847_v48  ;;  %v849_v56 = vpop.permute.xlu0 %848 }
 0x199   : > { %1631 = vrot.lane.b32.xlu1 %v1547_v47, %s2811_s10  ;;  %930 = vst.msk [vmem:[#allocation3 + $0x78] sm:$0xff] %vm914_vm4, %v849_v56 }
 0x19a   : > { %1633 = vrot.lane.b32.xlu0 %v1548_v22, %s2811_s10 }
 0x19b   : > { %v1616_v59 = vpop.permute.xlu1 %1615 }
 0x19c   : > { %1700 = vst.msk [vmem:[#allocation3 + $0x60] sm:$0xff] %vm1687_vm8, %v1616_v59  ;;  %v1618_v8 = vpop.permute.xlu0 %1617 }
 0x19d   : > { %1055 = vrot.lane.b32.xlu1 %v1547_v47, %s2808_s22  ;;  %1701 = vst.msk [vmem:[#allocation3 + $0x68] sm:$0xff] %vm1687_vm8, %v1618_v8 }
 0x19e   : > { %1057 = vrot.lane.b32.xlu0 %v1548_v22, %s2808_s22  ;;  %v1361_v22 = vld [vmem:[#allocation2 + $0x170] sm:$0xff] }
 0x19f   : > { %v1040_v62 = vpop.permute.xlu1 %1039 }
 0x1a0   : > { %1122 = vst.msk [vmem:[#allocation3 + $0x70] sm:$0xff] %vm1107_vm5, %v1040_v62  ;;  %v1042_v23 = vpop.permute.xlu0 %1041  ;;  %v1553_v62 = vld [vmem:[#allocation2 + $0x169] sm:$0xff] }
 0x1a1   : > { %1824 = vrot.lane.b32.xlu1 %v1740_v14, %s2812_s25  ;;  %1123 = vst.msk [vmem:[#allocation3 + $0x78] sm:$0xff] %vm1107_vm5, %v1042_v23  ;;  %v1554_v23 = vld [vmem:[#allocation2 + $0x171] sm:$0xff] }
 0x1a2   : > { %1826 = vrot.lane.b32.xlu0 %v1741_v2, %s2812_s25 }
 0x1a3   : > { %v1809_v24 = vpop.permute.xlu1 %1808 }
 0x1a4   : > { %1893 = vst.msk [vmem:[#allocation3 + $0x60] sm:$0xff] %vm1880_vm9, %v1809_v24  ;;  %v1811_v28 = vpop.permute.xlu0 %1810 }
 0x1a5   : > { %1248 = vrot.lane.b32.xlu1 %v1740_v14, %s2809_s23  ;;  %1894 = vst.msk [vmem:[#allocation3 + $0x68] sm:$0xff] %vm1880_vm9, %v1811_v28 }
 0x1a6   : > { %1250 = vrot.lane.b32.xlu0 %v1741_v2, %s2809_s23 }
 0x1a7   : > { %v1233_v30 = vpop.permute.xlu1 %1232 }
 0x1a8   : > { %1315 = vst.msk [vmem:[#allocation3 + $0x70] sm:$0xff] %vm1300_vm6, %v1233_v30  ;;  %v1235_v51 = vpop.permute.xlu0 %1234 }
 0x1a9   : > { %673 = vrot.lane.b32.xlu1 %v1740_v14, %s2806_s20  ;;  %1316 = vst.msk [vmem:[#allocation3 + $0x78] sm:$0xff] %vm1300_vm6, %v1235_v51  ;;  %v1746_v51 = vld [vmem:[#allocation2 + $0x16a] sm:$0xff] }
 0x1aa   : > { %675 = vrot.lane.b32.xlu0 %v1741_v2, %s2806_s20 }
 0x1ab   : > { %v658_v38 = vpop.permute.xlu1 %657  ;;  %v1925_v29 = vld [vmem:[#allocation3 + $0x60] sm:$0xff] }
 0x1ac   : > { %738 = vst.msk [vmem:[#allocation3 + $0x80] sm:$0xff] %vm721_vm3, %v658_v38  ;;  %2723 = vmatprep.mubr.msk.f32.mxu0 %vm1954_vm10, %v1925_v29  ;;  %v660_v34 = vpop.permute.xlu0 %659  ;;  %v1926_v35 = vld [vmem:[#allocation3 + $0x68] sm:$0xff] }
 0x1ad   : > { %1442 = vrot.lane.b32.xlu1 %v1356_v1, %s2810_s28  ;;  %739 = vst.msk [vmem:[#allocation3 + $0x88] sm:$0xff] %vm721_vm3, %v660_v34  ;;  %2724 = vmatmul.mubr.msk.f32.gmra.mrb[12].mxu0 %vm1954_vm10, %v1926_v35  ;;  %v1747_v38 = vld [vmem:[#allocation2 + $0x172] sm:$0xff] }
 0x1ae   : > { %1444 = vrot.lane.b32.xlu0 %v1357_v33, %s2810_s28 }
 0x1af   : > { %v1427_v36 = vpop.permute.xlu1 %1426 }
 0x1b0   : > { %1509 = vst.msk [vmem:[#allocation3 + $0x70] sm:$0xff] %vm1494_vm7, %v1427_v36  ;;  %v1429_v37 = vpop.permute.xlu0 %1428 }
 0x1b1   : > { %866 = vrot.lane.b32.xlu1 %v1356_v1, %s2807_s21  ;;  %1510 = vst.msk [vmem:[#allocation3 + $0x78] sm:$0xff] %vm1494_vm7, %v1429_v37 }
 0x1b2   : > { %868 = vrot.lane.b32.xlu0 %v1357_v33, %s2807_s21 }
 0x1b3   : > { %v851_v46 = vpop.permute.xlu1 %850 }
 0x1b4   : > { %931 = vst.msk [vmem:[#allocation3 + $0x80] sm:$0xff] %vm914_vm4, %v851_v46  ;;  %v853_v58 = vpop.permute.xlu0 %852 }
 0x1b5   : > { %1635 = vrot.lane.b32.xlu1 %v1549_v39, %s2811_s10  ;;  %932 = vst.msk [vmem:[#allocation3 + $0x88] sm:$0xff] %vm914_vm4, %v853_v58 }
 0x1b6   : > { %1637 = vrot.lane.b32.xlu0 %v1550_v50, %s2811_s10 }
 0x1b7   : > { %v1620_v61 = vpop.permute.xlu1 %1619 }
 0x1b8   : > { %1702 = vst.msk [vmem:[#allocation3 + $0x70] sm:$0xff] %vm1687_vm8, %v1620_v61  ;;  %v1622_v0 = vpop.permute.xlu0 %1621 }
 0x1b9   : > { %1059 = vrot.lane.b32.xlu1 %v1549_v39, %s2808_s22  ;;  %1703 = vst.msk [vmem:[#allocation3 + $0x78] sm:$0xff] %vm1687_vm8, %v1622_v0  ;;  %v1362_v0 = vld [vmem:[#allocation2 + $0x180] sm:$0xff] }
 0x1ba   : > { %1061 = vrot.lane.b32.xlu0 %v1550_v50, %s2808_s22 }
 0x1bb   : > { %v1044_v55 = vpop.permute.xlu1 %1043 }
 0x1bc   : > { %1124 = vst.msk [vmem:[#allocation3 + $0x80] sm:$0xff] %vm1107_vm5, %v1044_v55  ;;  %v1046_v40 = vpop.permute.xlu0 %1045 }
 0x1bd   : > { %1828 = vrot.lane.b32.xlu1 %v1742_v6, %s2812_s25  ;;  %1125 = vst.msk [vmem:[#allocation3 + $0x88] sm:$0xff] %vm1107_vm5, %v1046_v40 }
 0x1be   : > { %1830 = vrot.lane.b32.xlu0 %v1743_v49, %s2812_s25 }
 0x1bf   : > { %v1813_v42 = vpop.permute.xlu1 %1812 }
 0x1c0   : > { %1895 = vst.msk [vmem:[#allocation3 + $0x70] sm:$0xff] %vm1880_vm9, %v1813_v42  ;;  %v1815_v53 = vpop.permute.xlu0 %1814 }
 0x1c1   : > { %1252 = vrot.lane.b32.xlu1 %v1742_v6, %s2809_s23  ;;  %1896 = vst.msk [vmem:[#allocation3 + $0x78] sm:$0xff] %vm1880_vm9, %v1815_v53 }
 0x1c2   : > { %1254 = vrot.lane.b32.xlu0 %v1743_v49, %s2809_s23 }
 0x1c3   : > { %v1237_v5 = vpop.permute.xlu1 %1236 }
 0x1c4   : > { %1317 = vst.msk [vmem:[#allocation3 + $0x80] sm:$0xff] %vm1300_vm6, %v1237_v5  ;;  %v1239_v3 = vpop.permute.xlu0 %1238 }
 0x1c5   : > { %677 = vrot.lane.b32.xlu1 %v1742_v6, %s2806_s20  ;;  %1318 = vst.msk [vmem:[#allocation3 + $0x88] sm:$0xff] %vm1300_vm6, %v1239_v3  ;;  %v1555_v3 = vld [vmem:[#allocation2 + $0x181] sm:$0xff] }
 0x1c6   : > { %679 = vrot.lane.b32.xlu0 %v1743_v49, %s2806_s20  ;;  %v1363_v49 = vld [vmem:[#allocation2 + $0x188] sm:$0xff] }
 0x1c7   : > { %v662_v44 = vpop.permute.xlu1 %661  ;;  %v1927_v25 = vld [vmem:[#allocation3 + $0x70] sm:$0xff] }
 0x1c8   : > { %740 = vst.msk [vmem:[#allocation3 + $0x90] sm:$0xff] %vm721_vm3, %v662_v44  ;;  %2726 = vmatprep.mubr.msk.f32.mxu0 %vm1954_vm10, %v1927_v25  ;;  %v664_v7 = vpop.permute.xlu0 %663  ;;  %v1928_v11 = vld [vmem:[#allocation3 + $0x78] sm:$0xff] }
 0x1c9   : > { %1446 = vrot.lane.b32.xlu1 %v1358_v32, %s2810_s28  ;;  %741 = vst.msk [vmem:[#allocation3 + $0x98] sm:$0xff] %vm721_vm3, %v664_v7  ;;  %2727 = vmatmul.mubr.msk.f32.gmra.mrb[14].mxu0 %vm1954_vm10, %v1928_v11  ;;  %v1556_v44 = vld [vmem:[#allocation2 + $0x189] sm:$0xff] }
 0x1ca   : > { %1448 = vrot.lane.b32.xlu0 %v1359_v27, %s2810_s28  ;;  %v1748_v11 = vld [vmem:[#allocation2 + $0x182] sm:$0xff] }
 0x1cb   : > { %v1431_v12 = vpop.permute.xlu1 %1430 }
 0x1cc   : > { %1511 = vst.msk [vmem:[#allocation3 + $0x80] sm:$0xff] %vm1494_vm7, %v1431_v12  ;;  %v1433_v13 = vpop.permute.xlu0 %1432 }
 0x1cd   : > { %870 = vrot.lane.b32.xlu1 %v1358_v32, %s2807_s21  ;;  %1512 = vst.msk [vmem:[#allocation3 + $0x88] sm:$0xff] %vm1494_vm7, %v1433_v13  ;;  %v1749_v13 = vld [vmem:[#allocation2 + $0x18a] sm:$0xff] }
 0x1ce   : > { %872 = vrot.lane.b32.xlu0 %v1359_v27, %s2807_s21 }
 0x1cf   : > { %v855_v15 = vpop.permute.xlu1 %854 }
 0x1d0   : > { %933 = vst.msk [vmem:[#allocation3 + $0x90] sm:$0xff] %vm914_vm4, %v855_v15  ;;  %v857_v54 = vpop.permute.xlu0 %856 }
 0x1d1   : > { %1639 = vrot.lane.b32.xlu1 %v1551_v43, %s2811_s10  ;;  %934 = vst.msk [vmem:[#allocation3 + $0x98] sm:$0xff] %vm914_vm4, %v857_v54 }
 0x1d2   : > { %1641 = vrot.lane.b32.xlu0 %v1552_v60, %s2811_s10 }
 0x1d3   : > { %v1624_v4 = vpop.permute.xlu1 %1623 }
 0x1d4   : > { %1704 = vst.msk [vmem:[#allocation3 + $0x80] sm:$0xff] %vm1687_vm8, %v1624_v4  ;;  %v1626_v63 = vpop.permute.xlu0 %1625 }
 0x1d5   : > { %1063 = vrot.lane.b32.xlu1 %v1551_v43, %s2808_s22  ;;  %1705 = vst.msk [vmem:[#allocation3 + $0x88] sm:$0xff] %vm1687_vm8, %v1626_v63 }
 0x1d6   : > { %1065 = vrot.lane.b32.xlu0 %v1552_v60, %s2808_s22 }
 0x1d7   : > { %v1048_v57 = vpop.permute.xlu1 %1047 }
 0x1d8   : > { %1126 = vst.msk [vmem:[#allocation3 + $0x90] sm:$0xff] %vm1107_vm5, %v1048_v57  ;;  %v1050_v45 = vpop.permute.xlu0 %1049  ;;  %v3624_v9 = vpop.f32.mrb[0].mxu0  ;;  %v1364_v57 = vld [vmem:[#allocation2 + $0x198] sm:$0xff] }
 0x1d9   : > { %1832 = vrot.lane.b32.xlu1 %v1744_v10, %s2812_s25  ;;  %1127 = vst.msk [vmem:[#allocation3 + $0x98] sm:$0xff] %vm1107_vm5, %v1050_v45  ;;  %v2309_v17 = vsel %vm183_vm0, %v3624_v9, 0.0  ;;  %v3632_v18 = vpop.f32.mrb[1].mxu0 }
 0x1da   : > { %2277 = vst.msk [vmem:[%s3620_s29 + $0x8] sm:$0xff] %vm183_vm0, %v3624_v9  ;;  %1834 = vrot.lane.b32.xlu0 %v1745_v16, %s2812_s25  ;;  %2276 = vst.msk [vmem:[%s3620_s29] sm:$0xff] %vm183_vm0, %v3632_v18  ;;  %v2308_v52 = vsel %vm183_vm0, %v3632_v18, 0.0 }
 0x1db   : > { %v1817_v41 = vpop.permute.xlu1 %1816  ;;  %v2310_v26 = vadd.f32 %v2309_v17, %v2308_v52 }
 0x1dc   : > { %1897 = vst.msk [vmem:[#allocation3 + $0x80] sm:$0xff] %vm1880_vm9, %v1817_v41  ;;  %v1819_v31 = vpop.permute.xlu0 %1818  ;;  %v1557_v41 = vld [vmem:[#allocation2 + $0x199] sm:$0xff] }
 0x1dd   : > { %1256 = vrot.lane.b32.xlu1 %v1744_v10, %s2809_s23  ;;  %1898 = vst.msk [vmem:[#allocation3 + $0x88] sm:$0xff] %vm1880_vm9, %v1819_v31 }
 0x1de   : > { %1258 = vrot.lane.b32.xlu0 %v1745_v16, %s2809_s23 }
 0x1df   : > { %v1241_v19 = vpop.permute.xlu1 %1240 }
 0x1e0   : > { %1319 = vst.msk [vmem:[#allocation3 + $0x90] sm:$0xff] %vm1300_vm6, %v1241_v19  ;;  %v1243_v20 = vpop.permute.xlu0 %1242 }
 0x1e1   : > { %681 = vrot.lane.b32.xlu1 %v1744_v10, %s2806_s20  ;;  %1320 = vst.msk [vmem:[#allocation3 + $0x98] sm:$0xff] %vm1300_vm6, %v1243_v20  ;;  %v1750_v20 = vld [vmem:[#allocation2 + $0x19a] sm:$0xff] }
 0x1e2   : > { %683 = vrot.lane.b32.xlu0 %v1745_v16, %s2806_s20 }
 0x1e3   : > { %v666_v47 = vpop.permute.xlu1 %665  ;;  %v1929_v48 = vld [vmem:[#allocation3 + $0x80] sm:$0xff] }
 0x1e4   : > { %742 = vst.msk [vmem:[#allocation3 + $0xa0] sm:$0xff] %vm721_vm3, %v666_v47  ;;  %2729 = vmatprep.mubr.msk.f32.mxu1 %vm1954_vm10, %v1929_v48  ;;  %v668_v56 = vpop.permute.xlu0 %667  ;;  %v1930_v59 = vld [vmem:[#allocation3 + $0x88] sm:$0xff]  ;;  %v1558_v48 = vld [vmem:[#allocation2 + $0x1a1] sm:$0xff] }
 0x1e5   : > { %1450 = vrot.lane.b32.xlu1 %v1360_v21, %s2810_s28  ;;  %743 = vst.msk [vmem:[#allocation3 + $0xa8] sm:$0xff] %vm721_vm3, %v668_v56  ;;  %2730 = vmatmul.mubr.msk.f32.vlgmr.msra.gmra.mrb[0].mxu1 %vm1954_vm10, %v1930_v59  ;;  %v1751_v59 = vld [vmem:[#allocation2 + $0x1a2] sm:$0xff] }
 0x1e6   : > { %1452 = vrot.lane.b32.xlu0 %v1361_v22, %s2810_s28 }
 0x1e7   : > { %v1435_v8 = vpop.permute.xlu1 %1434 }
 0x1e8   : > { %1513 = vst.msk [vmem:[#allocation3 + $0x90] sm:$0xff] %vm1494_vm7, %v1435_v8  ;;  %v1437_v14 = vpop.permute.xlu0 %1436 }
 0x1e9   : > { %874 = vrot.lane.b32.xlu1 %v1360_v21, %s2807_s21  ;;  %1514 = vst.msk [vmem:[#allocation3 + $0x98] sm:$0xff] %vm1494_vm7, %v1437_v14 }
 0x1ea   : > { %876 = vrot.lane.b32.xlu0 %v1361_v22, %s2807_s21 }
 0x1eb   : > { %v859_v2 = vpop.permute.xlu1 %858 }
 0x1ec   : > { %935 = vst.msk [vmem:[#allocation3 + $0xa0] sm:$0xff] %vm914_vm4, %v859_v2  ;;  %v861_v24 = vpop.permute.xlu0 %860 }
 0x1ed   : > { %1643 = vrot.lane.b32.xlu1 %v1553_v62, %s2811_s10  ;;  %936 = vst.msk [vmem:[#allocation3 + $0xa8] sm:$0xff] %vm914_vm4, %v861_v24 }
 0x1ee   : > { %1645 = vrot.lane.b32.xlu0 %v1554_v23, %s2811_s10 }
 0x1ef   : > { %v1628_v28 = vpop.permute.xlu1 %1627 }
 0x1f0   : > { %1706 = vst.msk [vmem:[#allocation3 + $0x90] sm:$0xff] %vm1687_vm8, %v1628_v28  ;;  %v1630_v30 = vpop.permute.xlu0 %1629 }
 0x1f1   : > { %1067 = vrot.lane.b32.xlu1 %v1553_v62, %s2808_s22  ;;  %1707 = vst.msk [vmem:[#allocation3 + $0x98] sm:$0xff] %vm1687_vm8, %v1630_v30 }
 0x1f2   : > { %1069 = vrot.lane.b32.xlu0 %v1554_v23, %s2808_s22 }
 0x1f3   : > { %v1052_v1 = vpop.permute.xlu1 %1051 }
 0x1f4   : > { %1128 = vst.msk [vmem:[#allocation3 + $0xa0] sm:$0xff] %vm1107_vm5, %v1052_v1  ;;  %v1054_v29 = vpop.permute.xlu0 %1053  ;;  %v3668_v33 = vpop.f32.mrb[2].mxu0 }
 0x1f5   : > { %1836 = vrot.lane.b32.xlu1 %v1746_v51, %s2812_s25  ;;  %1129 = vst.msk [vmem:[#allocation3 + $0xa8] sm:$0xff] %vm1107_vm5, %v1054_v29  ;;  %v3674_v34 = vpop.f32.mrb[3].mxu0  ;;  %v2313_v35 = vsel %vm183_vm0, %v3668_v33, 0.0 }
 0x1f6   : > { %2279 = vst.msk [vmem:[%s3620_s29 + $0x18] sm:$0xff] %vm183_vm0, %v3668_v33  ;;  %2278 = vst.msk [vmem:[%s3620_s29 + $0x10] sm:$0xff] %vm183_vm0, %v3674_v34  ;;  %v2311_v36 = vsel %vm183_vm0, %v3674_v34, 0.0  ;;  %1838 = vrot.lane.b32.xlu0 %v1747_v38, %s2812_s25 }
 0x1f7   : > { %v1821_v37 = vpop.permute.xlu1 %1820  ;;  %v2312_v39 = vadd.f32 %v2311_v36, %v2310_v26  ;;  %v1365_v26 = vld [vmem:[#allocation2 + $0x1a0] sm:$0xff] }
 0x1f8   : > { %1899 = vst.msk [vmem:[#allocation3 + $0x90] sm:$0xff] %vm1880_vm9, %v1821_v37  ;;  %v1823_v46 = vpop.permute.xlu0 %1822 }
 0x1f9   : > { %1260 = vrot.lane.b32.xlu1 %v1746_v51, %s2809_s23  ;;  %1900 = vst.msk [vmem:[#allocation3 + $0x98] sm:$0xff] %vm1880_vm9, %v1823_v46  ;;  %v2314_v50 = vadd.f32 %v2313_v35, %v2312_v39 }
 0x1fa   : > { %1262 = vrot.lane.b32.xlu0 %v1747_v38, %s2809_s23 }
 0x1fb   : > { %v1245_v58 = vpop.permute.xlu1 %1244 }
 0x1fc   : > { %1321 = vst.msk [vmem:[#allocation3 + $0xa0] sm:$0xff] %vm1300_vm6, %v1245_v58  ;;  %v1247_v61 = vpop.permute.xlu0 %1246 }
 0x1fd   : > { %685 = vrot.lane.b32.xlu1 %v1746_v51, %s2806_s20  ;;  %1322 = vst.msk [vmem:[#allocation3 + $0xa8] sm:$0xff] %vm1300_vm6, %v1247_v61 }
 0x1fe   : > { %687 = vrot.lane.b32.xlu0 %v1747_v38, %s2806_s20  ;;  %s2610_s20 = sshll.u32 %s2901_s14, 1 }
 0x1ff   : > { %v670_v6 = vpop.permute.xlu1 %669  ;;  %v1931_v55 = vld [vmem:[#allocation3 + $0x90] sm:$0xff] }
 0x200   : > { %744 = vst.msk [vmem:[#allocation3 + $0xb0] sm:$0xff] %vm721_vm3, %v670_v6  ;;  %2732 = vmatprep.mubr.msk.f32.mxu1 %vm1954_vm10, %v1931_v55  ;;  %v672_v40 = vpop.permute.xlu0 %671  ;;  %v1932_v42 = vld [vmem:[#allocation3 + $0x98] sm:$0xff] }
 0x201   : > { %1454 = vrot.lane.b32.xlu1 %v1362_v0, %s2810_s28  ;;  %745 = vst.msk [vmem:[#allocation3 + $0xb8] sm:$0xff] %vm721_vm3, %v672_v40  ;;  %2733 = vmatmul.mubr.msk.f32.gmra.mrb[2].mxu1 %vm1954_vm10, %v1932_v42 }
 0x202   : > { %1456 = vrot.lane.b32.xlu0 %v1363_v49, %s2810_s28 }
 0x203   : > { %v1439_v53 = vpop.permute.xlu1 %1438 }
 0x204   : > { %1515 = vst.msk [vmem:[#allocation3 + $0xa0] sm:$0xff] %vm1494_vm7, %v1439_v53  ;;  %v1441_v5 = vpop.permute.xlu0 %1440 }
 0x205   : > { %878 = vrot.lane.b32.xlu1 %v1362_v0, %s2807_s21  ;;  %1516 = vst.msk [vmem:[#allocation3 + $0xa8] sm:$0xff] %vm1494_vm7, %v1441_v5 }
 0x206   : > { %880 = vrot.lane.b32.xlu0 %v1363_v49, %s2807_s21 }
 0x207   : > { %v863_v32 = vpop.permute.xlu1 %862 }
 0x208   : > { %937 = vst.msk [vmem:[#allocation3 + $0xb0] sm:$0xff] %vm914_vm4, %v863_v32  ;;  %v865_v25 = vpop.permute.xlu0 %864 }
 0x209   : > { %1647 = vrot.lane.b32.xlu1 %v1555_v3, %s2811_s10  ;;  %938 = vst.msk [vmem:[#allocation3 + $0xb8] sm:$0xff] %vm914_vm4, %v865_v25 }
 0x20a   : > { %1649 = vrot.lane.b32.xlu0 %v1556_v44, %s2811_s10 }
 0x20b   : > { %v1632_v27 = vpop.permute.xlu1 %1631 }
 0x20c   : > { %1708 = vst.msk [vmem:[#allocation3 + $0xa0] sm:$0xff] %vm1687_vm8, %v1632_v27  ;;  %v1634_v7 = vpop.permute.xlu0 %1633 }
 0x20d   : > { %1071 = vrot.lane.b32.xlu1 %v1555_v3, %s2808_s22  ;;  %1709 = vst.msk [vmem:[#allocation3 + $0xa8] sm:$0xff] %vm1687_vm8, %v1634_v7 }
 0x20e   : > { %1073 = vrot.lane.b32.xlu0 %v1556_v44, %s2808_s22 }
 0x20f   : > { %v1056_v12 = vpop.permute.xlu1 %1055 }
 0x210   : > { %1130 = vst.msk [vmem:[#allocation3 + $0xb0] sm:$0xff] %vm1107_vm5, %v1056_v12  ;;  %v1058_v43 = vpop.permute.xlu0 %1057  ;;  %v3712_v15 = vpop.f32.mrb[4].mxu0 }
 0x211   : > { %1840 = vrot.lane.b32.xlu1 %v1748_v11, %s2812_s25  ;;  %1131 = vst.msk [vmem:[#allocation3 + $0xb8] sm:$0xff] %vm1107_vm5, %v1058_v43  ;;  %v3718_v60 = vpop.f32.mrb[5].mxu0  ;;  %v2317_v54 = vsel %vm183_vm0, %v3712_v15, 0.0 }
 0x212   : > { %2281 = vst.msk [vmem:[%s3620_s29 + $0x28] sm:$0xff] %vm183_vm0, %v3712_v15  ;;  %2280 = vst.msk [vmem:[%s3620_s29 + $0x20] sm:$0xff] %vm183_vm0, %v3718_v60  ;;  %v2315_v4 = vsel %vm183_vm0, %v3718_v60, 0.0  ;;  %1842 = vrot.lane.b32.xlu0 %v1749_v13, %s2812_s25 }
 0x213   : > { %v1825_v63 = vpop.permute.xlu1 %1824  ;;  %v2316_v10 = vadd.f32 %v2315_v4, %v2314_v50 }
 0x214   : > { %1901 = vst.msk [vmem:[#allocation3 + $0xa0] sm:$0xff] %vm1880_vm9, %v1825_v63  ;;  %v1827_v16 = vpop.permute.xlu0 %1826 }
 0x215   : > { %1264 = vrot.lane.b32.xlu1 %v1748_v11, %s2809_s23  ;;  %1902 = vst.msk [vmem:[#allocation3 + $0xa8] sm:$0xff] %vm1880_vm9, %v1827_v16  ;;  %v2318_v45 = vadd.f32 %v2317_v54, %v2316_v10 }
 0x216   : > { %1458 = vrot.lane.b32.xlu0 %v1364_v57, %s2810_s28 }
 0x217   : > { %v1249_v17 = vpop.permute.xlu1 %1248 }
 0x218   : > { %1323 = vst.msk [vmem:[#allocation3 + $0xb0] sm:$0xff] %vm1300_vm6, %v1249_v17  ;;  %v1251_v52 = vpop.permute.xlu0 %1250 }
 0x219   : > { %1266 = vrot.lane.b32.xlu1 %v1749_v13, %s2809_s23  ;;  %1324 = vst.msk [vmem:[#allocation3 + $0xb8] sm:$0xff] %vm1300_vm6, %v1251_v52  ;;  %s3976_s23 = scalar_lea.vmem %s4102_s3, %s2610_s20 }
 0x21a   : > { %1651 = vrot.lane.b32.xlu0 %v1557_v41, %s2811_s10 }
 0x21b   : > { %v674_v31 = vpop.permute.xlu1 %673  ;;  %v1933_v19 = vld [vmem:[#allocation3 + $0xa0] sm:$0xff] }
 0x21c   : > { %746 = vst.msk [vmem:[#allocation3 + $0xc0] sm:$0xff] %vm721_vm3, %v674_v31  ;;  %2735 = vmatprep.mubr.msk.f32.mxu1 %vm1954_vm10, %v1933_v19  ;;  %v676_v21 = vpop.permute.xlu0 %675  ;;  %v1934_v47 = vld [vmem:[#allocation3 + $0xa8] sm:$0xff] }
 0x21d   : > { %1460 = vrot.lane.b32.xlu1 %v1365_v26, %s2810_s28  ;;  %747 = vst.msk [vmem:[#allocation3 + $0xc8] sm:$0xff] %vm721_vm3, %v676_v21  ;;  %2736 = vmatmul.mubr.msk.f32.gmra.mrb[4].mxu1 %vm1954_vm10, %v1934_v47 }
 0x21e   : > { %1844 = vrot.lane.b32.xlu0 %v1750_v20, %s2812_s25 }
 0x21f   : > { %v1443_v22 = vpop.permute.xlu1 %1442 }
 0x220   : > { %1517 = vst.msk [vmem:[#allocation3 + $0xb0] sm:$0xff] %vm1494_vm7, %v1443_v22  ;;  %v1445_v56 = vpop.permute.xlu0 %1444 }
 0x221   : > { %1653 = vrot.lane.b32.xlu1 %v1558_v48, %s2811_s10  ;;  %1518 = vst.msk [vmem:[#allocation3 + $0xb8] sm:$0xff] %vm1494_vm7, %v1445_v56 }
 0x223   : > { %v867_v8 = vpop.permute.xlu1 %866 }
 0x224   : > { %939 = vst.msk [vmem:[#allocation3 + $0xc0] sm:$0xff] %vm914_vm4, %v867_v8  ;;  %v869_v14 = vpop.permute.xlu0 %868 }
 0x225   : > { %1846 = vrot.lane.b32.xlu1 %v1751_v59, %s2812_s25  ;;  %940 = vst.msk [vmem:[#allocation3 + $0xc8] sm:$0xff] %vm914_vm4, %v869_v14 }
 0x227   : > { %v1636_v62 = vpop.permute.xlu1 %1635 }
 0x228   : > { %1710 = vst.msk [vmem:[#allocation3 + $0xb0] sm:$0xff] %vm1687_vm8, %v1636_v62  ;;  %v1638_v2 = vpop.permute.xlu0 %1637 }
 0x229   : > { %1711 = vst.msk [vmem:[#allocation3 + $0xb8] sm:$0xff] %vm1687_vm8, %v1638_v2 }
 0x22b   : > { %v1060_v23 = vpop.permute.xlu1 %1059 }
 0x22c   : > { %1132 = vst.msk [vmem:[#allocation3 + $0xc0] sm:$0xff] %vm1107_vm5, %v1060_v23  ;;  %v1062_v24 = vpop.permute.xlu0 %1061  ;;  %v3751_v28 = vpop.f32.mrb[6].mxu0 }
 0x22d   : > { %1133 = vst.msk [vmem:[#allocation3 + $0xc8] sm:$0xff] %vm1107_vm5, %v1062_v24  ;;  %v3757_v30 = vpop.f32.mrb[7].mxu0  ;;  %v2321_v51 = vsel %vm183_vm0, %v3751_v28, 0.0 }
 0x22e   : > { %2283 = vst.msk [vmem:[%s3620_s29 + $0x38] sm:$0xff] %vm183_vm0, %v3751_v28  ;;  %2282 = vst.msk [vmem:[%s3620_s29 + $0x30] sm:$0xff] %vm183_vm0, %v3757_v30  ;;  %v2319_v1 = vsel %vm183_vm0, %v3757_v30, 0.0 }
 0x22f   : > { %v1829_v38 = vpop.permute.xlu1 %1828  ;;  %v2320_v29 = vadd.f32 %v2319_v1, %v2318_v45 }
 0x230   : > { %1903 = vst.msk [vmem:[#allocation3 + $0xb0] sm:$0xff] %vm1880_vm9, %v1829_v38  ;;  %v1831_v35 = vpop.permute.xlu0 %1830 }
 0x231   : > { %1904 = vst.msk [vmem:[#allocation3 + $0xb8] sm:$0xff] %vm1880_vm9, %v1831_v35  ;;  %v2322_v36 = vadd.f32 %v2321_v51, %v2320_v29 }
 0x233   : > { %v1253_v37 = vpop.permute.xlu1 %1252 }
 0x234   : > { %1325 = vst.msk [vmem:[#allocation3 + $0xc0] sm:$0xff] %vm1300_vm6, %v1253_v37  ;;  %v1255_v39 = vpop.permute.xlu0 %1254 }
 0x235   : > { %1326 = vst.msk [vmem:[#allocation3 + $0xc8] sm:$0xff] %vm1300_vm6, %v1255_v39 }
 0x237   : > { %v678_v46 = vpop.permute.xlu1 %677  ;;  %v1935_v50 = vld [vmem:[#allocation3 + $0xb0] sm:$0xff] }
 0x238   : > { %748 = vst.msk [vmem:[#allocation3 + $0xd0] sm:$0xff] %vm721_vm3, %v678_v46  ;;  %2738 = vmatprep.mubr.msk.f32.mxu1 %vm1954_vm10, %v1935_v50  ;;  %v680_v58 = vpop.permute.xlu0 %679  ;;  %v1936_v61 = vld [vmem:[#allocation3 + $0xb8] sm:$0xff] }
 0x239   : > { %749 = vst.msk [vmem:[#allocation3 + $0xd8] sm:$0xff] %vm721_vm3, %v680_v58  ;;  %2739 = vmatmul.mubr.msk.f32.gmra.mrb[6].mxu1 %vm1954_vm10, %v1936_v61 }
 0x23b   : > { %v1447_v0 = vpop.permute.xlu1 %1446 }
 0x23c   : > { %1519 = vst.msk [vmem:[#allocation3 + $0xc0] sm:$0xff] %vm1494_vm7, %v1447_v0  ;;  %v1449_v6 = vpop.permute.xlu0 %1448 }
 0x23d   : > { %1520 = vst.msk [vmem:[#allocation3 + $0xc8] sm:$0xff] %vm1494_vm7, %v1449_v6 }
 0x23f   : > { %v871_v55 = vpop.permute.xlu1 %870 }
 0x240   : > { %941 = vst.msk [vmem:[#allocation3 + $0xd0] sm:$0xff] %vm914_vm4, %v871_v55  ;;  %v873_v49 = vpop.permute.xlu0 %872 }
 0x241   : > { %942 = vst.msk [vmem:[#allocation3 + $0xd8] sm:$0xff] %vm914_vm4, %v873_v49 }
 0x243   : > { %v1640_v40 = vpop.permute.xlu1 %1639 }
 0x244   : > { %1712 = vst.msk [vmem:[#allocation3 + $0xc0] sm:$0xff] %vm1687_vm8, %v1640_v40  ;;  %v1642_v42 = vpop.permute.xlu0 %1641 }
 0x245   : > { %1713 = vst.msk [vmem:[#allocation3 + $0xc8] sm:$0xff] %vm1687_vm8, %v1642_v42 }
 0x247   : > { %v1064_v53 = vpop.permute.xlu1 %1063 }
 0x248   : > { %1134 = vst.msk [vmem:[#allocation3 + $0xd0] sm:$0xff] %vm1107_vm5, %v1064_v53  ;;  %v1066_v5 = vpop.permute.xlu0 %1065  ;;  %v3781_v3 = vpop.f32.mrb[8].mxu0 }
 0x249   : > { %1135 = vst.msk [vmem:[#allocation3 + $0xd8] sm:$0xff] %vm1107_vm5, %v1066_v5  ;;  %v3787_v32 = vpop.f32.mrb[9].mxu0  ;;  %v2325_v44 = vsel %vm183_vm0, %v3781_v3, 0.0 }
 0x24a   : > { %2285 = vst.msk [vmem:[%s3620_s29 + $0x48] sm:$0xff] %vm183_vm0, %v3781_v3  ;;  %2284 = vst.msk [vmem:[%s3620_s29 + $0x40] sm:$0xff] %vm183_vm0, %v3787_v32  ;;  %v2323_v25 = vsel %vm183_vm0, %v3787_v32, 0.0 }
 0x24b   : > { %v1833_v27 = vpop.permute.xlu1 %1832  ;;  %v2324_v7 = vadd.f32 %v2323_v25, %v2322_v36 }
 0x24c   : > { %1905 = vst.msk [vmem:[#allocation3 + $0xc0] sm:$0xff] %vm1880_vm9, %v1833_v27  ;;  %v1835_v11 = vpop.permute.xlu0 %1834 }
 0x24d   : > { %1906 = vst.msk [vmem:[#allocation3 + $0xc8] sm:$0xff] %vm1880_vm9, %v1835_v11  ;;  %v2326_v12 = vadd.f32 %v2325_v44, %v2324_v7 }
 0x24f   : > { %v1257_v13 = vpop.permute.xlu1 %1256 }
 0x250   : > { %1327 = vst.msk [vmem:[#allocation3 + $0xd0] sm:$0xff] %vm1300_vm6, %v1257_v13  ;;  %v1259_v43 = vpop.permute.xlu0 %1258 }
 0x251   : > { %1328 = vst.msk [vmem:[#allocation3 + $0xd8] sm:$0xff] %vm1300_vm6, %v1259_v43 }
 0x253   : > { %v682_v54 = vpop.permute.xlu1 %681  ;;  %v1937_v4 = vld [vmem:[#allocation3 + $0xc0] sm:$0xff] }
 0x254   : > { %750 = vst.msk [vmem:[#allocation3 + $0xe0] sm:$0xff] %vm721_vm3, %v682_v54  ;;  %2741 = vmatprep.mubr.msk.f32.mxu1 %vm1954_vm10, %v1937_v4  ;;  %v684_v63 = vpop.permute.xlu0 %683  ;;  %v1938_v10 = vld [vmem:[#allocation3 + $0xc8] sm:$0xff] }
 0x255   : > { %751 = vst.msk [vmem:[#allocation3 + $0xe8] sm:$0xff] %vm721_vm3, %v684_v63  ;;  %2742 = vmatmul.mubr.msk.f32.gmra.mrb[8].mxu1 %vm1954_vm10, %v1938_v10 }
 0x257   : > { %v1451_v57 = vpop.permute.xlu1 %1450 }
 0x258   : > { %1521 = vst.msk [vmem:[#allocation3 + $0xd0] sm:$0xff] %vm1494_vm7, %v1451_v57  ;;  %v1453_v16 = vpop.permute.xlu0 %1452 }
 0x259   : > { %1522 = vst.msk [vmem:[#allocation3 + $0xd8] sm:$0xff] %vm1494_vm7, %v1453_v16 }
 0x25b   : > { %v875_v45 = vpop.permute.xlu1 %874 }
 0x25c   : > { %943 = vst.msk [vmem:[#allocation3 + $0xe0] sm:$0xff] %vm914_vm4, %v875_v45  ;;  %v877_v17 = vpop.permute.xlu0 %876 }
 0x25d   : > { %944 = vst.msk [vmem:[#allocation3 + $0xe8] sm:$0xff] %vm914_vm4, %v877_v17 }
 0x25f   : > { %v1644_v41 = vpop.permute.xlu1 %1643 }
 0x260   : > { %1714 = vst.msk [vmem:[#allocation3 + $0xd0] sm:$0xff] %vm1687_vm8, %v1644_v41  ;;  %v1646_v52 = vpop.permute.xlu0 %1645 }
 0x261   : > { %1715 = vst.msk [vmem:[#allocation3 + $0xd8] sm:$0xff] %vm1687_vm8, %v1646_v52 }
 0x263   : > { %v1068_v26 = vpop.permute.xlu1 %1067 }
 0x264   : > { %1136 = vst.msk [vmem:[#allocation3 + $0xe0] sm:$0xff] %vm1107_vm5, %v1068_v26  ;;  %v1070_v31 = vpop.permute.xlu0 %1069  ;;  %v3811_v19 = vpop.f32.mrb[10].mxu0 }
 0x265   : > { %1137 = vst.msk [vmem:[#allocation3 + $0xe8] sm:$0xff] %vm1107_vm5, %v1070_v31  ;;  %v3817_v20 = vpop.f32.mrb[11].mxu0  ;;  %v2329_v21 = vsel %vm183_vm0, %v3811_v19, 0.0 }
 0x266   : > { %2287 = vst.msk [vmem:[%s3620_s29 + $0x58] sm:$0xff] %vm183_vm0, %v3811_v19  ;;  %2286 = vst.msk [vmem:[%s3620_s29 + $0x50] sm:$0xff] %vm183_vm0, %v3817_v20  ;;  %v2327_v47 = vsel %vm183_vm0, %v3817_v20, 0.0 }
 0x267   : > { %v1837_v48 = vpop.permute.xlu1 %1836  ;;  %v2328_v22 = vadd.f32 %v2327_v47, %v2326_v12 }
 0x268   : > { %1907 = vst.msk [vmem:[#allocation3 + $0xd0] sm:$0xff] %vm1880_vm9, %v1837_v48  ;;  %v1839_v56 = vpop.permute.xlu0 %1838 }
 0x269   : > { %1908 = vst.msk [vmem:[#allocation3 + $0xd8] sm:$0xff] %vm1880_vm9, %v1839_v56  ;;  %v2330_v59 = vadd.f32 %v2329_v21, %v2328_v22 }
 0x26b   : > { %v1261_v8 = vpop.permute.xlu1 %1260 }
 0x26c   : > { %1329 = vst.msk [vmem:[#allocation3 + $0xe0] sm:$0xff] %vm1300_vm6, %v1261_v8  ;;  %v1263_v14 = vpop.permute.xlu0 %1262 }
 0x26d   : > { %1330 = vst.msk [vmem:[#allocation3 + $0xe8] sm:$0xff] %vm1300_vm6, %v1263_v14 }
 0x26f   : > { %v686_v62 = vpop.permute.xlu1 %685  ;;  %v1939_v2 = vld [vmem:[#allocation3 + $0xd0] sm:$0xff] }
 0x270   : > { %752 = vst.msk [vmem:[#allocation3 + $0xf0] sm:$0xff] %vm721_vm3, %v686_v62  ;;  %2744 = vmatprep.mubr.msk.f32.mxu1 %vm1954_vm10, %v1939_v2  ;;  %v688_v23 = vpop.permute.xlu0 %687  ;;  %v1940_v24 = vld [vmem:[#allocation3 + $0xd8] sm:$0xff] }
 0x271   : > { %753 = vst.msk [vmem:[#allocation3 + $0xf8] sm:$0xff] %vm721_vm3, %v688_v23  ;;  %2745 = vmatmul.mubr.msk.f32.gmra.mrb[10].mxu1 %vm1954_vm10, %v1940_v24 }
 0x273   : > { %v1455_v51 = vpop.permute.xlu1 %1454 }
 0x274   : > { %1523 = vst.msk [vmem:[#allocation3 + $0xe0] sm:$0xff] %vm1494_vm7, %v1455_v51  ;;  %v1457_v1 = vpop.permute.xlu0 %1456 }
 0x275   : > { %1524 = vst.msk [vmem:[#allocation3 + $0xe8] sm:$0xff] %vm1494_vm7, %v1457_v1 }
 0x277   : > { %v879_v38 = vpop.permute.xlu1 %878 }
 0x278   : > { %945 = vst.msk [vmem:[#allocation3 + $0xf0] sm:$0xff] %vm914_vm4, %v879_v38  ;;  %v881_v29 = vpop.permute.xlu0 %880 }
 0x279   : > { %946 = vst.msk [vmem:[#allocation3 + $0xf8] sm:$0xff] %vm914_vm4, %v881_v29 }
 0x27b   : > { %v1648_v35 = vpop.permute.xlu1 %1647 }
 0x27c   : > { %1716 = vst.msk [vmem:[#allocation3 + $0xe0] sm:$0xff] %vm1687_vm8, %v1648_v35  ;;  %v1650_v36 = vpop.permute.xlu0 %1649 }
 0x27d   : > { %1717 = vst.msk [vmem:[#allocation3 + $0xe8] sm:$0xff] %vm1687_vm8, %v1650_v36 }
 0x27f   : > { %v1072_v37 = vpop.permute.xlu1 %1071 }
 0x280   : > { %1138 = vst.msk [vmem:[#allocation3 + $0xf0] sm:$0xff] %vm1107_vm5, %v1072_v37  ;;  %v1074_v39 = vpop.permute.xlu0 %1073  ;;  %v3841_v46 = vpop.f32.mrb[12].mxu0 }
 0x281   : > { %1139 = vst.msk [vmem:[#allocation3 + $0xf8] sm:$0xff] %vm1107_vm5, %v1074_v39  ;;  %v3847_v50 = vpop.f32.mrb[13].mxu0  ;;  %v2333_v58 = vsel %vm183_vm0, %v3841_v46, 0.0 }
 0x282   : > { %2289 = vst.msk [vmem:[%s3620_s29 + $0x68] sm:$0xff] %vm183_vm0, %v3841_v46  ;;  %2288 = vst.msk [vmem:[%s3620_s29 + $0x60] sm:$0xff] %vm183_vm0, %v3847_v50  ;;  %v2331_v61 = vsel %vm183_vm0, %v3847_v50, 0.0 }
 0x283   : > { %v1841_v0 = vpop.permute.xlu1 %1840  ;;  %v2332_v6 = vadd.f32 %v2331_v61, %v2330_v59 }
 0x284   : > { %1909 = vst.msk [vmem:[#allocation3 + $0xe0] sm:$0xff] %vm1880_vm9, %v1841_v0  ;;  %v1843_v55 = vpop.permute.xlu0 %1842 }
 0x285   : > { %1910 = vst.msk [vmem:[#allocation3 + $0xe8] sm:$0xff] %vm1880_vm9, %v1843_v55  ;;  %v2334_v49 = vadd.f32 %v2333_v58, %v2332_v6 }
 0x287   : > { %v1265_v40 = vpop.permute.xlu1 %1264 }
 0x288   : > { %1331 = vst.msk [vmem:[#allocation3 + $0xf0] sm:$0xff] %vm1300_vm6, %v1265_v40  ;;  %v1459_v42 = vpop.permute.xlu0 %1458 }
 0x289   : > { %1525 = vst.msk [vmem:[#allocation3 + $0xf0] sm:$0xff] %vm1494_vm7, %v1459_v42 }
 0x28b   : > { %v1267_v53 = vpop.permute.xlu1 %1266  ;;  %v1941_v5 = vld [vmem:[#allocation3 + $0xe0] sm:$0xff] }
 0x28c   : > { %1332 = vst.msk [vmem:[#allocation3 + $0xf8] sm:$0xff] %vm1300_vm6, %v1267_v53  ;;  %2747 = vmatprep.mubr.msk.f32.mxu1 %vm1954_vm10, %v1941_v5  ;;  %v1942_v44 = vld [vmem:[#allocation3 + $0xe8] sm:$0xff]  ;;  %v1652_v25 = vpop.permute.xlu0 %1651 }
 0x28d   : > { %2748 = vmatmul.mubr.msk.f32.gmra.mrb[12].mxu1 %vm1954_vm10, %v1942_v44  ;;  %1718 = vst.msk [vmem:[#allocation3 + $0xf0] sm:$0xff] %vm1687_vm8, %v1652_v25 }
 0x28f   : > { %v1461_v27 = vpop.permute.xlu1 %1460 }
 0x290   : > { %1526 = vst.msk [vmem:[#allocation3 + $0xf8] sm:$0xff] %vm1494_vm7, %v1461_v27  ;;  %v1845_v7 = vpop.permute.xlu0 %1844 }
 0x291   : > { %1911 = vst.msk [vmem:[#allocation3 + $0xf0] sm:$0xff] %vm1880_vm9, %v1845_v7 }
 0x293   : > { %v1654_v11 = vpop.permute.xlu1 %1653 }
 0x294   : > { %1719 = vst.msk [vmem:[#allocation3 + $0xf8] sm:$0xff] %vm1687_vm8, %v1654_v11 }
 0x297   : > { %v1847_v12 = vpop.permute.xlu1 %1846 }
 0x298   : > { %1912 = vst.msk [vmem:[#allocation3 + $0xf8] sm:$0xff] %vm1880_vm9, %v1847_v12  ;;  %v1943_v13 = vld [vmem:[#allocation3 + $0xf0] sm:$0xff] }
 0x299   : > { %2750 = vmatprep.mubr.msk.f32.mxu1 %vm1954_vm10, %v1943_v13 }
 0x29c   : > { %v3869_v43 = vpop.f32.mrb[14].mxu0 }
 0x29d   : > { %2291 = vst.msk [vmem:[%s3620_s29 + $0x78] sm:$0xff] %vm183_vm0, %v3869_v43  ;;  %v3874_v54 = vpop.f32.mrb[15].mxu0  ;;  %v2337_v4 = vsel %vm183_vm0, %v3869_v43, 0.0 }
 0x29e   : > { %2290 = vst.msk [vmem:[%s3620_s29 + $0x70] sm:$0xff] %vm183_vm0, %v3874_v54  ;;  %v2335_v63 = vsel %vm183_vm0, %v3874_v54, 0.0 }
 0x29f   : > { %v1944_v10 = vld [vmem:[#allocation3 + $0xf8] sm:$0xff]  ;;  %v2336_v57 = vadd.f32 %v2335_v63, %v2334_v49 }
 0x2a0   : > { %2751 = vmatmul.mubr.msk.f32.gmra.mrb[14].mxu1 %vm1954_vm10, %v1944_v10 }
 0x2a1   : > { %v2338_v16 = vadd.f32 %v2337_v4, %v2336_v57 }
 0x2b8   : > { %v3884_v45 = vpop.f32.mrb[0].mxu1 }
 0x2b9   : > { %2293 = vst.msk [vmem:[%s3620_s29 + $0x88] sm:$0xff] %vm183_vm0, %v3884_v45  ;;  %v3889_v17 = vpop.f32.mrb[1].mxu1  ;;  %v2341_v41 = vsel %vm183_vm0, %v3884_v45, 0.0 }
 0x2ba   : > { %2292 = vst.msk [vmem:[%s3620_s29 + $0x80] sm:$0xff] %vm183_vm0, %v3889_v17  ;;  %v2339_v52 = vsel %vm183_vm0, %v3889_v17, 0.0 }
 0x2bb   : > { %v2340_v26 = vadd.f32 %v2339_v52, %v2338_v16 }
 0x2bd   : > { %v2342_v31 = vadd.f32 %v2341_v41, %v2340_v26 }
 0x2d4   : > { %v3898_v21 = vpop.f32.mrb[2].mxu1 }
 0x2d5   : > { %2295 = vst.msk [vmem:[%s3620_s29 + $0x98] sm:$0xff] %vm183_vm0, %v3898_v21  ;;  %v3903_v47 = vpop.f32.mrb[3].mxu1  ;;  %v2345_v48 = vsel %vm183_vm0, %v3898_v21, 0.0 }
 0x2d6   : > { %2294 = vst.msk [vmem:[%s3620_s29 + $0x90] sm:$0xff] %vm183_vm0, %v3903_v47  ;;  %v2343_v22 = vsel %vm183_vm0, %v3903_v47, 0.0 }
 0x2d7   : > { %v2344_v56 = vadd.f32 %v2343_v22, %v2342_v31 }
 0x2d9   : > { %v2346_v59 = vadd.f32 %v2345_v48, %v2344_v56 }
 0x2f0   : > { %v3912_v8 = vpop.f32.mrb[4].mxu1 }
 0x2f1   : > { %2297 = vst.msk [vmem:[%s3620_s29 + $0xa8] sm:$0xff] %vm183_vm0, %v3912_v8  ;;  %v3917_v14 = vpop.f32.mrb[5].mxu1  ;;  %v2349_v62 = vsel %vm183_vm0, %v3912_v8, 0.0 }
 0x2f2   : > { %2296 = vst.msk [vmem:[%s3620_s29 + $0xa0] sm:$0xff] %vm183_vm0, %v3917_v14  ;;  %v2347_v2 = vsel %vm183_vm0, %v3917_v14, 0.0 }
 0x2f3   : > { %v2348_v23 = vadd.f32 %v2347_v2, %v2346_v59 }
 0x2f5   : > { %v2350_v24 = vadd.f32 %v2349_v62, %v2348_v23 }
 0x30c   : > { %v3926_v51 = vpop.f32.mrb[6].mxu1 }
 0x30d   : > { %2299 = vst.msk [vmem:[%s3620_s29 + $0xb8] sm:$0xff] %vm183_vm0, %v3926_v51  ;;  %v3931_v1 = vpop.f32.mrb[7].mxu1  ;;  %v2353_v38 = vsel %vm183_vm0, %v3926_v51, 0.0 }
 0x30e   : > { %2298 = vst.msk [vmem:[%s3620_s29 + $0xb0] sm:$0xff] %vm183_vm0, %v3931_v1  ;;  %v2351_v29 = vsel %vm183_vm0, %v3931_v1, 0.0 }
 0x30f   : > { %v2352_v35 = vadd.f32 %v2351_v29, %v2350_v24 }
 0x311   : > { %v2354_v36 = vadd.f32 %v2353_v38, %v2352_v35 }
 0x328   : > { %v3940_v37 = vpop.f32.mrb[8].mxu1 }
 0x329   : > { %2301 = vst.msk [vmem:[%s3620_s29 + $0xc8] sm:$0xff] %vm183_vm0, %v3940_v37  ;;  %v3945_v39 = vpop.f32.mrb[9].mxu1  ;;  %v2357_v58 = vsel %vm183_vm0, %v3940_v37, 0.0 }
 0x32a   : > { %2300 = vst.msk [vmem:[%s3620_s29 + $0xc0] sm:$0xff] %vm183_vm0, %v3945_v39  ;;  %v2355_v61 = vsel %vm183_vm0, %v3945_v39, 0.0 }
 0x32b   : > { %v2356_v0 = vadd.f32 %v2355_v61, %v2354_v36 }
 0x32d   : > { %v2358_v6 = vadd.f32 %v2357_v58, %v2356_v0 }
 0x344   : > { %v2746_v55 = vpop.f32.mrb[10].mxu1 }
 0x345   : > { %2303 = vst.msk [vmem:[%s3620_s29 + $0xd8] sm:$0xff] %vm183_vm0, %v2746_v55  ;;  %v2247_v49 = vpop.f32.mrb[11].mxu1  ;;  %v2361_v40 = vsel %vm183_vm0, %v2746_v55, 0.0 }
 0x346   : > { %2302 = vst.msk [vmem:[%s3620_s29 + $0xd0] sm:$0xff] %vm183_vm0, %v2247_v49  ;;  %v2359_v42 = vsel %vm183_vm0, %v2247_v49, 0.0 }
 0x347   : > { %v2360_v53 = vadd.f32 %v2359_v42, %v2358_v6 }
 0x349   : > { %v2362_v5 = vadd.f32 %v2361_v40, %v2360_v53 }
 0x360   : > { %v2749_v44 = vpop.f32.mrb[12].mxu1 }
 0x361   : > { %2305 = vst.msk [vmem:[%s3620_s29 + $0xe8] sm:$0xff] %vm183_vm0, %v2749_v44  ;;  %v2257_v25 = vpop.f32.mrb[13].mxu1  ;;  %v2365_v27 = vsel %vm183_vm0, %v2749_v44, 0.0 }
 0x362   : > { %2304 = vst.msk [vmem:[%s3620_s29 + $0xe0] sm:$0xff] %vm183_vm0, %v2257_v25  ;;  %v2363_v7 = vsel %vm183_vm0, %v2257_v25, 0.0 }
 0x363   : > { %v2364_v11 = vadd.f32 %v2363_v7, %v2362_v5 }
 0x365   : > { %v2366_v12 = vadd.f32 %v2365_v27, %v2364_v11 }
 0x373   : > { %v2752_v13 = vpop.f32.mrb[14].mxu1 }
 0x374   : > { %2307 = vst.msk [vmem:[%s3620_s29 + $0xf8] sm:$0xff] %vm183_vm0, %v2752_v13  ;;  %v2267_v4 = vpop.f32.mrb[15].mxu1  ;;  %v2369_v57 = vsel %vm183_vm0, %v2752_v13, 0.0 }
 0x375   : > { %2306 = vst.msk [vmem:[%s3620_s29 + $0xf0] sm:$0xff] %vm183_vm0, %v2267_v4  ;;  %v2367_v63 = vsel %vm183_vm0, %v2267_v4, 0.0 }
 0x376   : > { %v2368_v10 = vadd.f32 %v2367_v63, %v2366_v12 }
 0x378   : > { %v2370_v16 = vadd.f32 %v2369_v57, %v2368_v10 }
 0x37a   : > { %v2371_v41 = vrot.slane %v2370_v16, 4 }
 0x37c   : > { %v2372_v52 = vadd.f32 %v2371_v41, %v2370_v16 }
 0x37e   : > { %v2373_v26 = vrot.slane %v2372_v52, 2 }
 0x380   : > { %v2374_v31 = vadd.f32 %v2373_v26, %v2372_v52 }
 0x382   : > { %v2375_v48 = vrot.slane %v2374_v31, 1 }
 0x384   : > { %v2376_v22 = vadd.f32 %v2375_v48, %v2374_v31 }
 0x386   : > { %v2377_v56 = vmul.f32 0.00390625, %v2376_v22 }
 0x388   : > { %v2378_v59 = vsub.f32 %v3632_v18, %v2377_v56  ;;  %v2379_v62 = vsub.f32 %v3624_v9, %v2377_v56  ;;  %v2380_v2 = vsub.f32 %v3674_v34, %v2377_v56  ;;  %v2381_v23 = vsub.f32 %v3668_v33, %v2377_v56  ;;  %2512 = vst.msk [vmem:[%s3976_s23] sm:$0x1] %vm2511_vm11, %v2377_v56 }
 0x389   : > { %v2382_v24 = vsub.f32 %v3718_v60, %v2377_v56  ;;  %v2383_v38 = vsub.f32 %v3712_v15, %v2377_v56  ;;  %v2384_v29 = vsub.f32 %v3757_v30, %v2377_v56  ;;  %v2385_v35 = vsub.f32 %v3751_v28, %v2377_v56 }
 0x38a   : > { %v2386_v36 = vsub.f32 %v3787_v32, %v2377_v56  ;;  %v2387_v18 = vsub.f32 %v3781_v3, %v2377_v56  ;;  %v2388_v9 = vsub.f32 %v3817_v20, %v2377_v56  ;;  %v2389_v34 = vsub.f32 %v3811_v19, %v2377_v56 }
 0x38b   : > { %v2390_v33 = vsub.f32 %v3847_v50, %v2377_v56  ;;  %v2391_v58 = vsub.f32 %v3841_v46, %v2377_v56  ;;  %v2392_v60 = vsub.f32 %v3874_v54, %v2377_v56  ;;  %v2393_v15 = vsub.f32 %v3869_v43, %v2377_v56 }
 0x38c   : > { %v2394_v30 = vsub.f32 %v3889_v17, %v2377_v56  ;;  %v2395_v28 = vsub.f32 %v3884_v45, %v2377_v56  ;;  %v3999_v32 = vsub.f32 %v3903_v47, %v2377_v56  ;;  %v4002_v3 = vsub.f32 %v3898_v21, %v2377_v56 }
 0x38d   : > { %v4005_v19 = vsub.f32 %v3917_v14, %v2377_v56  ;;  %v4008_v20 = vsub.f32 %v3912_v8, %v2377_v56  ;;  %v4011_v46 = vsub.f32 %v3931_v1, %v2377_v56  ;;  %v4014_v50 = vsub.f32 %v3926_v51, %v2377_v56 }
 0x38e   : > { %v4017_v43 = vsub.f32 %v3945_v39, %v2377_v56  ;;  %v4020_v54 = vsub.f32 %v3940_v37, %v2377_v56  ;;  %v4022_v45 = vsub.f32 %v2247_v49, %v2377_v56  ;;  %v4024_v17 = vsub.f32 %v2746_v55, %v2377_v56 }
 0x38f   : > { %v4026_v21 = vsub.f32 %v2257_v25, %v2377_v56  ;;  %v4028_v47 = vsub.f32 %v2749_v44, %v2377_v56  ;;  %v4030_v8 = vsub.f32 %v2267_v4, %v2377_v56  ;;  %v4032_v14 = vsub.f32 %v2752_v13, %v2377_v56 }
 0x390   : > { %v2410_v51 = vmul.f32 %v2378_v59, %v2378_v59  ;;  %v2411_v1 = vmul.f32 %v2379_v62, %v2379_v62  ;;  %v2412_v61 = vmul.f32 %v2380_v2, %v2380_v2  ;;  %v2413_v39 = vmul.f32 %v2381_v23, %v2381_v23 }
 0x391   : > { %v2414_v49 = vmul.f32 %v2382_v24, %v2382_v24  ;;  %v2415_v42 = vmul.f32 %v2383_v38, %v2383_v38  ;;  %v2416_v44 = vmul.f32 %v2384_v29, %v2384_v29  ;;  %v2417_v7 = vmul.f32 %v2385_v35, %v2385_v35 }
 0x392   : > { %v2442_v0 = vsel %vm183_vm0, %v2410_v51, 0.0  ;;  %v2443_v37 = vsel %vm183_vm0, %v2411_v1, 0.0  ;;  %v2445_v55 = vsel %vm183_vm0, %v2412_v61, 0.0  ;;  %v2447_v53 = vsel %vm183_vm0, %v2413_v39, 0.0 }
 0x393   : > { %v2444_v6 = vadd.f32 %v2443_v37, %v2442_v0  ;;  %v2449_v25 = vsel %vm183_vm0, %v2414_v49, 0.0  ;;  %v2451_v11 = vsel %vm183_vm0, %v2415_v42, 0.0  ;;  %v2418_v13 = vmul.f32 %v2386_v36, %v2386_v36 }
 0x394   : > { %v2453_v4 = vsel %vm183_vm0, %v2416_v44, 0.0  ;;  %v2419_v10 = vmul.f32 %v2387_v18, %v2387_v18  ;;  %v2455_v57 = vsel %vm183_vm0, %v2417_v7, 0.0  ;;  %v2420_v41 = vmul.f32 %v2388_v9, %v2388_v9 }
 0x395   : > { %v2446_v40 = vadd.f32 %v2445_v55, %v2444_v6  ;;  %v2457_v52 = vsel %vm183_vm0, %v2418_v13, 0.0  ;;  %v2421_v31 = vmul.f32 %v2389_v34, %v2389_v34  ;;  %v2422_v56 = vmul.f32 %v2390_v33, %v2390_v33 }
 0x396   : > { %v2459_v48 = vsel %vm183_vm0, %v2419_v10, 0.0  ;;  %v2461_v59 = vsel %vm183_vm0, %v2420_v41, 0.0  ;;  %v2423_v2 = vmul.f32 %v2391_v58, %v2391_v58  ;;  %v2424_v38 = vmul.f32 %v2392_v60, %v2392_v60 }
 0x397   : > { %v2448_v5 = vadd.f32 %v2447_v53, %v2446_v40  ;;  %v2463_v23 = vsel %vm183_vm0, %v2421_v31, 0.0  ;;  %v2465_v29 = vsel %vm183_vm0, %v2422_v56, 0.0  ;;  %v2425_v36 = vmul.f32 %v2393_v15, %v2393_v15 }
 0x398   : > { %v2467_v18 = vsel %vm183_vm0, %v2423_v2, 0.0  ;;  %v2426_v34 = vmul.f32 %v2394_v30, %v2394_v30  ;;  %v2469_v51 = vsel %vm183_vm0, %v2424_v38, 0.0  ;;  %v2427_v33 = vmul.f32 %v2395_v28, %v2395_v28 }
 0x399   : > { %v2450_v27 = vadd.f32 %v2449_v25, %v2448_v5  ;;  %v2471_v61 = vsel %vm183_vm0, %v2425_v36, 0.0  ;;  %v2428_v58 = vmul.f32 %v3999_v32, %v3999_v32  ;;  %v2429_v15 = vmul.f32 %v4002_v3, %v4002_v3 }
 0x39a   : > { %v2473_v60 = vsel %vm183_vm0, %v2426_v34, 0.0  ;;  %v2475_v37 = vsel %vm183_vm0, %v2427_v33, 0.0  ;;  %v2430_v30 = vmul.f32 %v4005_v19, %v4005_v19  ;;  %v2431_v55 = vmul.f32 %v4008_v20, %v4008_v20 }
 0x39b   : > { %v2452_v12 = vadd.f32 %v2451_v11, %v2450_v27  ;;  %v2477_v28 = vsel %vm183_vm0, %v2428_v58, 0.0  ;;  %v2479_v32 = vsel %vm183_vm0, %v2429_v15, 0.0  ;;  %v2432_v42 = vmul.f32 %v4011_v46, %v4011_v46 }
 0x39c   : > { %v2481_v3 = vsel %vm183_vm0, %v2430_v30, 0.0  ;;  %v2433_v5 = vmul.f32 %v4014_v50, %v4014_v50  ;;  %v2483_v19 = vsel %vm183_vm0, %v2431_v55, 0.0  ;;  %v2434_v25 = vmul.f32 %v4017_v43, %v4017_v43 }
 0x39d   : > { %v2454_v63 = vadd.f32 %v2453_v4, %v2452_v12  ;;  %v2485_v20 = vsel %vm183_vm0, %v2432_v42, 0.0  ;;  %v2435_v7 = vmul.f32 %v4020_v54, %v4020_v54  ;;  %v2436_v12 = vmul.f32 %v4022_v45, %v4022_v45 }
 0x39e   : > { %v2487_v46 = vsel %vm183_vm0, %v2433_v5, 0.0  ;;  %v2489_v50 = vsel %vm183_vm0, %v2434_v25, 0.0  ;;  %v2437_v4 = vmul.f32 %v4024_v17, %v4024_v17  ;;  %v2438_v10 = vmul.f32 %v4026_v21, %v4026_v21 }
 0x39f   : > { %v2456_v16 = vadd.f32 %v2455_v57, %v2454_v63  ;;  %v2491_v43 = vsel %vm183_vm0, %v2435_v7, 0.0  ;;  %v2493_v54 = vsel %vm183_vm0, %v2436_v12, 0.0  ;;  %v2441_v31 = vmul.f32 %v4032_v14, %v4032_v14 }
 0x3a0   : > { %v2495_v45 = vsel %vm183_vm0, %v2437_v4, 0.0  ;;  %v2497_v17 = vsel %vm183_vm0, %v2438_v10, 0.0 }
 0x3a1   : > { %v2458_v26 = vadd.f32 %v2457_v52, %v2456_v16  ;;  %v2439_v16 = vmul.f32 %v4028_v47, %v4028_v47  ;;  %v2440_v52 = vmul.f32 %v4030_v8, %v4030_v8  ;;  %v2503_v47 = vsel %vm183_vm0, %v2441_v31, 0.0 }
 0x3a3   : > { %v2460_v22 = vadd.f32 %v2459_v48, %v2458_v26  ;;  %v2499_v21 = vsel %vm183_vm0, %v2439_v16, 0.0 }
 0x3a5   : > { %v2462_v62 = vadd.f32 %v2461_v59, %v2460_v22  ;;  %v2501_v22 = vsel %vm183_vm0, %v2440_v52, 0.0 }
 0x3a7   : > { %v2464_v24 = vadd.f32 %v2463_v23, %v2462_v62 }
 0x3a9   : > { %v2466_v35 = vadd.f32 %v2465_v29, %v2464_v24 }
 0x3ab   : > { %v2468_v9 = vadd.f32 %v2467_v18, %v2466_v35 }
 0x3ad   : > { %v2470_v1 = vadd.f32 %v2469_v51, %v2468_v9 }
 0x3af   : > { %v2472_v39 = vadd.f32 %v2471_v61, %v2470_v1 }
 0x3b1   : > { %v2474_v0 = vadd.f32 %v2473_v60, %v2472_v39 }
 0x3b3   : > { %v2476_v6 = vadd.f32 %v2475_v37, %v2474_v0 }
 0x3b5   : > { %v2478_v49 = vadd.f32 %v2477_v28, %v2476_v6 }
 0x3b7   : > { %v2480_v40 = vadd.f32 %v2479_v32, %v2478_v49 }
 0x3b9   : > { %v2482_v53 = vadd.f32 %v2481_v3, %v2480_v40 }
 0x3bb   : > { %v2484_v44 = vadd.f32 %v2483_v19, %v2482_v53 }
 0x3bd   : > { %v2486_v27 = vadd.f32 %v2485_v20, %v2484_v44 }
 0x3bf   : > { %v2488_v11 = vadd.f32 %v2487_v46, %v2486_v27 }
 0x3c1   : > { %v2490_v13 = vadd.f32 %v2489_v50, %v2488_v11 }
 0x3c3   : > { %v2492_v63 = vadd.f32 %v2491_v43, %v2490_v13 }
 0x3c5   : > { %v2494_v57 = vadd.f32 %v2493_v54, %v2492_v63 }
 0x3c7   : > { %v2496_v41 = vadd.f32 %v2495_v45, %v2494_v57 }
 0x3c9   : > { %v2498_v26 = vadd.f32 %v2497_v17, %v2496_v41 }
 0x3cb   : > { %v2500_v48 = vadd.f32 %v2499_v21, %v2498_v26 }
 0x3cd   : > { %v2502_v56 = vadd.f32 %v2501_v22, %v2500_v48 }
 0x3cf   : > { %v2504_v59 = vadd.f32 %v2503_v47, %v2502_v56 }
 0x3d1   : > { %v2505_v62 = vrot.slane %v2504_v59, 4 }
 0x3d3   : > { %v2506_v2 = vadd.f32 %v2505_v62, %v2504_v59 }
 0x3d5   : > { %v2507_v23 = vrot.slane %v2506_v2, 2 }
 0x3d7   : > { %v2508_v8 = vadd.f32 %v2507_v23, %v2506_v2 }
 0x3d9   : > { %v2509_v24 = vrot.slane %v2508_v8, 1 }
 0x3db   : > { %v2510_v38 = vadd.f32 %v2509_v24, %v2508_v8 }
 0x3dd   : > { %2513 = vst.msk [vmem:[%s3976_s23 + $0x1] sm:$0x1] %vm2511_vm11, %v2510_v38 }
 0x3de PF: > { %s14_s12 = sadd.s32 1, %s2802_s12  }
 0x3df   : > { %p11_p5 = scmp.ge.s32.totalorder %s14_s12, 4  }
 0x3e1   :  { %13 = sbr.rel (!%p11_p5) target bundleno = 1 (0x1), region = 72 }

</bundles_post_ra>
